<compile_context>
chip_gen: v6e
topology: v6e:2x2x1
jax: 0.10.0
libtpu: 0.0.40
codegen_flags: <defaults>
</compile_context>

<pallas_src>
import functools

import jax
import jax.numpy as jnp
from jax import lax
from jax.experimental import pallas as pl
from jax.experimental.pallas import tpu as pltpu

ACT_DTYPE = jnp.bfloat16   # matmul operand / activation dtype (f32 accumulate)
BN_EPS = 1e-5
CONV_LANES = 128           # carry conv activations at 128 channels (lane-dense)


# ----------------------------------------------------------------------------
# Pallas kernels
# ----------------------------------------------------------------------------
def _conv3x3_kernel(x_ref, w_ref, b_ref, o_ref, *, H, W, Cout):
    """Fused 3x3 conv (stride 1, pad 1) + folded-BN bias + ReLU, one image.

    x_ref: (1, H+2, W+2, Cin)  spatially padded input
    w_ref: (9, Cin, Cout)      taps ordered k = dy*3 + dx (BN folded in)
    b_ref: (1, Cout)           f32 bias (BN folded in)
    o_ref: (1, H, W, Cout)
    """
    bias = b_ref[...]  # (1, Cout) f32

    def row_body(h, carry):
        acc = jnp.zeros((W, Cout), jnp.float32)
        for dy in range(3):
            for dx in range(3):
                patch = x_ref[0, h + dy, dx:dx + W, :]      # (W, Cin)
                wk = w_ref[dy * 3 + dx]                      # (Cin, Cout)
                acc = acc + jnp.dot(patch, wk,
                                    preferred_element_type=jnp.float32)
        o_ref[0, h] = jnp.maximum(acc + bias, 0.0).astype(o_ref.dtype)
        return carry

    lax.fori_loop(0, H, row_body, 0)


def _maxpool_kernel(x_ref, o_ref, *, C):
    """MaxPool2d(2, 2) on a pre-reshaped block.

    x_ref: (Ho, 2, Wo, 2*C)  -- row pairs on dim 1, column pairs packed in lanes
    o_ref: (Ho, Wo, C)
    """
    rm = jnp.maximum(x_ref[:, 0], x_ref[:, 1])           # (Ho, Wo, 2C)
    o_ref[...] = jnp.maximum(rm[:, :, :C], rm[:, :, C:])  # (Ho, Wo, C)


def _head_kernel(xc_ref, xm_ref,
                 mw1_ref, mb1_ref, mw2_ref, mb2_ref,
                 fw1c_ref, fw1m_ref, fb1_ref,
                 fw2_ref, fb2_ref, fw3_ref, fb3_ref, fw4_ref, fb4_ref,
                 o_ref):
    """metadata MLP + concat + 4-layer FC stack, fused (weights VMEM-resident)."""

    def dense(x, w_ref, b_ref, relu=True):
        y = jnp.dot(x.astype(w_ref.dtype), w_ref[...],
                    preferred_element_type=jnp.float32) + b_ref[...]
        return jnp.maximum(y, 0.0) if relu else y

    # metadata_model: Linear+BN(folded)+ReLU, Dropout(eval no-op), Linear+BN+ReLU
    m = dense(xm_ref[...], mw1_ref, mb1_ref)
    m = dense(m, mw2_ref, mb2_ref)

    # fc1 over torch.cat([conv_flat, meta], -1)  ==  split matmul (no concat needed)
    h = jnp.dot(xc_ref[...], fw1c_ref[...], preferred_element_type=jnp.float32)
    h = h + jnp.dot(m.astype(fw1m_ref.dtype), fw1m_ref[...],
                    preferred_element_type=jnp.float32)
    h = jnp.maximum(h + fb1_ref[...], 0.0)

    h = dense(h, fw2_ref, fb2_ref)
    h = dense(h, fw3_ref, fb3_ref)
    o_ref[...] = dense(h, fw4_ref, fb4_ref, relu=False).astype(o_ref.dtype)


# ----------------------------------------------------------------------------
# Pallas-backed building blocks
# ----------------------------------------------------------------------------
def conv3x3_bn_relu(x_nhwc, w9, b):
    """x: (N,H,W,Cin) NHWC; w9: (9,Cin,Cout); b: (1,Cout) f32 -> (N,H,W,Cout)."""
    N, H, W, Cin = x_nhwc.shape
    assert w9.shape[0] == 9 and w9.shape[1] == Cin
    Cout = w9.shape[2]
    xp = jnp.pad(x_nhwc, ((0, 0), (1, 1), (1, 1), (0, 0)))  # spatial pad only
    kern = functools.partial(_conv3x3_kernel, H=H, W=W, Cout=Cout)
    return pl.pallas_call(
        kern,
        out_shape=jax.ShapeDtypeStruct((N, H, W, Cout), ACT_DTYPE),
        grid=(N,),
        in_specs=[
            pl.BlockSpec((1, H + 2, W + 2, Cin), lambda n: (n, 0, 0, 0)),
            pl.BlockSpec((9, Cin, Cout), lambda n: (0, 0, 0)),
            pl.BlockSpec((1, Cout), lambda n: (0, 0)),
        ],
        out_specs=pl.BlockSpec((1, H, W, Cout), lambda n: (n, 0, 0, 0)),
        compiler_params=pltpu.CompilerParams(
            dimension_semantics=("parallel",)),
    )(xp, w9, b)


def maxpool2x2(x_nhwc):
    """MaxPool2d(kernel=2, stride=2); input read once, no strided HBM copies."""
    N, H, W, C = x_nhwc.shape
    assert H % 2 == 0 and W % 2 == 0
    Ho, Wo = H // 2, W // 2
    # Contiguous (free) reshape: (n, 2i+p, 2j+q, c) -> (n*Ho+i, p, j, q*C+c)
    xr = x_nhwc.reshape(N * Ho, 2, Wo, 2 * C)
    kern = functools.partial(_maxpool_kernel, C=C)
    out = pl.pallas_call(
        kern,
        out_shape=jax.ShapeDtypeStruct((N * Ho, Wo, C), x_nhwc.dtype),
        grid=(N,),
        in_specs=[pl.BlockSpec((Ho, 2, Wo, 2 * C), lambda n: (n, 0, 0, 0))],
        out_specs=pl.BlockSpec((Ho, Wo, C), lambda n: (n, 0, 0)),
        compiler_params=pltpu.CompilerParams(
            dimension_semantics=("parallel",)),
    )(xr)
    return out.reshape(N, Ho, Wo, C)


def head_forward(xc, xm, hp):
    """Fused metadata-MLP + FC head.  xc: (M, fc_in), xm: (M, meta_in)."""
    M = xc.shape[0]
    TM = min(512, max(8, ((M + 7) // 8) * 8))
    Mp = ((M + TM - 1) // TM) * TM
    if Mp != M:
        xc = jnp.pad(xc, ((0, Mp - M), (0, 0)))
        xm = jnp.pad(xm, ((0, Mp - M), (0, 0)))
    Fc, Fm = xc.shape[1], xm.shape[1]
    out_features = hp["fb4"].shape[-1]

    def full(a):
        return pl.BlockSpec(a.shape, lambda i, _a=a: (0,) * _a.ndim)

    w_order = [hp["mw1"], hp["mb1"], hp["mw2"], hp["mb2"],
               hp["fw1c"], hp["fw1m"], hp["fb1"],
               hp["fw2"], hp["fb2"], hp["fw3"], hp["fb3"],
               hp["fw4"], hp["fb4"]]

    out = pl.pallas_call(
        _head_kernel,
        out_shape=jax.ShapeDtypeStruct((Mp, out_features), jnp.float32),
        grid=(Mp // TM,),
        in_specs=[pl.BlockSpec((TM, Fc), lambda i: (i, 0)),
                  pl.BlockSpec((TM, Fm), lambda i: (i, 0))]
                 + [full(a) for a in w_order],
        out_specs=pl.BlockSpec((TM, out_features), lambda i: (i, 0)),
        compiler_params=pltpu.CompilerParams(
            dimension_semantics=("parallel",)),
    )(xc, xm, *w_order)
    return out[:M]


# ----------------------------------------------------------------------------
# Parameter init (PyTorch-style) and eval-mode preparation (BN fold, padding)
# ----------------------------------------------------------------------------
def init_params(key, input_shape, out_features, metadata_in_features,
                metadata_out_features=128):
    Cin0, H, W = input_shape
    assert H % 16 == 0 and W % 16 == 0, "four 2x2 maxpools need H, W % 16 == 0"
    chans = [(Cin0, 32), (32, 32), (32, 64), (64, 64),
             (64, 128), (128, 128), (128, 128), (128, 128)]
    conv = []
    for ci, co in chans:
        key, kw, kb = jax.random.split(key, 3)
        bound = 1.0 / ((ci * 9) ** 0.5)
        conv.append(dict(
            w=jax.random.uniform(kw, (9, ci, co), jnp.float32, -bound, bound),
            b=jax.random.uniform(kb, (co,), jnp.float32, -bound, bound),
            gamma=jnp.ones((co,), jnp.float32), beta=jnp.zeros((co,), jnp.float32),
            mean=jnp.zeros((co,), jnp.float32), var=jnp.ones((co,), jnp.float32)))

    def linear(k, fi, fo):
        kw, kb = jax.random.split(k)
        bound = 1.0 / (fi ** 0.5)
        return (jax.random.uniform(kw, (fi, fo), jnp.float32, -bound, bound),
                jax.random.uniform(kb, (fo,), jnp.float32, -bound, bound))

    key, k1, k2, k3, k4, k5, k6 = jax.random.split(key, 7)
    mw1, mb1 = linear(k1, metadata_in_features, 512)
    mw2, mb2 = linear(k2, 512, metadata_out_features)
    meta = dict(w1=mw1, b1=mb1,
                g1=jnp.ones((512,)), be1=jnp.zeros((512,)),
                m1=jnp.zeros((512,)), v1=jnp.ones((512,)),
                w2=mw2, b2=mb2,
                g2=jnp.ones((metadata_out_features,)),
                be2=jnp.zeros((metadata_out_features,)),
                m2=jnp.zeros((metadata_out_features,)),
                v2=jnp.ones((metadata_out_features,)))

    fc_in = 128 * (H // 16) * (W // 16)
    fw1, fb1 = linear(k3, fc_in + metadata_out_features, 256)
    fw2, fb2 = linear(k4, 256, 128)
    fw3, fb3 = linear(k5, 128, 128)
    fw4, fb4 = linear(k6, 128, out_features)
    fc = dict(w1=fw1, b1=fb1, w2=fw2, b2=fb2, w3=fw3, b3=fb3, w4=fw4, b4=fb4)
    return dict(conv=conv, meta=meta, fc=fc)


def _fold_bn(w, b, gamma, beta, mean, var):
    """Eval-mode BatchNorm fold into the preceding conv/linear (last dim = out)."""
    s = gamma / jnp.sqrt(var + BN_EPS)
    return w * s, (b - mean) * s + beta


def prepare_params(params):
    convs = []
    for i, cp in enumerate(params["conv"]):
        w, b = _fold_bn(cp["w"], cp["b"], cp["gamma"], cp["beta"],
                        cp["mean"], cp["var"])
        co = w.shape[-1]
        if co < CONV_LANES:        # zero-pad Cout -> 128: lane-dense, exact
            w = jnp.pad(w, ((0, 0), (0, 0), (0, CONV_LANES - co)))
            b = jnp.pad(b, ((0, CONV_LANES - co),))
        if i > 0 and w.shape[1] < CONV_LANES:  # upstream activations carry 128 ch
            w = jnp.pad(w, ((0, 0), (0, CONV_LANES - w.shape[1]), (0, 0)))
        convs.append((w.astype(ACT_DTYPE),
                      b.reshape(1, -1).astype(jnp.float32)))

    mp = params["meta"]
    mw1, mb1 = _fold_bn(mp["w1"], mp["b1"], mp["g1"], mp["be1"], mp["m1"], mp["v1"])
    mw2, mb2 = _fold_bn(mp["w2"], mp["b2"], mp["g2"], mp["be2"], mp["m2"], mp["v2"])
    fp = params["fc"]
    meta_out = mw2.shape[-1]
    fc_in = fp["w1"].shape[0] - meta_out
    head = dict(
        mw1=mw1.astype(ACT_DTYPE), mb1=mb1.reshape(1, -1).astype(jnp.float32),
        mw2=mw2.astype(ACT_DTYPE), mb2=mb2.reshape(1, -1).astype(jnp.float32),
        fw1c=fp["w1"][:fc_in].astype(ACT_DTYPE),
        fw1m=fp["w1"][fc_in:].astype(ACT_DTYPE),
        fb1=fp["b1"].reshape(1, -1).astype(jnp.float32),
        fw2=fp["w2"].astype(ACT_DTYPE),
        fb2=fp["b2"].reshape(1, -1).astype(jnp.float32),
        fw3=fp["w3"].astype(ACT_DTYPE),
        fb3=fp["b3"].reshape(1, -1).astype(jnp.float32),
        fw4=fp["w4"].astype(ACT_DTYPE),
        fb4=fp["b4"].reshape(1, -1).astype(jnp.float32))
    return dict(convs=convs, head=head)


# ----------------------------------------------------------------------------
# Forward pass (mirrors M3WithMetadata.forward, eval mode)
# ----------------------------------------------------------------------------
@jax.jit
def forward(prepared, x_nchw, metadata):
    x = jnp.transpose(x_nchw, (0, 2, 3, 1)).astype(ACT_DTYPE)  # NCHW -> NHWC
    for li, (w, b) in enumerate(prepared["convs"]):
        x = conv3x3_bn_relu(x, w, b)
        if li % 2 == 1:            # after conv2/4/6/8
            x = maxpool2x2(x)      # nn.Dropout(0.25): inference no-op
    n = x.shape[0]
    # flatten in NCHW order to match torch's x.view(x.size(0), -1)
    xc = jnp.transpose(x, (0, 3, 1, 2)).reshape(n, -1)
    xm = metadata.astype(ACT_DTYPE)
    return head_forward(xc, xm, prepared["head"])


# ----------------------------------------------------------------------------
if __name__ == "__main__":
    input_shape = (4, 16, 16)      # (C, H, W), H and W divisible by 16
    out_features = 10
    metadata_in_features = 8
    batch = 2

    key = jax.random.PRNGKey(0)
    key, kx, km = jax.random.split(key, 3)
    params = init_params(key, input_shape, out_features, metadata_in_features)
    prepared = prepare_params(params)

    x = jax.random.normal(kx, (batch,) + input_shape, dtype=jnp.float32)
    metadata = jax.random.normal(km, (batch, metadata_in_features),
                                 dtype=jnp.float32)

    y = forward(prepared, x, metadata)
    y = jax.block_until_ready(y)
    assert y.shape == (batch, out_features), y.shape
    assert bool(jnp.all(jnp.isfinite(y)))
    print("KERNEL_OK")
</pallas_src>

<mosaic_0001>
module attributes {stable_mosaic.version = 11 : i64} {
  func.func @_conv3x3_kernel(%arg0: i32, %arg1: memref<1x18x18x4xbf16, #tpu.memory_space<vmem>>, %arg2: memref<9x4x128xbf16, #tpu.memory_space<vmem>>, %arg3: memref<1x128xf32, #tpu.memory_space<vmem>>, %arg4: memref<1x16x16x128xbf16, #tpu.memory_space<vmem>>) attributes {dimension_semantics = [#tpu.dimension_semantics<parallel>], iteration_bounds = array<i64: 2>, scalar_prefetch = 0 : i64, scratch_operands = 0 : i64, tpu.core_type = #tpu.core_type<tc>, window_params = [{transform_indices = @transform_0, window_bounds = array<i64: 1, 18, 18, 4>}, {pipeline_mode = #tpu.pipeline_mode<synchronous>, transform_indices = @transform_1, window_bounds = array<i64: 9, 4, 128>}, {pipeline_mode = #tpu.pipeline_mode<synchronous>, transform_indices = @transform_2, window_bounds = array<i64: 1, 128>}, {transform_indices = @transform_3, window_bounds = array<i64: 1, 16, 16, 128>}]} {
    %c0 = arith.constant 0 : index
    %c0_0 = arith.constant 0 : index
    %0 = vector.load %arg3[%c0, %c0_0] : memref<1x128xf32, #tpu.memory_space<vmem>>, vector<1x128xf32>
    %c0_i32 = arith.constant 0 : i32
    %c16_i32 = arith.constant 16 : i32
    %1 = arith.addi %c0_i32, %c16_i32 : i32
    %c1_i32 = arith.constant 1 : i32
    scf.for %arg5 = %c0_i32 to %1 step %c1_i32  : i32 {
      %cst = arith.constant 0.000000e+00 : f32
      %2 = vector.broadcast %cst : f32 to vector<16x128xf32>
      %c0_i32_2 = arith.constant 0 : i32
      %3 = arith.addi %arg5, %c0_i32_2 : i32
      %c0_3 = arith.constant 0 : index
      %4 = arith.index_cast %3 : i32 to index
      %c0_4 = arith.constant 0 : index
      %c0_5 = arith.constant 0 : index
      %5 = vector.load %arg1[%c0_3, %4, %c0_4, %c0_5] : memref<1x18x18x4xbf16, #tpu.memory_space<vmem>>, vector<1x1x16x4xbf16>
      %6 = vector.shape_cast %5 : vector<1x1x16x4xbf16> to vector<16x4xbf16>
      %c0_6 = arith.constant 0 : index
      %c0_7 = arith.constant 0 : index
      %c0_8 = arith.constant 0 : index
      %7 = vector.load %arg2[%c0_6, %c0_7, %c0_8] : memref<9x4x128xbf16, #tpu.memory_space<vmem>>, vector<1x4x128xbf16>
      %8 = vector.shape_cast %7 : vector<1x4x128xbf16> to vector<4x128xbf16>
      %cst_9 = arith.constant dense<0.000000e+00> : vector<16x128xf32>
      %9 = tpu.matmul %6, %8, %cst_9 {dimension_numbers = #tpu.dot_dimension_numbers<[1], [0], [0], [1], [0, 0, 1, 1], [], []>} : vector<16x4xbf16>, vector<4x128xbf16>, vector<16x128xf32> -> vector<16x128xf32>
      %10 = arith.addf %2, %9 : vector<16x128xf32>
      %c0_i32_10 = arith.constant 0 : i32
      %11 = arith.addi %arg5, %c0_i32_10 : i32
      %c0_11 = arith.constant 0 : index
      %12 = arith.index_cast %11 : i32 to index
      %c1 = arith.constant 1 : index
      %c0_12 = arith.constant 0 : index
      %13 = vector.load %arg1[%c0_11, %12, %c1, %c0_12] : memref<1x18x18x4xbf16, #tpu.memory_space<vmem>>, vector<1x1x16x4xbf16>
      %14 = vector.shape_cast %13 : vector<1x1x16x4xbf16> to vector<16x4xbf16>
      %c1_13 = arith.constant 1 : index
      %c0_14 = arith.constant 0 : index
      %c0_15 = arith.constant 0 : index
      %15 = vector.load %arg2[%c1_13, %c0_14, %c0_15] : memref<9x4x128xbf16, #tpu.memory_space<vmem>>, vector<1x4x128xbf16>
      %16 = vector.shape_cast %15 : vector<1x4x128xbf16> to vector<4x128xbf16>
      %cst_16 = arith.constant dense<0.000000e+00> : vector<16x128xf32>
      %17 = tpu.matmul %14, %16, %cst_16 {dimension_numbers = #tpu.dot_dimension_numbers<[1], [0], [0], [1], [0, 0, 1, 1], [], []>} : vector<16x4xbf16>, vector<4x128xbf16>, vector<16x128xf32> -> vector<16x128xf32>
      %18 = arith.addf %10, %17 : vector<16x128xf32>
      %c0_i32_17 = arith.constant 0 : i32
      %19 = arith.addi %arg5, %c0_i32_17 : i32
      %c0_18 = arith.constant 0 : index
      %20 = arith.index_cast %19 : i32 to index
      %c2 = arith.constant 2 : index
      %c0_19 = arith.constant 0 : index
      %21 = vector.load %arg1[%c0_18, %20, %c2, %c0_19] : memref<1x18x18x4xbf16, #tpu.memory_space<vmem>>, vector<1x1x16x4xbf16>
      %22 = vector.shape_cast %21 : vector<1x1x16x4xbf16> to vector<16x4xbf16>
      %c2_20 = arith.constant 2 : index
      %c0_21 = arith.constant 0 : index
      %c0_22 = arith.constant 0 : index
      %23 = vector.load %arg2[%c2_20, %c0_21, %c0_22] : memref<9x4x128xbf16, #tpu.memory_space<vmem>>, vector<1x4x128xbf16>
      %24 = vector.shape_cast %23 : vector<1x4x128xbf16> to vector<4x128xbf16>
      %cst_23 = arith.constant dense<0.000000e+00> : vector<16x128xf32>
      %25 = tpu.matmul %22, %24, %cst_23 {dimension_numbers = #tpu.dot_dimension_numbers<[1], [0], [0], [1], [0, 0, 1, 1], [], []>} : vector<16x4xbf16>, vector<4x128xbf16>, vector<16x128xf32> -> vector<16x128xf32>
      %26 = arith.addf %18, %25 : vector<16x128xf32>
      %c1_i32_24 = arith.constant 1 : i32
      %27 = arith.addi %arg5, %c1_i32_24 : i32
      %c0_25 = arith.constant 0 : index
      %28 = arith.index_cast %27 : i32 to index
      %c0_26 = arith.constant 0 : index
      %c0_27 = arith.constant 0 : index
      %29 = vector.load %arg1[%c0_25, %28, %c0_26, %c0_27] : memref<1x18x18x4xbf16, #tpu.memory_space<vmem>>, vector<1x1x16x4xbf16>
      %30 = vector.shape_cast %29 : vector<1x1x16x4xbf16> to vector<16x4xbf16>
      %c3 = arith.constant 3 : index
      %c0_28 = arith.constant 0 : index
      %c0_29 = arith.constant 0 : index
      %31 = vector.load %arg2[%c3, %c0_28, %c0_29] : memref<9x4x128xbf16, #tpu.memory_space<vmem>>, vector<1x4x128xbf16>
      %32 = vector.shape_cast %31 : vector<1x4x128xbf16> to vector<4x128xbf16>
      %cst_30 = arith.constant dense<0.000000e+00> : vector<16x128xf32>
      %33 = tpu.matmul %30, %32, %cst_30 {dimension_numbers = #tpu.dot_dimension_numbers<[1], [0], [0], [1], [0, 0, 1, 1], [], []>} : vector<16x4xbf16>, vector<4x128xbf16>, vector<16x128xf32> -> vector<16x128xf32>
      %34 = arith.addf %26, %33 : vector<16x128xf32>
      %c1_i32_31 = arith.constant 1 : i32
      %35 = arith.addi %arg5, %c1_i32_31 : i32
      %c0_32 = arith.constant 0 : index
      %36 = arith.index_cast %35 : i32 to index
      %c1_33 = arith.constant 1 : index
      %c0_34 = arith.constant 0 : index
      %37 = vector.load %arg1[%c0_32, %36, %c1_33, %c0_34] : memref<1x18x18x4xbf16, #tpu.memory_space<vmem>>, vector<1x1x16x4xbf16>
      %38 = vector.shape_cast %37 : vector<1x1x16x4xbf16> to vector<16x4xbf16>
      %c4 = arith.constant 4 : index
      %c0_35 = arith.constant 0 : index
      %c0_36 = arith.constant 0 : index
      %39 = vector.load %arg2[%c4, %c0_35, %c0_36] : memref<9x4x128xbf16, #tpu.memory_space<vmem>>, vector<1x4x128xbf16>
      %40 = vector.shape_cast %39 : vector<1x4x128xbf16> to vector<4x128xbf16>
      %cst_37 = arith.constant dense<0.000000e+00> : vector<16x128xf32>
      %41 = tpu.matmul %38, %40, %cst_37 {dimension_numbers = #tpu.dot_dimension_numbers<[1], [0], [0], [1], [0, 0, 1, 1], [], []>} : vector<16x4xbf16>, vector<4x128xbf16>, vector<16x128xf32> -> vector<16x128xf32>
      %42 = arith.addf %34, %41 : vector<16x128xf32>
      %c1_i32_38 = arith.constant 1 : i32
      %43 = arith.addi %arg5, %c1_i32_38 : i32
      %c0_39 = arith.constant 0 : index
      %44 = arith.index_cast %43 : i32 to index
      %c2_40 = arith.constant 2 : index
      %c0_41 = arith.constant 0 : index
      %45 = vector.load %arg1[%c0_39, %44, %c2_40, %c0_41] : memref<1x18x18x4xbf16, #tpu.memory_space<vmem>>, vector<1x1x16x4xbf16>
      %46 = vector.shape_cast %45 : vector<1x1x16x4xbf16> to vector<16x4xbf16>
      %c5 = arith.constant 5 : index
      %c0_42 = arith.constant 0 : index
      %c0_43 = arith.constant 0 : index
      %47 = vector.load %arg2[%c5, %c0_42, %c0_43] : memref<9x4x128xbf16, #tpu.memory_space<vmem>>, vector<1x4x128xbf16>
      %48 = vector.shape_cast %47 : vector<1x4x128xbf16> to vector<4x128xbf16>
      %cst_44 = arith.constant dense<0.000000e+00> : vector<16x128xf32>
      %49 = tpu.matmul %46, %48, %cst_44 {dimension_numbers = #tpu.dot_dimension_numbers<[1], [0], [0], [1], [0, 0, 1, 1], [], []>} : vector<16x4xbf16>, vector<4x128xbf16>, vector<16x128xf32> -> vector<16x128xf32>
      %50 = arith.addf %42, %49 : vector<16x128xf32>
      %c2_i32 = arith.constant 2 : i32
      %51 = arith.addi %arg5, %c2_i32 : i32
      %c0_45 = arith.constant 0 : index
      %52 = arith.index_cast %51 : i32 to index
      %c0_46 = arith.constant 0 : index
      %c0_47 = arith.constant 0 : index
      %53 = vector.load %arg1[%c0_45, %52, %c0_46, %c0_47] : memref<1x18x18x4xbf16, #tpu.memory_space<vmem>>, vector<1x1x16x4xbf16>
      %54 = vector.shape_cast %53 : vector<1x1x16x4xbf16> to vector<16x4xbf16>
      %c6 = arith.constant 6 : index
      %c0_48 = arith.constant 0 : index
      %c0_49 = arith.constant 0 : index
      %55 = vector.load %arg2[%c6, %c0_48, %c0_49] : memref<9x4x128xbf16, #tpu.memory_space<vmem>>, vector<1x4x128xbf16>
      %56 = vector.shape_cast %55 : vector<1x4x128xbf16> to vector<4x128xbf16>
      %cst_50 = arith.constant dense<0.000000e+00> : vector<16x128xf32>
      %57 = tpu.matmul %54, %56, %cst_50 {dimension_numbers = #tpu.dot_dimension_numbers<[1], [0], [0], [1], [0, 0, 1, 1], [], []>} : vector<16x4xbf16>, vector<4x128xbf16>, vector<16x128xf32> -> vector<16x128xf32>
      %58 = arith.addf %50, %57 : vector<16x128xf32>
      %c2_i32_51 = arith.constant 2 : i32
      %59 = arith.addi %arg5, %c2_i32_51 : i32
      %c0_52 = arith.constant 0 : index
      %60 = arith.index_cast %59 : i32 to index
      %c1_53 = arith.constant 1 : index
      %c0_54 = arith.constant 0 : index
      %61 = vector.load %arg1[%c0_52, %60, %c1_53, %c0_54] : memref<1x18x18x4xbf16, #tpu.memory_space<vmem>>, vector<1x1x16x4xbf16>
      %62 = vector.shape_cast %61 : vector<1x1x16x4xbf16> to vector<16x4xbf16>
      %c7 = arith.constant 7 : index
      %c0_55 = arith.constant 0 : index
      %c0_56 = arith.constant 0 : index
      %63 = vector.load %arg2[%c7, %c0_55, %c0_56] : memref<9x4x128xbf16, #tpu.memory_space<vmem>>, vector<1x4x128xbf16>
      %64 = vector.shape_cast %63 : vector<1x4x128xbf16> to vector<4x128xbf16>
      %cst_57 = arith.constant dense<0.000000e+00> : vector<16x128xf32>
      %65 = tpu.matmul %62, %64, %cst_57 {dimension_numbers = #tpu.dot_dimension_numbers<[1], [0], [0], [1], [0, 0, 1, 1], [], []>} : vector<16x4xbf16>, vector<4x128xbf16>, vector<16x128xf32> -> vector<16x128xf32>
      %66 = arith.addf %58, %65 : vector<16x128xf32>
      %c2_i32_58 = arith.constant 2 : i32
      %67 = arith.addi %arg5, %c2_i32_58 : i32
      %c0_59 = arith.constant 0 : index
      %68 = arith.index_cast %67 : i32 to index
      %c2_60 = arith.constant 2 : index
      %c0_61 = arith.constant 0 : index
      %69 = vector.load %arg1[%c0_59, %68, %c2_60, %c0_61] : memref<1x18x18x4xbf16, #tpu.memory_space<vmem>>, vector<1x1x16x4xbf16>
      %70 = vector.shape_cast %69 : vector<1x1x16x4xbf16> to vector<16x4xbf16>
      %c8 = arith.constant 8 : index
      %c0_62 = arith.constant 0 : index
      %c0_63 = arith.constant 0 : index
      %71 = vector.load %arg2[%c8, %c0_62, %c0_63] : memref<9x4x128xbf16, #tpu.memory_space<vmem>>, vector<1x4x128xbf16>
      %72 = vector.shape_cast %71 : vector<1x4x128xbf16> to vector<4x128xbf16>
      %cst_64 = arith.constant dense<0.000000e+00> : vector<16x128xf32>
      %73 = tpu.matmul %70, %72, %cst_64 {dimension_numbers = #tpu.dot_dimension_numbers<[1], [0], [0], [1], [0, 0, 1, 1], [], []>} : vector<16x4xbf16>, vector<4x128xbf16>, vector<16x128xf32> -> vector<16x128xf32>
      %74 = arith.addf %66, %73 : vector<16x128xf32>
      %75 = vector.broadcast %0 : vector<1x128xf32> to vector<16x128xf32>
      %76 = arith.addf %74, %75 : vector<16x128xf32>
      %cst_65 = arith.constant 0.000000e+00 : f32
      %77 = vector.broadcast %cst_65 : f32 to vector<16x128xf32>
      %78 = arith.maximumf %76, %77 : vector<16x128xf32>
      %79 = arith.truncf %78 : vector<16x128xf32> to vector<16x128xbf16>
      %c0_66 = arith.constant 0 : index
      %80 = arith.index_cast %arg5 : i32 to index
      %c0_67 = arith.constant 0 : index
      %c0_68 = arith.constant 0 : index
      %81 = vector.load %arg4[%c0_66, %80, %c0_67, %c0_68] : memref<1x16x16x128xbf16, #tpu.memory_space<vmem>>, vector<1x1x16x128xbf16>
      %82 = vector.shape_cast %81 : vector<1x1x16x128xbf16> to vector<16x128xbf16>
      %83 = vector.shape_cast %79 : vector<16x128xbf16> to vector<1x1x16x128xbf16>
      tpu.vector_store %arg4[%c0_66, %80, %c0_67, %c0_68], %83 {strides = array<i32>} : memref<1x16x16x128xbf16, #tpu.memory_space<vmem>>, vector<1x1x16x128xbf16>,
    }
    %c16_i32_1 = arith.constant 16 : i32
    return
  }
  func.func @transform_0(%arg0: i32) -> (i32, i32, i32, i32) {
    %c0_i32 = arith.constant 0 : i32
    %c0_i32_0 = arith.constant 0 : i32
    %c0_i32_1 = arith.constant 0 : i32
    %c0_i32_2 = arith.constant 0 : i32
    return %arg0, %c0_i32, %c0_i32_0, %c0_i32_1 : i32, i32, i32, i32
  }
  func.func @transform_1(%arg0: i32) -> (i32, i32, i32) {
    %c0_i32 = arith.constant 0 : i32
    %c0_i32_0 = arith.constant 0 : i32
    %c0_i32_1 = arith.constant 0 : i32
    %c0_i32_2 = arith.constant 0 : i32
    return %c0_i32, %c0_i32_0, %c0_i32_1 : i32, i32, i32
  }
  func.func @transform_2(%arg0: i32) -> (i32, i32) {
    %c0_i32 = arith.constant 0 : i32
    %c0_i32_0 = arith.constant 0 : i32
    %c0_i32_1 = arith.constant 0 : i32
    return %c0_i32, %c0_i32_0 : i32, i32
  }
  func.func @transform_3(%arg0: i32) -> (i32, i32, i32, i32) {
    %c0_i32 = arith.constant 0 : i32
    %c0_i32_0 = arith.constant 0 : i32
    %c0_i32_1 = arith.constant 0 : i32
    %c0_i32_2 = arith.constant 0 : i32
    return %arg0, %c0_i32, %c0_i32_0, %c0_i32_1 : i32, i32, i32, i32
  }
}

module attributes {stable_mosaic.version = 11 : i64} {
  func.func @_conv3x3_kernel(%arg0: i32, %arg1: memref<1x18x18x128xbf16, #tpu.memory_space<vmem>>, %arg2: memref<9x128x128xbf16, #tpu.memory_space<vmem>>, %arg3: memref<1x128xf32, #tpu.memory_space<vmem>>, %arg4: memref<1x16x16x128xbf16, #tpu.memory_space<vmem>>) attributes {dimension_semantics = [#tpu.dimension_semantics<parallel>], iteration_bounds = array<i64: 2>, scalar_prefetch = 0 : i64, scratch_operands = 0 : i64, tpu.core_type = #tpu.core_type<tc>, window_params = [{transform_indices = @transform_0, window_bounds = array<i64: 1, 18, 18, 128>}, {pipeline_mode = #tpu.pipeline_mode<synchronous>, transform_indices = @transform_1, window_bounds = array<i64: 9, 128, 128>}, {pipeline_mode = #tpu.pipeline_mode<synchronous>, transform_indices = @transform_2, window_bounds = array<i64: 1, 128>}, {transform_indices = @transform_3, window_bounds = array<i64: 1, 16, 16, 128>}]} {
    %c0 = arith.constant 0 : index
    %c0_0 = arith.constant 0 : index
    %0 = vector.load %arg3[%c0, %c0_0] : memref<1x128xf32, #tpu.memory_space<vmem>>, vector<1x128xf32>
    %c0_i32 = arith.constant 0 : i32
    %c16_i32 = arith.constant 16 : i32
    %1 = arith.addi %c0_i32, %c16_i32 : i32
    %c1_i32 = arith.constant 1 : i32
    scf.for %arg5 = %c0_i32 to %1 step %c1_i32  : i32 {
      %cst = arith.constant 0.000000e+00 : f32
      %2 = vector.broadcast %cst : f32 to vector<16x128xf32>
      %c0_i32_2 = arith.constant 0 : i32
      %3 = arith.addi %arg5, %c0_i32_2 : i32
      %c0_3 = arith.constant 0 : index
      %4 = arith.index_cast %3 : i32 to index
      %c0_4 = arith.constant 0 : index
      %c0_5 = arith.constant 0 : index
      %5 = vector.load %arg1[%c0_3, %4, %c0_4, %c0_5] : memref<1x18x18x128xbf16, #tpu.memory_space<vmem>>, vector<1x1x16x128xbf16>
      %6 = vector.shape_cast %5 : vector<1x1x16x128xbf16> to vector<16x128xbf16>
      %c0_6 = arith.constant 0 : index
      %c0_7 = arith.constant 0 : index
      %c0_8 = arith.constant 0 : index
      %7 = vector.load %arg2[%c0_6, %c0_7, %c0_8] : memref<9x128x128xbf16, #tpu.memory_space<vmem>>, vector<1x128x128xbf16>
      %8 = vector.shape_cast %7 : vector<1x128x128xbf16> to vector<128x128xbf16>
      %cst_9 = arith.constant dense<0.000000e+00> : vector<16x128xf32>
      %9 = tpu.matmul %6, %8, %cst_9 {dimension_numbers = #tpu.dot_dimension_numbers<[1], [0], [0], [1], [0, 0, 1, 1], [], []>} : vector<16x128xbf16>, vector<128x128xbf16>, vector<16x128xf32> -> vector<16x128xf32>
      %10 = arith.addf %2, %9 : vector<16x128xf32>
      %c0_i32_10 = arith.constant 0 : i32
      %11 = arith.addi %arg5, %c0_i32_10 : i32
      %c0_11 = arith.constant 0 : index
      %12 = arith.index_cast %11 : i32 to index
      %c1 = arith.constant 1 : index
      %c0_12 = arith.constant 0 : index
      %13 = vector.load %arg1[%c0_11, %12, %c1, %c0_12] : memref<1x18x18x128xbf16, #tpu.memory_space<vmem>>, vector<1x1x16x128xbf16>
      %14 = vector.shape_cast %13 : vector<1x1x16x128xbf16> to vector<16x128xbf16>
      %c1_13 = arith.constant 1 : index
      %c0_14 = arith.constant 0 : index
      %c0_15 = arith.constant 0 : index
      %15 = vector.load %arg2[%c1_13, %c0_14, %c0_15] : memref<9x128x128xbf16, #tpu.memory_space<vmem>>, vector<1x128x128xbf16>
      %16 = vector.shape_cast %15 : vector<1x128x128xbf16> to vector<128x128xbf16>
      %cst_16 = arith.constant dense<0.000000e+00> : vector<16x128xf32>
      %17 = tpu.matmul %14, %16, %cst_16 {dimension_numbers = #tpu.dot_dimension_numbers<[1], [0], [0], [1], [0, 0, 1, 1], [], []>} : vector<16x128xbf16>, vector<128x128xbf16>, vector<16x128xf32> -> vector<16x128xf32>
      %18 = arith.addf %10, %17 : vector<16x128xf32>
      %c0_i32_17 = arith.constant 0 : i32
      %19 = arith.addi %arg5, %c0_i32_17 : i32
      %c0_18 = arith.constant 0 : index
      %20 = arith.index_cast %19 : i32 to index
      %c2 = arith.constant 2 : index
      %c0_19 = arith.constant 0 : index
      %21 = vector.load %arg1[%c0_18, %20, %c2, %c0_19] : memref<1x18x18x128xbf16, #tpu.memory_space<vmem>>, vector<1x1x16x128xbf16>
      %22 = vector.shape_cast %21 : vector<1x1x16x128xbf16> to vector<16x128xbf16>
      %c2_20 = arith.constant 2 : index
      %c0_21 = arith.constant 0 : index
      %c0_22 = arith.constant 0 : index
      %23 = vector.load %arg2[%c2_20, %c0_21, %c0_22] : memref<9x128x128xbf16, #tpu.memory_space<vmem>>, vector<1x128x128xbf16>
      %24 = vector.shape_cast %23 : vector<1x128x128xbf16> to vector<128x128xbf16>
      %cst_23 = arith.constant dense<0.000000e+00> : vector<16x128xf32>
      %25 = tpu.matmul %22, %24, %cst_23 {dimension_numbers = #tpu.dot_dimension_numbers<[1], [0], [0], [1], [0, 0, 1, 1], [], []>} : vector<16x128xbf16>, vector<128x128xbf16>, vector<16x128xf32> -> vector<16x128xf32>
      %26 = arith.addf %18, %25 : vector<16x128xf32>
      %c1_i32_24 = arith.constant 1 : i32
      %27 = arith.addi %arg5, %c1_i32_24 : i32
      %c0_25 = arith.constant 0 : index
      %28 = arith.index_cast %27 : i32 to index
      %c0_26 = arith.constant 0 : index
      %c0_27 = arith.constant 0 : index
      %29 = vector.load %arg1[%c0_25, %28, %c0_26, %c0_27] : memref<1x18x18x128xbf16, #tpu.memory_space<vmem>>, vector<1x1x16x128xbf16>
      %30 = vector.shape_cast %29 : vector<1x1x16x128xbf16> to vector<16x128xbf16>
      %c3 = arith.constant 3 : index
      %c0_28 = arith.constant 0 : index
      %c0_29 = arith.constant 0 : index
      %31 = vector.load %arg2[%c3, %c0_28, %c0_29] : memref<9x128x128xbf16, #tpu.memory_space<vmem>>, vector<1x128x128xbf16>
      %32 = vector.shape_cast %31 : vector<1x128x128xbf16> to vector<128x128xbf16>
      %cst_30 = arith.constant dense<0.000000e+00> : vector<16x128xf32>
      %33 = tpu.matmul %30, %32, %cst_30 {dimension_numbers = #tpu.dot_dimension_numbers<[1], [0], [0], [1], [0, 0, 1, 1], [], []>} : vector<16x128xbf16>, vector<128x128xbf16>, vector<16x128xf32> -> vector<16x128xf32>
      %34 = arith.addf %26, %33 : vector<16x128xf32>
      %c1_i32_31 = arith.constant 1 : i32
      %35 = arith.addi %arg5, %c1_i32_31 : i32
      %c0_32 = arith.constant 0 : index
      %36 = arith.index_cast %35 : i32 to index
      %c1_33 = arith.constant 1 : index
      %c0_34 = arith.constant 0 : index
      %37 = vector.load %arg1[%c0_32, %36, %c1_33, %c0_34] : memref<1x18x18x128xbf16, #tpu.memory_space<vmem>>, vector<1x1x16x128xbf16>
      %38 = vector.shape_cast %37 : vector<1x1x16x128xbf16> to vector<16x128xbf16>
      %c4 = arith.constant 4 : index
      %c0_35 = arith.constant 0 : index
      %c0_36 = arith.constant 0 : index
      %39 = vector.load %arg2[%c4, %c0_35, %c0_36] : memref<9x128x128xbf16, #tpu.memory_space<vmem>>, vector<1x128x128xbf16>
      %40 = vector.shape_cast %39 : vector<1x128x128xbf16> to vector<128x128xbf16>
      %cst_37 = arith.constant dense<0.000000e+00> : vector<16x128xf32>
      %41 = tpu.matmul %38, %40, %cst_37 {dimension_numbers = #tpu.dot_dimension_numbers<[1], [0], [0], [1], [0, 0, 1, 1], [], []>} : vector<16x128xbf16>, vector<128x128xbf16>, vector<16x128xf32> -> vector<16x128xf32>
      %42 = arith.addf %34, %41 : vector<16x128xf32>
      %c1_i32_38 = arith.constant 1 : i32
      %43 = arith.addi %arg5, %c1_i32_38 : i32
      %c0_39 = arith.constant 0 : index
      %44 = arith.index_cast %43 : i32 to index
      %c2_40 = arith.constant 2 : index
      %c0_41 = arith.constant 0 : index
      %45 = vector.load %arg1[%c0_39, %44, %c2_40, %c0_41] : memref<1x18x18x128xbf16, #tpu.memory_space<vmem>>, vector<1x1x16x128xbf16>
      %46 = vector.shape_cast %45 : vector<1x1x16x128xbf16> to vector<16x128xbf16>
      %c5 = arith.constant 5 : index
      %c0_42 = arith.constant 0 : index
      %c0_43 = arith.constant 0 : index
      %47 = vector.load %arg2[%c5, %c0_42, %c0_43] : memref<9x128x128xbf16, #tpu.memory_space<vmem>>, vector<1x128x128xbf16>
      %48 = vector.shape_cast %47 : vector<1x128x128xbf16> to vector<128x128xbf16>
      %cst_44 = arith.constant dense<0.000000e+00> : vector<16x128xf32>
      %49 = tpu.matmul %46, %48, %cst_44 {dimension_numbers = #tpu.dot_dimension_numbers<[1], [0], [0], [1], [0, 0, 1, 1], [], []>} : vector<16x128xbf16>, vector<128x128xbf16>, vector<16x128xf32> -> vector<16x128xf32>
      %50 = arith.addf %42, %49 : vector<16x128xf32>
      %c2_i32 = arith.constant 2 : i32
      %51 = arith.addi %arg5, %c2_i32 : i32
      %c0_45 = arith.constant 0 : index
      %52 = arith.index_cast %51 : i32 to index
      %c0_46 = arith.constant 0 : index
      %c0_47 = arith.constant 0 : index
      %53 = vector.load %arg1[%c0_45, %52, %c0_46, %c0_47] : memref<1x18x18x128xbf16, #tpu.memory_space<vmem>>, vector<1x1x16x128xbf16>
      %54 = vector.shape_cast %53 : vector<1x1x16x128xbf16> to vector<16x128xbf16>
      %c6 = arith.constant 6 : index
      %c0_48 = arith.constant 0 : index
      %c0_49 = arith.constant 0 : index
      %55 = vector.load %arg2[%c6, %c0_48, %c0_49] : memref<9x128x128xbf16, #tpu.memory_space<vmem>>, vector<1x128x128xbf16>
      %56 = vector.shape_cast %55 : vector<1x128x128xbf16> to vector<128x128xbf16>
      %cst_50 = arith.constant dense<0.000000e+00> : vector<16x128xf32>
      %57 = tpu.matmul %54, %56, %cst_50 {dimension_numbers = #tpu.dot_dimension_numbers<[1], [0], [0], [1], [0, 0, 1, 1], [], []>} : vector<16x128xbf16>, vector<128x128xbf16>, vector<16x128xf32> -> vector<16x128xf32>
      %58 = arith.addf %50, %57 : vector<16x128xf32>
      %c2_i32_51 = arith.constant 2 : i32
      %59 = arith.addi %arg5, %c2_i32_51 : i32
      %c0_52 = arith.constant 0 : index
      %60 = arith.index_cast %59 : i32 to index
      %c1_53 = arith.constant 1 : index
      %c0_54 = arith.constant 0 : index
      %61 = vector.load %arg1[%c0_52, %60, %c1_53, %c0_54] : memref<1x18x18x128xbf16, #tpu.memory_space<vmem>>, vector<1x1x16x128xbf16>
      %62 = vector.shape_cast %61 : vector<1x1x16x128xbf16> to vector<16x128xbf16>
      %c7 = arith.constant 7 : index
      %c0_55 = arith.constant 0 : index
      %c0_56 = arith.constant 0 : index
      %63 = vector.load %arg2[%c7, %c0_55, %c0_56] : memref<9x128x128xbf16, #tpu.memory_space<vmem>>, vector<1x128x128xbf16>
      %64 = vector.shape_cast %63 : vector<1x128x128xbf16> to vector<128x128xbf16>
      %cst_57 = arith.constant dense<0.000000e+00> : vector<16x128xf32>
      %65 = tpu.matmul %62, %64, %cst_57 {dimension_numbers = #tpu.dot_dimension_numbers<[1], [0], [0], [1], [0, 0, 1, 1], [], []>} : vector<16x128xbf16>, vector<128x128xbf16>, vector<16x128xf32> -> vector<16x128xf32>
      %66 = arith.addf %58, %65 : vector<16x128xf32>
      %c2_i32_58 = arith.constant 2 : i32
      %67 = arith.addi %arg5, %c2_i32_58 : i32
      %c0_59 = arith.constant 0 : index
      %68 = arith.index_cast %67 : i32 to index
      %c2_60 = arith.constant 2 : index
      %c0_61 = arith.constant 0 : index
      %69 = vector.load %arg1[%c0_59, %68, %c2_60, %c0_61] : memref<1x18x18x128xbf16, #tpu.memory_space<vmem>>, vector<1x1x16x128xbf16>
      %70 = vector.shape_cast %69 : vector<1x1x16x128xbf16> to vector<16x128xbf16>
      %c8 = arith.constant 8 : index
      %c0_62 = arith.constant 0 : index
      %c0_63 = arith.constant 0 : index
      %71 = vector.load %arg2[%c8, %c0_62, %c0_63] : memref<9x128x128xbf16, #tpu.memory_space<vmem>>, vector<1x128x128xbf16>
      %72 = vector.shape_cast %71 : vector<1x128x128xbf16> to vector<128x128xbf16>
      %cst_64 = arith.constant dense<0.000000e+00> : vector<16x128xf32>
      %73 = tpu.matmul %70, %72, %cst_64 {dimension_numbers = #tpu.dot_dimension_numbers<[1], [0], [0], [1], [0, 0, 1, 1], [], []>} : vector<16x128xbf16>, vector<128x128xbf16>, vector<16x128xf32> -> vector<16x128xf32>
      %74 = arith.addf %66, %73 : vector<16x128xf32>
      %75 = vector.broadcast %0 : vector<1x128xf32> to vector<16x128xf32>
      %76 = arith.addf %74, %75 : vector<16x128xf32>
      %cst_65 = arith.constant 0.000000e+00 : f32
      %77 = vector.broadcast %cst_65 : f32 to vector<16x128xf32>
      %78 = arith.maximumf %76, %77 : vector<16x128xf32>
      %79 = arith.truncf %78 : vector<16x128xf32> to vector<16x128xbf16>
      %c0_66 = arith.constant 0 : index
      %80 = arith.index_cast %arg5 : i32 to index
      %c0_67 = arith.constant 0 : index
      %c0_68 = arith.constant 0 : index
      %81 = vector.load %arg4[%c0_66, %80, %c0_67, %c0_68] : memref<1x16x16x128xbf16, #tpu.memory_space<vmem>>, vector<1x1x16x128xbf16>
      %82 = vector.shape_cast %81 : vector<1x1x16x128xbf16> to vector<16x128xbf16>
      %83 = vector.shape_cast %79 : vector<16x128xbf16> to vector<1x1x16x128xbf16>
      tpu.vector_store %arg4[%c0_66, %80, %c0_67, %c0_68], %83 {strides = array<i32>} : memref<1x16x16x128xbf16, #tpu.memory_space<vmem>>, vector<1x1x16x128xbf16>,
    }
    %c16_i32_1 = arith.constant 16 : i32
    return
  }
  func.func @transform_0(%arg0: i32) -> (i32, i32, i32, i32) {
    %c0_i32 = arith.constant 0 : i32
    %c0_i32_0 = arith.constant 0 : i32
    %c0_i32_1 = arith.constant 0 : i32
    %c0_i32_2 = arith.constant 0 : i32
    return %arg0, %c0_i32, %c0_i32_0, %c0_i32_1 : i32, i32, i32, i32
  }
  func.func @transform_1(%arg0: i32) -> (i32, i32, i32) {
    %c0_i32 = arith.constant 0 : i32
    %c0_i32_0 = arith.constant 0 : i32
    %c0_i32_1 = arith.constant 0 : i32
    %c0_i32_2 = arith.constant 0 : i32
    return %c0_i32, %c0_i32_0, %c0_i32_1 : i32, i32, i32
  }
  func.func @transform_2(%arg0: i32) -> (i32, i32) {
    %c0_i32 = arith.constant 0 : i32
    %c0_i32_0 = arith.constant 0 : i32
    %c0_i32_1 = arith.constant 0 : i32
    return %c0_i32, %c0_i32_0 : i32, i32
  }
  func.func @transform_3(%arg0: i32) -> (i32, i32, i32, i32) {
    %c0_i32 = arith.constant 0 : i32
    %c0_i32_0 = arith.constant 0 : i32
    %c0_i32_1 = arith.constant 0 : i32
    %c0_i32_2 = arith.constant 0 : i32
    return %arg0, %c0_i32, %c0_i32_0, %c0_i32_1 : i32, i32, i32, i32
  }
}

module attributes {stable_mosaic.version = 11 : i64} {
  func.func @_maxpool_kernel(%arg0: i32, %arg1: memref<8x2x8x256xbf16, #tpu.memory_space<vmem>>, %arg2: memref<8x8x128xbf16, #tpu.memory_space<vmem>>) attributes {dimension_semantics = [#tpu.dimension_semantics<parallel>], iteration_bounds = array<i64: 2>, scalar_prefetch = 0 : i64, scratch_operands = 0 : i64, tpu.core_type = #tpu.core_type<tc>, window_params = [{transform_indices = @transform_0, window_bounds = array<i64: 8, 2, 8, 256>}, {transform_indices = @transform_1, window_bounds = array<i64: 8, 8, 128>}]} {
    %c0 = arith.constant 0 : index
    %c0_0 = arith.constant 0 : index
    %c0_1 = arith.constant 0 : index
    %c0_2 = arith.constant 0 : index
    %0 = vector.load %arg1[%c0, %c0_0, %c0_1, %c0_2] : memref<8x2x8x256xbf16, #tpu.memory_space<vmem>>, vector<8x1x8x256xbf16>
    %1 = vector.shape_cast %0 : vector<8x1x8x256xbf16> to vector<8x8x256xbf16>
    %c0_3 = arith.constant 0 : index
    %c1 = arith.constant 1 : index
    %c0_4 = arith.constant 0 : index
    %c0_5 = arith.constant 0 : index
    %2 = vector.load %arg1[%c0_3, %c1, %c0_4, %c0_5] : memref<8x2x8x256xbf16, #tpu.memory_space<vmem>>, vector<8x1x8x256xbf16>
    %3 = vector.shape_cast %2 : vector<8x1x8x256xbf16> to vector<8x8x256xbf16>
    %4 = arith.maximumf %1, %3 : vector<8x8x256xbf16>
    %5 = vector.extract_strided_slice %4 {offsets = [0, 0, 0], sizes = [8, 8, 128], strides = [1, 1, 1]} : vector<8x8x256xbf16> to vector<8x8x128xbf16>
    %6 = vector.extract_strided_slice %4 {offsets = [0, 0, 128], sizes = [8, 8, 128], strides = [1, 1, 1]} : vector<8x8x256xbf16> to vector<8x8x128xbf16>
    %7 = arith.maximumf %5, %6 : vector<8x8x128xbf16>
    %c0_6 = arith.constant 0 : index
    %c0_7 = arith.constant 0 : index
    %c0_8 = arith.constant 0 : index
    %8 = vector.load %arg2[%c0_6, %c0_7, %c0_8] : memref<8x8x128xbf16, #tpu.memory_space<vmem>>, vector<8x8x128xbf16>
    tpu.vector_store %arg2[%c0_6, %c0_7, %c0_8], %7 {strides = array<i32>} : memref<8x8x128xbf16, #tpu.memory_space<vmem>>, vector<8x8x128xbf16>,
    return
  }
  func.func @transform_0(%arg0: i32) -> (i32, i32, i32, i32) {
    %c0_i32 = arith.constant 0 : i32
    %c0_i32_0 = arith.constant 0 : i32
    %c0_i32_1 = arith.constant 0 : i32
    %c0_i32_2 = arith.constant 0 : i32
    return %arg0, %c0_i32, %c0_i32_0, %c0_i32_1 : i32, i32, i32, i32
  }
  func.func @transform_1(%arg0: i32) -> (i32, i32, i32) {
    %c0_i32 = arith.constant 0 : i32
    %c0_i32_0 = arith.constant 0 : i32
    %c0_i32_1 = arith.constant 0 : i32
    return %arg0, %c0_i32, %c0_i32_0 : i32, i32, i32
  }
}

module attributes {stable_mosaic.version = 11 : i64} {
  func.func @_maxpool_kernel(%arg0: i32, %arg1: memref<4x2x4x256xbf16, #tpu.memory_space<vmem>>, %arg2: memref<4x4x128xbf16, #tpu.memory_space<vmem>>) attributes {dimension_semantics = [#tpu.dimension_semantics<parallel>], iteration_bounds = array<i64: 2>, scalar_prefetch = 0 : i64, scratch_operands = 0 : i64, tpu.core_type = #tpu.core_type<tc>, window_params = [{transform_indices = @transform_0, window_bounds = array<i64: 4, 2, 4, 256>}, {transform_indices = @transform_1, window_bounds = array<i64: 4, 4, 128>}]} {
    %c0 = arith.constant 0 : index
    %c0_0 = arith.constant 0 : index
    %c0_1 = arith.constant 0 : index
    %c0_2 = arith.constant 0 : index
    %0 = vector.load %arg1[%c0, %c0_0, %c0_1, %c0_2] : memref<4x2x4x256xbf16, #tpu.memory_space<vmem>>, vector<4x1x4x256xbf16>
    %1 = vector.shape_cast %0 : vector<4x1x4x256xbf16> to vector<4x4x256xbf16>
    %c0_3 = arith.constant 0 : index
    %c1 = arith.constant 1 : index
    %c0_4 = arith.constant 0 : index
    %c0_5 = arith.constant 0 : index
    %2 = vector.load %arg1[%c0_3, %c1, %c0_4, %c0_5] : memref<4x2x4x256xbf16, #tpu.memory_space<vmem>>, vector<4x1x4x256xbf16>
    %3 = vector.shape_cast %2 : vector<4x1x4x256xbf16> to vector<4x4x256xbf16>
    %4 = arith.maximumf %1, %3 : vector<4x4x256xbf16>
    %5 = vector.extract_strided_slice %4 {offsets = [0, 0, 0], sizes = [4, 4, 128], strides = [1, 1, 1]} : vector<4x4x256xbf16> to vector<4x4x128xbf16>
    %6 = vector.extract_strided_slice %4 {offsets = [0, 0, 128], sizes = [4, 4, 128], strides = [1, 1, 1]} : vector<4x4x256xbf16> to vector<4x4x128xbf16>
    %7 = arith.maximumf %5, %6 : vector<4x4x128xbf16>
    %c0_6 = arith.constant 0 : index
    %c0_7 = arith.constant 0 : index
    %c0_8 = arith.constant 0 : index
    %8 = vector.load %arg2[%c0_6, %c0_7, %c0_8] : memref<4x4x128xbf16, #tpu.memory_space<vmem>>, vector<4x4x128xbf16>
    tpu.vector_store %arg2[%c0_6, %c0_7, %c0_8], %7 {strides = array<i32>} : memref<4x4x128xbf16, #tpu.memory_space<vmem>>, vector<4x4x128xbf16>,
    return
  }
  func.func @transform_0(%arg0: i32) -> (i32, i32, i32, i32) {
    %c0_i32 = arith.constant 0 : i32
    %c0_i32_0 = arith.constant 0 : i32
    %c0_i32_1 = arith.constant 0 : i32
    %c0_i32_2 = arith.constant 0 : i32
    return %arg0, %c0_i32, %c0_i32_0, %c0_i32_1 : i32, i32, i32, i32
  }
  func.func @transform_1(%arg0: i32) -> (i32, i32, i32) {
    %c0_i32 = arith.constant 0 : i32
    %c0_i32_0 = arith.constant 0 : i32
    %c0_i32_1 = arith.constant 0 : i32
    return %arg0, %c0_i32, %c0_i32_0 : i32, i32, i32
  }
}

module attributes {stable_mosaic.version = 11 : i64} {
  func.func @_conv3x3_kernel(%arg0: i32, %arg1: memref<1x10x10x128xbf16, #tpu.memory_space<vmem>>, %arg2: memref<9x128x128xbf16, #tpu.memory_space<vmem>>, %arg3: memref<1x128xf32, #tpu.memory_space<vmem>>, %arg4: memref<1x8x8x128xbf16, #tpu.memory_space<vmem>>) attributes {dimension_semantics = [#tpu.dimension_semantics<parallel>], iteration_bounds = array<i64: 2>, scalar_prefetch = 0 : i64, scratch_operands = 0 : i64, tpu.core_type = #tpu.core_type<tc>, window_params = [{transform_indices = @transform_0, window_bounds = array<i64: 1, 10, 10, 128>}, {pipeline_mode = #tpu.pipeline_mode<synchronous>, transform_indices = @transform_1, window_bounds = array<i64: 9, 128, 128>}, {pipeline_mode = #tpu.pipeline_mode<synchronous>, transform_indices = @transform_2, window_bounds = array<i64: 1, 128>}, {transform_indices = @transform_3, window_bounds = array<i64: 1, 8, 8, 128>}]} {
    %c0 = arith.constant 0 : index
    %c0_0 = arith.constant 0 : index
    %0 = vector.load %arg3[%c0, %c0_0] : memref<1x128xf32, #tpu.memory_space<vmem>>, vector<1x128xf32>
    %c0_i32 = arith.constant 0 : i32
    %c8_i32 = arith.constant 8 : i32
    %1 = arith.addi %c0_i32, %c8_i32 : i32
    %c1_i32 = arith.constant 1 : i32
    scf.for %arg5 = %c0_i32 to %1 step %c1_i32  : i32 {
      %cst = arith.constant 0.000000e+00 : f32
      %2 = vector.broadcast %cst : f32 to vector<8x128xf32>
      %c0_i32_2 = arith.constant 0 : i32
      %3 = arith.addi %arg5, %c0_i32_2 : i32
      %c0_3 = arith.constant 0 : index
      %4 = arith.index_cast %3 : i32 to index
      %c0_4 = arith.constant 0 : index
      %c0_5 = arith.constant 0 : index
      %5 = vector.load %arg1[%c0_3, %4, %c0_4, %c0_5] : memref<1x10x10x128xbf16, #tpu.memory_space<vmem>>, vector<1x1x8x128xbf16>
      %6 = vector.shape_cast %5 : vector<1x1x8x128xbf16> to vector<8x128xbf16>
      %c0_6 = arith.constant 0 : index
      %c0_7 = arith.constant 0 : index
      %c0_8 = arith.constant 0 : index
      %7 = vector.load %arg2[%c0_6, %c0_7, %c0_8] : memref<9x128x128xbf16, #tpu.memory_space<vmem>>, vector<1x128x128xbf16>
      %8 = vector.shape_cast %7 : vector<1x128x128xbf16> to vector<128x128xbf16>
      %cst_9 = arith.constant dense<0.000000e+00> : vector<8x128xf32>
      %9 = tpu.matmul %6, %8, %cst_9 {dimension_numbers = #tpu.dot_dimension_numbers<[1], [0], [0], [1], [0, 0, 1, 1], [], []>} : vector<8x128xbf16>, vector<128x128xbf16>, vector<8x128xf32> -> vector<8x128xf32>
      %10 = arith.addf %2, %9 : vector<8x128xf32>
      %c0_i32_10 = arith.constant 0 : i32
      %11 = arith.addi %arg5, %c0_i32_10 : i32
      %c0_11 = arith.constant 0 : index
      %12 = arith.index_cast %11 : i32 to index
      %c1 = arith.constant 1 : index
      %c0_12 = arith.constant 0 : index
      %13 = vector.load %arg1[%c0_11, %12, %c1, %c0_12] : memref<1x10x10x128xbf16, #tpu.memory_space<vmem>>, vector<1x1x8x128xbf16>
      %14 = vector.shape_cast %13 : vector<1x1x8x128xbf16> to vector<8x128xbf16>
      %c1_13 = arith.constant 1 : index
      %c0_14 = arith.constant 0 : index
      %c0_15 = arith.constant 0 : index
      %15 = vector.load %arg2[%c1_13, %c0_14, %c0_15] : memref<9x128x128xbf16, #tpu.memory_space<vmem>>, vector<1x128x128xbf16>
      %16 = vector.shape_cast %15 : vector<1x128x128xbf16> to vector<128x128xbf16>
      %cst_16 = arith.constant dense<0.000000e+00> : vector<8x128xf32>
      %17 = tpu.matmul %14, %16, %cst_16 {dimension_numbers = #tpu.dot_dimension_numbers<[1], [0], [0], [1], [0, 0, 1, 1], [], []>} : vector<8x128xbf16>, vector<128x128xbf16>, vector<8x128xf32> -> vector<8x128xf32>
      %18 = arith.addf %10, %17 : vector<8x128xf32>
      %c0_i32_17 = arith.constant 0 : i32
      %19 = arith.addi %arg5, %c0_i32_17 : i32
      %c0_18 = arith.constant 0 : index
      %20 = arith.index_cast %19 : i32 to index
      %c2 = arith.constant 2 : index
      %c0_19 = arith.constant 0 : index
      %21 = vector.load %arg1[%c0_18, %20, %c2, %c0_19] : memref<1x10x10x128xbf16, #tpu.memory_space<vmem>>, vector<1x1x8x128xbf16>
      %22 = vector.shape_cast %21 : vector<1x1x8x128xbf16> to vector<8x128xbf16>
      %c2_20 = arith.constant 2 : index
      %c0_21 = arith.constant 0 : index
      %c0_22 = arith.constant 0 : index
      %23 = vector.load %arg2[%c2_20, %c0_21, %c0_22] : memref<9x128x128xbf16, #tpu.memory_space<vmem>>, vector<1x128x128xbf16>
      %24 = vector.shape_cast %23 : vector<1x128x128xbf16> to vector<128x128xbf16>
      %cst_23 = arith.constant dense<0.000000e+00> : vector<8x128xf32>
      %25 = tpu.matmul %22, %24, %cst_23 {dimension_numbers = #tpu.dot_dimension_numbers<[1], [0], [0], [1], [0, 0, 1, 1], [], []>} : vector<8x128xbf16>, vector<128x128xbf16>, vector<8x128xf32> -> vector<8x128xf32>
      %26 = arith.addf %18, %25 : vector<8x128xf32>
      %c1_i32_24 = arith.constant 1 : i32
      %27 = arith.addi %arg5, %c1_i32_24 : i32
      %c0_25 = arith.constant 0 : index
      %28 = arith.index_cast %27 : i32 to index
      %c0_26 = arith.constant 0 : index
      %c0_27 = arith.constant 0 : index
      %29 = vector.load %arg1[%c0_25, %28, %c0_26, %c0_27] : memref<1x10x10x128xbf16, #tpu.memory_space<vmem>>, vector<1x1x8x128xbf16>
      %30 = vector.shape_cast %29 : vector<1x1x8x128xbf16> to vector<8x128xbf16>
      %c3 = arith.constant 3 : index
      %c0_28 = arith.constant 0 : index
      %c0_29 = arith.constant 0 : index
      %31 = vector.load %arg2[%c3, %c0_28, %c0_29] : memref<9x128x128xbf16, #tpu.memory_space<vmem>>, vector<1x128x128xbf16>
      %32 = vector.shape_cast %31 : vector<1x128x128xbf16> to vector<128x128xbf16>
      %cst_30 = arith.constant dense<0.000000e+00> : vector<8x128xf32>
      %33 = tpu.matmul %30, %32, %cst_30 {dimension_numbers = #tpu.dot_dimension_numbers<[1], [0], [0], [1], [0, 0, 1, 1], [], []>} : vector<8x128xbf16>, vector<128x128xbf16>, vector<8x128xf32> -> vector<8x128xf32>
      %34 = arith.addf %26, %33 : vector<8x128xf32>
      %c1_i32_31 = arith.constant 1 : i32
      %35 = arith.addi %arg5, %c1_i32_31 : i32
      %c0_32 = arith.constant 0 : index
      %36 = arith.index_cast %35 : i32 to index
      %c1_33 = arith.constant 1 : index
      %c0_34 = arith.constant 0 : index
      %37 = vector.load %arg1[%c0_32, %36, %c1_33, %c0_34] : memref<1x10x10x128xbf16, #tpu.memory_space<vmem>>, vector<1x1x8x128xbf16>
      %38 = vector.shape_cast %37 : vector<1x1x8x128xbf16> to vector<8x128xbf16>
      %c4 = arith.constant 4 : index
      %c0_35 = arith.constant 0 : index
      %c0_36 = arith.constant 0 : index
      %39 = vector.load %arg2[%c4, %c0_35, %c0_36] : memref<9x128x128xbf16, #tpu.memory_space<vmem>>, vector<1x128x128xbf16>
      %40 = vector.shape_cast %39 : vector<1x128x128xbf16> to vector<128x128xbf16>
      %cst_37 = arith.constant dense<0.000000e+00> : vector<8x128xf32>
      %41 = tpu.matmul %38, %40, %cst_37 {dimension_numbers = #tpu.dot_dimension_numbers<[1], [0], [0], [1], [0, 0, 1, 1], [], []>} : vector<8x128xbf16>, vector<128x128xbf16>, vector<8x128xf32> -> vector<8x128xf32>
      %42 = arith.addf %34, %41 : vector<8x128xf32>
      %c1_i32_38 = arith.constant 1 : i32
      %43 = arith.addi %arg5, %c1_i32_38 : i32
      %c0_39 = arith.constant 0 : index
      %44 = arith.index_cast %43 : i32 to index
      %c2_40 = arith.constant 2 : index
      %c0_41 = arith.constant 0 : index
      %45 = vector.load %arg1[%c0_39, %44, %c2_40, %c0_41] : memref<1x10x10x128xbf16, #tpu.memory_space<vmem>>, vector<1x1x8x128xbf16>
      %46 = vector.shape_cast %45 : vector<1x1x8x128xbf16> to vector<8x128xbf16>
      %c5 = arith.constant 5 : index
      %c0_42 = arith.constant 0 : index
      %c0_43 = arith.constant 0 : index
      %47 = vector.load %arg2[%c5, %c0_42, %c0_43] : memref<9x128x128xbf16, #tpu.memory_space<vmem>>, vector<1x128x128xbf16>
      %48 = vector.shape_cast %47 : vector<1x128x128xbf16> to vector<128x128xbf16>
      %cst_44 = arith.constant dense<0.000000e+00> : vector<8x128xf32>
      %49 = tpu.matmul %46, %48, %cst_44 {dimension_numbers = #tpu.dot_dimension_numbers<[1], [0], [0], [1], [0, 0, 1, 1], [], []>} : vector<8x128xbf16>, vector<128x128xbf16>, vector<8x128xf32> -> vector<8x128xf32>
      %50 = arith.addf %42, %49 : vector<8x128xf32>
      %c2_i32 = arith.constant 2 : i32
      %51 = arith.addi %arg5, %c2_i32 : i32
      %c0_45 = arith.constant 0 : index
      %52 = arith.index_cast %51 : i32 to index
      %c0_46 = arith.constant 0 : index
      %c0_47 = arith.constant 0 : index
      %53 = vector.load %arg1[%c0_45, %52, %c0_46, %c0_47] : memref<1x10x10x128xbf16, #tpu.memory_space<vmem>>, vector<1x1x8x128xbf16>
      %54 = vector.shape_cast %53 : vector<1x1x8x128xbf16> to vector<8x128xbf16>
      %c6 = arith.constant 6 : index
      %c0_48 = arith.constant 0 : index
      %c0_49 = arith.constant 0 : index
      %55 = vector.load %arg2[%c6, %c0_48, %c0_49] : memref<9x128x128xbf16, #tpu.memory_space<vmem>>, vector<1x128x128xbf16>
      %56 = vector.shape_cast %55 : vector<1x128x128xbf16> to vector<128x128xbf16>
      %cst_50 = arith.constant dense<0.000000e+00> : vector<8x128xf32>
      %57 = tpu.matmul %54, %56, %cst_50 {dimension_numbers = #tpu.dot_dimension_numbers<[1], [0], [0], [1], [0, 0, 1, 1], [], []>} : vector<8x128xbf16>, vector<128x128xbf16>, vector<8x128xf32> -> vector<8x128xf32>
      %58 = arith.addf %50, %57 : vector<8x128xf32>
      %c2_i32_51 = arith.constant 2 : i32
      %59 = arith.addi %arg5, %c2_i32_51 : i32
      %c0_52 = arith.constant 0 : index
      %60 = arith.index_cast %59 : i32 to index
      %c1_53 = arith.constant 1 : index
      %c0_54 = arith.constant 0 : index
      %61 = vector.load %arg1[%c0_52, %60, %c1_53, %c0_54] : memref<1x10x10x128xbf16, #tpu.memory_space<vmem>>, vector<1x1x8x128xbf16>
      %62 = vector.shape_cast %61 : vector<1x1x8x128xbf16> to vector<8x128xbf16>
      %c7 = arith.constant 7 : index
      %c0_55 = arith.constant 0 : index
      %c0_56 = arith.constant 0 : index
      %63 = vector.load %arg2[%c7, %c0_55, %c0_56] : memref<9x128x128xbf16, #tpu.memory_space<vmem>>, vector<1x128x128xbf16>
      %64 = vector.shape_cast %63 : vector<1x128x128xbf16> to vector<128x128xbf16>
      %cst_57 = arith.constant dense<0.000000e+00> : vector<8x128xf32>
      %65 = tpu.matmul %62, %64, %cst_57 {dimension_numbers = #tpu.dot_dimension_numbers<[1], [0], [0], [1], [0, 0, 1, 1], [], []>} : vector<8x128xbf16>, vector<128x128xbf16>, vector<8x128xf32> -> vector<8x128xf32>
      %66 = arith.addf %58, %65 : vector<8x128xf32>
      %c2_i32_58 = arith.constant 2 : i32
      %67 = arith.addi %arg5, %c2_i32_58 : i32
      %c0_59 = arith.constant 0 : index
      %68 = arith.index_cast %67 : i32 to index
      %c2_60 = arith.constant 2 : index
      %c0_61 = arith.constant 0 : index
      %69 = vector.load %arg1[%c0_59, %68, %c2_60, %c0_61] : memref<1x10x10x128xbf16, #tpu.memory_space<vmem>>, vector<1x1x8x128xbf16>
      %70 = vector.shape_cast %69 : vector<1x1x8x128xbf16> to vector<8x128xbf16>
      %c8 = arith.constant 8 : index
      %c0_62 = arith.constant 0 : index
      %c0_63 = arith.constant 0 : index
      %71 = vector.load %arg2[%c8, %c0_62, %c0_63] : memref<9x128x128xbf16, #tpu.memory_space<vmem>>, vector<1x128x128xbf16>
      %72 = vector.shape_cast %71 : vector<1x128x128xbf16> to vector<128x128xbf16>
      %cst_64 = arith.constant dense<0.000000e+00> : vector<8x128xf32>
      %73 = tpu.matmul %70, %72, %cst_64 {dimension_numbers = #tpu.dot_dimension_numbers<[1], [0], [0], [1], [0, 0, 1, 1], [], []>} : vector<8x128xbf16>, vector<128x128xbf16>, vector<8x128xf32> -> vector<8x128xf32>
      %74 = arith.addf %66, %73 : vector<8x128xf32>
      %75 = vector.broadcast %0 : vector<1x128xf32> to vector<8x128xf32>
      %76 = arith.addf %74, %75 : vector<8x128xf32>
      %cst_65 = arith.constant 0.000000e+00 : f32
      %77 = vector.broadcast %cst_65 : f32 to vector<8x128xf32>
      %78 = arith.maximumf %76, %77 : vector<8x128xf32>
      %79 = arith.truncf %78 : vector<8x128xf32> to vector<8x128xbf16>
      %c0_66 = arith.constant 0 : index
      %80 = arith.index_cast %arg5 : i32 to index
      %c0_67 = arith.constant 0 : index
      %c0_68 = arith.constant 0 : index
      %81 = vector.load %arg4[%c0_66, %80, %c0_67, %c0_68] : memref<1x8x8x128xbf16, #tpu.memory_space<vmem>>, vector<1x1x8x128xbf16>
      %82 = vector.shape_cast %81 : vector<1x1x8x128xbf16> to vector<8x128xbf16>
      %83 = vector.shape_cast %79 : vector<8x128xbf16> to vector<1x1x8x128xbf16>
      tpu.vector_store %arg4[%c0_66, %80, %c0_67, %c0_68], %83 {strides = array<i32>} : memref<1x8x8x128xbf16, #tpu.memory_space<vmem>>, vector<1x1x8x128xbf16>,
    }
    %c8_i32_1 = arith.constant 8 : i32
    return
  }
  func.func @transform_0(%arg0: i32) -> (i32, i32, i32, i32) {
    %c0_i32 = arith.constant 0 : i32
    %c0_i32_0 = arith.constant 0 : i32
    %c0_i32_1 = arith.constant 0 : i32
    %c0_i32_2 = arith.constant 0 : i32
    return %arg0, %c0_i32, %c0_i32_0, %c0_i32_1 : i32, i32, i32, i32
  }
  func.func @transform_1(%arg0: i32) -> (i32, i32, i32) {
    %c0_i32 = arith.constant 0 : i32
    %c0_i32_0 = arith.constant 0 : i32
    %c0_i32_1 = arith.constant 0 : i32
    %c0_i32_2 = arith.constant 0 : i32
    return %c0_i32, %c0_i32_0, %c0_i32_1 : i32, i32, i32
  }
  func.func @transform_2(%arg0: i32) -> (i32, i32) {
    %c0_i32 = arith.constant 0 : i32
    %c0_i32_0 = arith.constant 0 : i32
    %c0_i32_1 = arith.constant 0 : i32
    return %c0_i32, %c0_i32_0 : i32, i32
  }
  func.func @transform_3(%arg0: i32) -> (i32, i32, i32, i32) {
    %c0_i32 = arith.constant 0 : i32
    %c0_i32_0 = arith.constant 0 : i32
    %c0_i32_1 = arith.constant 0 : i32
    %c0_i32_2 = arith.constant 0 : i32
    return %arg0, %c0_i32, %c0_i32_0, %c0_i32_1 : i32, i32, i32, i32
  }
}

module attributes {stable_mosaic.version = 11 : i64} {
  func.func @_conv3x3_kernel(%arg0: i32, %arg1: memref<1x6x6x128xbf16, #tpu.memory_space<vmem>>, %arg2: memref<9x128x128xbf16, #tpu.memory_space<vmem>>, %arg3: memref<1x128xf32, #tpu.memory_space<vmem>>, %arg4: memref<1x4x4x128xbf16, #tpu.memory_space<vmem>>) attributes {dimension_semantics = [#tpu.dimension_semantics<parallel>], iteration_bounds = array<i64: 2>, scalar_prefetch = 0 : i64, scratch_operands = 0 : i64, tpu.core_type = #tpu.core_type<tc>, window_params = [{transform_indices = @transform_0, window_bounds = array<i64: 1, 6, 6, 128>}, {pipeline_mode = #tpu.pipeline_mode<synchronous>, transform_indices = @transform_1, window_bounds = array<i64: 9, 128, 128>}, {pipeline_mode = #tpu.pipeline_mode<synchronous>, transform_indices = @transform_2, window_bounds = array<i64: 1, 128>}, {transform_indices = @transform_3, window_bounds = array<i64: 1, 4, 4, 128>}]} {
    %c0 = arith.constant 0 : index
    %c0_0 = arith.constant 0 : index
    %0 = vector.load %arg3[%c0, %c0_0] : memref<1x128xf32, #tpu.memory_space<vmem>>, vector<1x128xf32>
    %c0_i32 = arith.constant 0 : i32
    %c4_i32 = arith.constant 4 : i32
    %1 = arith.addi %c0_i32, %c4_i32 : i32
    %c1_i32 = arith.constant 1 : i32
    scf.for %arg5 = %c0_i32 to %1 step %c1_i32  : i32 {
      %cst = arith.constant 0.000000e+00 : f32
      %2 = vector.broadcast %cst : f32 to vector<4x128xf32>
      %c0_i32_2 = arith.constant 0 : i32
      %3 = arith.addi %arg5, %c0_i32_2 : i32
      %c0_3 = arith.constant 0 : index
      %4 = arith.index_cast %3 : i32 to index
      %c0_4 = arith.constant 0 : index
      %c0_5 = arith.constant 0 : index
      %5 = vector.load %arg1[%c0_3, %4, %c0_4, %c0_5] : memref<1x6x6x128xbf16, #tpu.memory_space<vmem>>, vector<1x1x4x128xbf16>
      %6 = vector.shape_cast %5 : vector<1x1x4x128xbf16> to vector<4x128xbf16>
      %c0_6 = arith.constant 0 : index
      %c0_7 = arith.constant 0 : index
      %c0_8 = arith.constant 0 : index
      %7 = vector.load %arg2[%c0_6, %c0_7, %c0_8] : memref<9x128x128xbf16, #tpu.memory_space<vmem>>, vector<1x128x128xbf16>
      %8 = vector.shape_cast %7 : vector<1x128x128xbf16> to vector<128x128xbf16>
      %cst_9 = arith.constant dense<0.000000e+00> : vector<4x128xf32>
      %9 = tpu.matmul %6, %8, %cst_9 {dimension_numbers = #tpu.dot_dimension_numbers<[1], [0], [0], [1], [0, 0, 1, 1], [], []>} : vector<4x128xbf16>, vector<128x128xbf16>, vector<4x128xf32> -> vector<4x128xf32>
      %10 = arith.addf %2, %9 : vector<4x128xf32>
      %c0_i32_10 = arith.constant 0 : i32
      %11 = arith.addi %arg5, %c0_i32_10 : i32
      %c0_11 = arith.constant 0 : index
      %12 = arith.index_cast %11 : i32 to index
      %c1 = arith.constant 1 : index
      %c0_12 = arith.constant 0 : index
      %13 = vector.load %arg1[%c0_11, %12, %c1, %c0_12] : memref<1x6x6x128xbf16, #tpu.memory_space<vmem>>, vector<1x1x4x128xbf16>
      %14 = vector.shape_cast %13 : vector<1x1x4x128xbf16> to vector<4x128xbf16>
      %c1_13 = arith.constant 1 : index
      %c0_14 = arith.constant 0 : index
      %c0_15 = arith.constant 0 : index
      %15 = vector.load %arg2[%c1_13, %c0_14, %c0_15] : memref<9x128x128xbf16, #tpu.memory_space<vmem>>, vector<1x128x128xbf16>
      %16 = vector.shape_cast %15 : vector<1x128x128xbf16> to vector<128x128xbf16>
      %cst_16 = arith.constant dense<0.000000e+00> : vector<4x128xf32>
      %17 = tpu.matmul %14, %16, %cst_16 {dimension_numbers = #tpu.dot_dimension_numbers<[1], [0], [0], [1], [0, 0, 1, 1], [], []>} : vector<4x128xbf16>, vector<128x128xbf16>, vector<4x128xf32> -> vector<4x128xf32>
      %18 = arith.addf %10, %17 : vector<4x128xf32>
      %c0_i32_17 = arith.constant 0 : i32
      %19 = arith.addi %arg5, %c0_i32_17 : i32
      %c0_18 = arith.constant 0 : index
      %20 = arith.index_cast %19 : i32 to index
      %c2 = arith.constant 2 : index
      %c0_19 = arith.constant 0 : index
      %21 = vector.load %arg1[%c0_18, %20, %c2, %c0_19] : memref<1x6x6x128xbf16, #tpu.memory_space<vmem>>, vector<1x1x4x128xbf16>
      %22 = vector.shape_cast %21 : vector<1x1x4x128xbf16> to vector<4x128xbf16>
      %c2_20 = arith.constant 2 : index
      %c0_21 = arith.constant 0 : index
      %c0_22 = arith.constant 0 : index
      %23 = vector.load %arg2[%c2_20, %c0_21, %c0_22] : memref<9x128x128xbf16, #tpu.memory_space<vmem>>, vector<1x128x128xbf16>
      %24 = vector.shape_cast %23 : vector<1x128x128xbf16> to vector<128x128xbf16>
      %cst_23 = arith.constant dense<0.000000e+00> : vector<4x128xf32>
      %25 = tpu.matmul %22, %24, %cst_23 {dimension_numbers = #tpu.dot_dimension_numbers<[1], [0], [0], [1], [0, 0, 1, 1], [], []>} : vector<4x128xbf16>, vector<128x128xbf16>, vector<4x128xf32> -> vector<4x128xf32>
      %26 = arith.addf %18, %25 : vector<4x128xf32>
      %c1_i32_24 = arith.constant 1 : i32
      %27 = arith.addi %arg5, %c1_i32_24 : i32
      %c0_25 = arith.constant 0 : index
      %28 = arith.index_cast %27 : i32 to index
      %c0_26 = arith.constant 0 : index
      %c0_27 = arith.constant 0 : index
      %29 = vector.load %arg1[%c0_25, %28, %c0_26, %c0_27] : memref<1x6x6x128xbf16, #tpu.memory_space<vmem>>, vector<1x1x4x128xbf16>
      %30 = vector.shape_cast %29 : vector<1x1x4x128xbf16> to vector<4x128xbf16>
      %c3 = arith.constant 3 : index
      %c0_28 = arith.constant 0 : index
      %c0_29 = arith.constant 0 : index
      %31 = vector.load %arg2[%c3, %c0_28, %c0_29] : memref<9x128x128xbf16, #tpu.memory_space<vmem>>, vector<1x128x128xbf16>
      %32 = vector.shape_cast %31 : vector<1x128x128xbf16> to vector<128x128xbf16>
      %cst_30 = arith.constant dense<0.000000e+00> : vector<4x128xf32>
      %33 = tpu.matmul %30, %32, %cst_30 {dimension_numbers = #tpu.dot_dimension_numbers<[1], [0], [0], [1], [0, 0, 1, 1], [], []>} : vector<4x128xbf16>, vector<128x128xbf16>, vector<4x128xf32> -> vector<4x128xf32>
      %34 = arith.addf %26, %33 : vector<4x128xf32>
      %c1_i32_31 = arith.constant 1 : i32
      %35 = arith.addi %arg5, %c1_i32_31 : i32
      %c0_32 = arith.constant 0 : index
      %36 = arith.index_cast %35 : i32 to index
      %c1_33 = arith.constant 1 : index
      %c0_34 = arith.constant 0 : index
      %37 = vector.load %arg1[%c0_32, %36, %c1_33, %c0_34] : memref<1x6x6x128xbf16, #tpu.memory_space<vmem>>, vector<1x1x4x128xbf16>
      %38 = vector.shape_cast %37 : vector<1x1x4x128xbf16> to vector<4x128xbf16>
      %c4 = arith.constant 4 : index
      %c0_35 = arith.constant 0 : index
      %c0_36 = arith.constant 0 : index
      %39 = vector.load %arg2[%c4, %c0_35, %c0_36] : memref<9x128x128xbf16, #tpu.memory_space<vmem>>, vector<1x128x128xbf16>
      %40 = vector.shape_cast %39 : vector<1x128x128xbf16> to vector<128x128xbf16>
      %cst_37 = arith.constant dense<0.000000e+00> : vector<4x128xf32>
      %41 = tpu.matmul %38, %40, %cst_37 {dimension_numbers = #tpu.dot_dimension_numbers<[1], [0], [0], [1], [0, 0, 1, 1], [], []>} : vector<4x128xbf16>, vector<128x128xbf16>, vector<4x128xf32> -> vector<4x128xf32>
      %42 = arith.addf %34, %41 : vector<4x128xf32>
      %c1_i32_38 = arith.constant 1 : i32
      %43 = arith.addi %arg5, %c1_i32_38 : i32
      %c0_39 = arith.constant 0 : index
      %44 = arith.index_cast %43 : i32 to index
      %c2_40 = arith.constant 2 : index
      %c0_41 = arith.constant 0 : index
      %45 = vector.load %arg1[%c0_39, %44, %c2_40, %c0_41] : memref<1x6x6x128xbf16, #tpu.memory_space<vmem>>, vector<1x1x4x128xbf16>
      %46 = vector.shape_cast %45 : vector<1x1x4x128xbf16> to vector<4x128xbf16>
      %c5 = arith.constant 5 : index
      %c0_42 = arith.constant 0 : index
      %c0_43 = arith.constant 0 : index
      %47 = vector.load %arg2[%c5, %c0_42, %c0_43] : memref<9x128x128xbf16, #tpu.memory_space<vmem>>, vector<1x128x128xbf16>
      %48 = vector.shape_cast %47 : vector<1x128x128xbf16> to vector<128x128xbf16>
      %cst_44 = arith.constant dense<0.000000e+00> : vector<4x128xf32>
      %49 = tpu.matmul %46, %48, %cst_44 {dimension_numbers = #tpu.dot_dimension_numbers<[1], [0], [0], [1], [0, 0, 1, 1], [], []>} : vector<4x128xbf16>, vector<128x128xbf16>, vector<4x128xf32> -> vector<4x128xf32>
      %50 = arith.addf %42, %49 : vector<4x128xf32>
      %c2_i32 = arith.constant 2 : i32
      %51 = arith.addi %arg5, %c2_i32 : i32
      %c0_45 = arith.constant 0 : index
      %52 = arith.index_cast %51 : i32 to index
      %c0_46 = arith.constant 0 : index
      %c0_47 = arith.constant 0 : index
      %53 = vector.load %arg1[%c0_45, %52, %c0_46, %c0_47] : memref<1x6x6x128xbf16, #tpu.memory_space<vmem>>, vector<1x1x4x128xbf16>
      %54 = vector.shape_cast %53 : vector<1x1x4x128xbf16> to vector<4x128xbf16>
      %c6 = arith.constant 6 : index
      %c0_48 = arith.constant 0 : index
      %c0_49 = arith.constant 0 : index
      %55 = vector.load %arg2[%c6, %c0_48, %c0_49] : memref<9x128x128xbf16, #tpu.memory_space<vmem>>, vector<1x128x128xbf16>
      %56 = vector.shape_cast %55 : vector<1x128x128xbf16> to vector<128x128xbf16>
      %cst_50 = arith.constant dense<0.000000e+00> : vector<4x128xf32>
      %57 = tpu.matmul %54, %56, %cst_50 {dimension_numbers = #tpu.dot_dimension_numbers<[1], [0], [0], [1], [0, 0, 1, 1], [], []>} : vector<4x128xbf16>, vector<128x128xbf16>, vector<4x128xf32> -> vector<4x128xf32>
      %58 = arith.addf %50, %57 : vector<4x128xf32>
      %c2_i32_51 = arith.constant 2 : i32
      %59 = arith.addi %arg5, %c2_i32_51 : i32
      %c0_52 = arith.constant 0 : index
      %60 = arith.index_cast %59 : i32 to index
      %c1_53 = arith.constant 1 : index
      %c0_54 = arith.constant 0 : index
      %61 = vector.load %arg1[%c0_52, %60, %c1_53, %c0_54] : memref<1x6x6x128xbf16, #tpu.memory_space<vmem>>, vector<1x1x4x128xbf16>
      %62 = vector.shape_cast %61 : vector<1x1x4x128xbf16> to vector<4x128xbf16>
      %c7 = arith.constant 7 : index
      %c0_55 = arith.constant 0 : index
      %c0_56 = arith.constant 0 : index
      %63 = vector.load %arg2[%c7, %c0_55, %c0_56] : memref<9x128x128xbf16, #tpu.memory_space<vmem>>, vector<1x128x128xbf16>
      %64 = vector.shape_cast %63 : vector<1x128x128xbf16> to vector<128x128xbf16>
      %cst_57 = arith.constant dense<0.000000e+00> : vector<4x128xf32>
      %65 = tpu.matmul %62, %64, %cst_57 {dimension_numbers = #tpu.dot_dimension_numbers<[1], [0], [0], [1], [0, 0, 1, 1], [], []>} : vector<4x128xbf16>, vector<128x128xbf16>, vector<4x128xf32> -> vector<4x128xf32>
      %66 = arith.addf %58, %65 : vector<4x128xf32>
      %c2_i32_58 = arith.constant 2 : i32
      %67 = arith.addi %arg5, %c2_i32_58 : i32
      %c0_59 = arith.constant 0 : index
      %68 = arith.index_cast %67 : i32 to index
      %c2_60 = arith.constant 2 : index
      %c0_61 = arith.constant 0 : index
      %69 = vector.load %arg1[%c0_59, %68, %c2_60, %c0_61] : memref<1x6x6x128xbf16, #tpu.memory_space<vmem>>, vector<1x1x4x128xbf16>
      %70 = vector.shape_cast %69 : vector<1x1x4x128xbf16> to vector<4x128xbf16>
      %c8 = arith.constant 8 : index
      %c0_62 = arith.constant 0 : index
      %c0_63 = arith.constant 0 : index
      %71 = vector.load %arg2[%c8, %c0_62, %c0_63] : memref<9x128x128xbf16, #tpu.memory_space<vmem>>, vector<1x128x128xbf16>
      %72 = vector.shape_cast %71 : vector<1x128x128xbf16> to vector<128x128xbf16>
      %cst_64 = arith.constant dense<0.000000e+00> : vector<4x128xf32>
      %73 = tpu.matmul %70, %72, %cst_64 {dimension_numbers = #tpu.dot_dimension_numbers<[1], [0], [0], [1], [0, 0, 1, 1], [], []>} : vector<4x128xbf16>, vector<128x128xbf16>, vector<4x128xf32> -> vector<4x128xf32>
      %74 = arith.addf %66, %73 : vector<4x128xf32>
      %75 = vector.broadcast %0 : vector<1x128xf32> to vector<4x128xf32>
      %76 = arith.addf %74, %75 : vector<4x128xf32>
      %cst_65 = arith.constant 0.000000e+00 : f32
      %77 = vector.broadcast %cst_65 : f32 to vector<4x128xf32>
      %78 = arith.maximumf %76, %77 : vector<4x128xf32>
      %79 = arith.truncf %78 : vector<4x128xf32> to vector<4x128xbf16>
      %c0_66 = arith.constant 0 : index
      %80 = arith.index_cast %arg5 : i32 to index
      %c0_67 = arith.constant 0 : index
      %c0_68 = arith.constant 0 : index
      %81 = vector.load %arg4[%c0_66, %80, %c0_67, %c0_68] : memref<1x4x4x128xbf16, #tpu.memory_space<vmem>>, vector<1x1x4x128xbf16>
      %82 = vector.shape_cast %81 : vector<1x1x4x128xbf16> to vector<4x128xbf16>
      %83 = vector.shape_cast %79 : vector<4x128xbf16> to vector<1x1x4x128xbf16>
      tpu.vector_store %arg4[%c0_66, %80, %c0_67, %c0_68], %83 {strides = array<i32>} : memref<1x4x4x128xbf16, #tpu.memory_space<vmem>>, vector<1x1x4x128xbf16>,
    }
    %c4_i32_1 = arith.constant 4 : i32
    return
  }
  func.func @transform_0(%arg0: i32) -> (i32, i32, i32, i32) {
    %c0_i32 = arith.constant 0 : i32
    %c0_i32_0 = arith.constant 0 : i32
    %c0_i32_1 = arith.constant 0 : i32
    %c0_i32_2 = arith.constant 0 : i32
    return %arg0, %c0_i32, %c0_i32_0, %c0_i32_1 : i32, i32, i32, i32
  }
  func.func @transform_1(%arg0: i32) -> (i32, i32, i32) {
    %c0_i32 = arith.constant 0 : i32
    %c0_i32_0 = arith.constant 0 : i32
    %c0_i32_1 = arith.constant 0 : i32
    %c0_i32_2 = arith.constant 0 : i32
    return %c0_i32, %c0_i32_0, %c0_i32_1 : i32, i32, i32
  }
  func.func @transform_2(%arg0: i32) -> (i32, i32) {
    %c0_i32 = arith.constant 0 : i32
    %c0_i32_0 = arith.constant 0 : i32
    %c0_i32_1 = arith.constant 0 : i32
    return %c0_i32, %c0_i32_0 : i32, i32
  }
  func.func @transform_3(%arg0: i32) -> (i32, i32, i32, i32) {
    %c0_i32 = arith.constant 0 : i32
    %c0_i32_0 = arith.constant 0 : i32
    %c0_i32_1 = arith.constant 0 : i32
    %c0_i32_2 = arith.constant 0 : i32
    return %arg0, %c0_i32, %c0_i32_0, %c0_i32_1 : i32, i32, i32, i32
  }
}

module attributes {stable_mosaic.version = 11 : i64} {
  func.func @_maxpool_kernel(%arg0: i32, %arg1: memref<2x2x2x256xbf16, #tpu.memory_space<vmem>>, %arg2: memref<2x2x128xbf16, #tpu.memory_space<vmem>>) attributes {dimension_semantics = [#tpu.dimension_semantics<parallel>], iteration_bounds = array<i64: 2>, scalar_prefetch = 0 : i64, scratch_operands = 0 : i64, tpu.core_type = #tpu.core_type<tc>, window_params = [{transform_indices = @transform_0, window_bounds = array<i64: 2, 2, 2, 256>}, {transform_indices = @transform_1, window_bounds = array<i64: 2, 2, 128>}]} {
    %c0 = arith.constant 0 : index
    %c0_0 = arith.constant 0 : index
    %c0_1 = arith.constant 0 : index
    %c0_2 = arith.constant 0 : index
    %0 = vector.load %arg1[%c0, %c0_0, %c0_1, %c0_2] : memref<2x2x2x256xbf16, #tpu.memory_space<vmem>>, vector<2x1x2x256xbf16>
    %1 = vector.shape_cast %0 : vector<2x1x2x256xbf16> to vector<2x2x256xbf16>
    %c0_3 = arith.constant 0 : index
    %c1 = arith.constant 1 : index
    %c0_4 = arith.constant 0 : index
    %c0_5 = arith.constant 0 : index
    %2 = vector.load %arg1[%c0_3, %c1, %c0_4, %c0_5] : memref<2x2x2x256xbf16, #tpu.memory_space<vmem>>, vector<2x1x2x256xbf16>
    %3 = vector.shape_cast %2 : vector<2x1x2x256xbf16> to vector<2x2x256xbf16>
    %4 = arith.maximumf %1, %3 : vector<2x2x256xbf16>
    %5 = vector.extract_strided_slice %4 {offsets = [0, 0, 0], sizes = [2, 2, 128], strides = [1, 1, 1]} : vector<2x2x256xbf16> to vector<2x2x128xbf16>
    %6 = vector.extract_strided_slice %4 {offsets = [0, 0, 128], sizes = [2, 2, 128], strides = [1, 1, 1]} : vector<2x2x256xbf16> to vector<2x2x128xbf16>
    %7 = arith.maximumf %5, %6 : vector<2x2x128xbf16>
    %c0_6 = arith.constant 0 : index
    %c0_7 = arith.constant 0 : index
    %c0_8 = arith.constant 0 : index
    %8 = vector.load %arg2[%c0_6, %c0_7, %c0_8] : memref<2x2x128xbf16, #tpu.memory_space<vmem>>, vector<2x2x128xbf16>
    tpu.vector_store %arg2[%c0_6, %c0_7, %c0_8], %7 {strides = array<i32>} : memref<2x2x128xbf16, #tpu.memory_space<vmem>>, vector<2x2x128xbf16>,
    return
  }
  func.func @transform_0(%arg0: i32) -> (i32, i32, i32, i32) {
    %c0_i32 = arith.constant 0 : i32
    %c0_i32_0 = arith.constant 0 : i32
    %c0_i32_1 = arith.constant 0 : i32
    %c0_i32_2 = arith.constant 0 : i32
    return %arg0, %c0_i32, %c0_i32_0, %c0_i32_1 : i32, i32, i32, i32
  }
  func.func @transform_1(%arg0: i32) -> (i32, i32, i32) {
    %c0_i32 = arith.constant 0 : i32
    %c0_i32_0 = arith.constant 0 : i32
    %c0_i32_1 = arith.constant 0 : i32
    return %arg0, %c0_i32, %c0_i32_0 : i32, i32, i32
  }
}

module attributes {stable_mosaic.version = 11 : i64} {
  func.func @_conv3x3_kernel(%arg0: i32, %arg1: memref<1x4x4x128xbf16, #tpu.memory_space<vmem>>, %arg2: memref<9x128x128xbf16, #tpu.memory_space<vmem>>, %arg3: memref<1x128xf32, #tpu.memory_space<vmem>>, %arg4: memref<1x2x2x128xbf16, #tpu.memory_space<vmem>>) attributes {dimension_semantics = [#tpu.dimension_semantics<parallel>], iteration_bounds = array<i64: 2>, scalar_prefetch = 0 : i64, scratch_operands = 0 : i64, tpu.core_type = #tpu.core_type<tc>, window_params = [{transform_indices = @transform_0, window_bounds = array<i64: 1, 4, 4, 128>}, {pipeline_mode = #tpu.pipeline_mode<synchronous>, transform_indices = @transform_1, window_bounds = array<i64: 9, 128, 128>}, {pipeline_mode = #tpu.pipeline_mode<synchronous>, transform_indices = @transform_2, window_bounds = array<i64: 1, 128>}, {transform_indices = @transform_3, window_bounds = array<i64: 1, 2, 2, 128>}]} {
    %c0 = arith.constant 0 : index
    %c0_0 = arith.constant 0 : index
    %0 = vector.load %arg3[%c0, %c0_0] : memref<1x128xf32, #tpu.memory_space<vmem>>, vector<1x128xf32>
    %c0_i32 = arith.constant 0 : i32
    %c2_i32 = arith.constant 2 : i32
    %1 = arith.addi %c0_i32, %c2_i32 : i32
    %c1_i32 = arith.constant 1 : i32
    scf.for %arg5 = %c0_i32 to %1 step %c1_i32  : i32 {
      %cst = arith.constant 0.000000e+00 : f32
      %2 = vector.broadcast %cst : f32 to vector<2x128xf32>
      %c0_i32_2 = arith.constant 0 : i32
      %3 = arith.addi %arg5, %c0_i32_2 : i32
      %c0_3 = arith.constant 0 : index
      %4 = arith.index_cast %3 : i32 to index
      %c0_4 = arith.constant 0 : index
      %c0_5 = arith.constant 0 : index
      %5 = vector.load %arg1[%c0_3, %4, %c0_4, %c0_5] : memref<1x4x4x128xbf16, #tpu.memory_space<vmem>>, vector<1x1x2x128xbf16>
      %6 = vector.shape_cast %5 : vector<1x1x2x128xbf16> to vector<2x128xbf16>
      %c0_6 = arith.constant 0 : index
      %c0_7 = arith.constant 0 : index
      %c0_8 = arith.constant 0 : index
      %7 = vector.load %arg2[%c0_6, %c0_7, %c0_8] : memref<9x128x128xbf16, #tpu.memory_space<vmem>>, vector<1x128x128xbf16>
      %8 = vector.shape_cast %7 : vector<1x128x128xbf16> to vector<128x128xbf16>
      %cst_9 = arith.constant dense<0.000000e+00> : vector<2x128xf32>
      %9 = tpu.matmul %6, %8, %cst_9 {dimension_numbers = #tpu.dot_dimension_numbers<[1], [0], [0], [1], [0, 0, 1, 1], [], []>} : vector<2x128xbf16>, vector<128x128xbf16>, vector<2x128xf32> -> vector<2x128xf32>
      %10 = arith.addf %2, %9 : vector<2x128xf32>
      %c0_i32_10 = arith.constant 0 : i32
      %11 = arith.addi %arg5, %c0_i32_10 : i32
      %c0_11 = arith.constant 0 : index
      %12 = arith.index_cast %11 : i32 to index
      %c1 = arith.constant 1 : index
      %c0_12 = arith.constant 0 : index
      %13 = vector.load %arg1[%c0_11, %12, %c1, %c0_12] : memref<1x4x4x128xbf16, #tpu.memory_space<vmem>>, vector<1x1x2x128xbf16>
      %14 = vector.shape_cast %13 : vector<1x1x2x128xbf16> to vector<2x128xbf16>
      %c1_13 = arith.constant 1 : index
      %c0_14 = arith.constant 0 : index
      %c0_15 = arith.constant 0 : index
      %15 = vector.load %arg2[%c1_13, %c0_14, %c0_15] : memref<9x128x128xbf16, #tpu.memory_space<vmem>>, vector<1x128x128xbf16>
      %16 = vector.shape_cast %15 : vector<1x128x128xbf16> to vector<128x128xbf16>
      %cst_16 = arith.constant dense<0.000000e+00> : vector<2x128xf32>
      %17 = tpu.matmul %14, %16, %cst_16 {dimension_numbers = #tpu.dot_dimension_numbers<[1], [0], [0], [1], [0, 0, 1, 1], [], []>} : vector<2x128xbf16>, vector<128x128xbf16>, vector<2x128xf32> -> vector<2x128xf32>
      %18 = arith.addf %10, %17 : vector<2x128xf32>
      %c0_i32_17 = arith.constant 0 : i32
      %19 = arith.addi %arg5, %c0_i32_17 : i32
      %c0_18 = arith.constant 0 : index
      %20 = arith.index_cast %19 : i32 to index
      %c2 = arith.constant 2 : index
      %c0_19 = arith.constant 0 : index
      %21 = vector.load %arg1[%c0_18, %20, %c2, %c0_19] : memref<1x4x4x128xbf16, #tpu.memory_space<vmem>>, vector<1x1x2x128xbf16>
      %22 = vector.shape_cast %21 : vector<1x1x2x128xbf16> to vector<2x128xbf16>
      %c2_20 = arith.constant 2 : index
      %c0_21 = arith.constant 0 : index
      %c0_22 = arith.constant 0 : index
      %23 = vector.load %arg2[%c2_20, %c0_21, %c0_22] : memref<9x128x128xbf16, #tpu.memory_space<vmem>>, vector<1x128x128xbf16>
      %24 = vector.shape_cast %23 : vector<1x128x128xbf16> to vector<128x128xbf16>
      %cst_23 = arith.constant dense<0.000000e+00> : vector<2x128xf32>
      %25 = tpu.matmul %22, %24, %cst_23 {dimension_numbers = #tpu.dot_dimension_numbers<[1], [0], [0], [1], [0, 0, 1, 1], [], []>} : vector<2x128xbf16>, vector<128x128xbf16>, vector<2x128xf32> -> vector<2x128xf32>
      %26 = arith.addf %18, %25 : vector<2x128xf32>
      %c1_i32_24 = arith.constant 1 : i32
      %27 = arith.addi %arg5, %c1_i32_24 : i32
      %c0_25 = arith.constant 0 : index
      %28 = arith.index_cast %27 : i32 to index
      %c0_26 = arith.constant 0 : index
      %c0_27 = arith.constant 0 : index
      %29 = vector.load %arg1[%c0_25, %28, %c0_26, %c0_27] : memref<1x4x4x128xbf16, #tpu.memory_space<vmem>>, vector<1x1x2x128xbf16>
      %30 = vector.shape_cast %29 : vector<1x1x2x128xbf16> to vector<2x128xbf16>
      %c3 = arith.constant 3 : index
      %c0_28 = arith.constant 0 : index
      %c0_29 = arith.constant 0 : index
      %31 = vector.load %arg2[%c3, %c0_28, %c0_29] : memref<9x128x128xbf16, #tpu.memory_space<vmem>>, vector<1x128x128xbf16>
      %32 = vector.shape_cast %31 : vector<1x128x128xbf16> to vector<128x128xbf16>
      %cst_30 = arith.constant dense<0.000000e+00> : vector<2x128xf32>
      %33 = tpu.matmul %30, %32, %cst_30 {dimension_numbers = #tpu.dot_dimension_numbers<[1], [0], [0], [1], [0, 0, 1, 1], [], []>} : vector<2x128xbf16>, vector<128x128xbf16>, vector<2x128xf32> -> vector<2x128xf32>
      %34 = arith.addf %26, %33 : vector<2x128xf32>
      %c1_i32_31 = arith.constant 1 : i32
      %35 = arith.addi %arg5, %c1_i32_31 : i32
      %c0_32 = arith.constant 0 : index
      %36 = arith.index_cast %35 : i32 to index
      %c1_33 = arith.constant 1 : index
      %c0_34 = arith.constant 0 : index
      %37 = vector.load %arg1[%c0_32, %36, %c1_33, %c0_34] : memref<1x4x4x128xbf16, #tpu.memory_space<vmem>>, vector<1x1x2x128xbf16>
      %38 = vector.shape_cast %37 : vector<1x1x2x128xbf16> to vector<2x128xbf16>
      %c4 = arith.constant 4 : index
      %c0_35 = arith.constant 0 : index
      %c0_36 = arith.constant 0 : index
      %39 = vector.load %arg2[%c4, %c0_35, %c0_36] : memref<9x128x128xbf16, #tpu.memory_space<vmem>>, vector<1x128x128xbf16>
      %40 = vector.shape_cast %39 : vector<1x128x128xbf16> to vector<128x128xbf16>
      %cst_37 = arith.constant dense<0.000000e+00> : vector<2x128xf32>
      %41 = tpu.matmul %38, %40, %cst_37 {dimension_numbers = #tpu.dot_dimension_numbers<[1], [0], [0], [1], [0, 0, 1, 1], [], []>} : vector<2x128xbf16>, vector<128x128xbf16>, vector<2x128xf32> -> vector<2x128xf32>
      %42 = arith.addf %34, %41 : vector<2x128xf32>
      %c1_i32_38 = arith.constant 1 : i32
      %43 = arith.addi %arg5, %c1_i32_38 : i32
      %c0_39 = arith.constant 0 : index
      %44 = arith.index_cast %43 : i32 to index
      %c2_40 = arith.constant 2 : index
      %c0_41 = arith.constant 0 : index
      %45 = vector.load %arg1[%c0_39, %44, %c2_40, %c0_41] : memref<1x4x4x128xbf16, #tpu.memory_space<vmem>>, vector<1x1x2x128xbf16>
      %46 = vector.shape_cast %45 : vector<1x1x2x128xbf16> to vector<2x128xbf16>
      %c5 = arith.constant 5 : index
      %c0_42 = arith.constant 0 : index
      %c0_43 = arith.constant 0 : index
      %47 = vector.load %arg2[%c5, %c0_42, %c0_43] : memref<9x128x128xbf16, #tpu.memory_space<vmem>>, vector<1x128x128xbf16>
      %48 = vector.shape_cast %47 : vector<1x128x128xbf16> to vector<128x128xbf16>
      %cst_44 = arith.constant dense<0.000000e+00> : vector<2x128xf32>
      %49 = tpu.matmul %46, %48, %cst_44 {dimension_numbers = #tpu.dot_dimension_numbers<[1], [0], [0], [1], [0, 0, 1, 1], [], []>} : vector<2x128xbf16>, vector<128x128xbf16>, vector<2x128xf32> -> vector<2x128xf32>
      %50 = arith.addf %42, %49 : vector<2x128xf32>
      %c2_i32_45 = arith.constant 2 : i32
      %51 = arith.addi %arg5, %c2_i32_45 : i32
      %c0_46 = arith.constant 0 : index
      %52 = arith.index_cast %51 : i32 to index
      %c0_47 = arith.constant 0 : index
      %c0_48 = arith.constant 0 : index
      %53 = vector.load %arg1[%c0_46, %52, %c0_47, %c0_48] : memref<1x4x4x128xbf16, #tpu.memory_space<vmem>>, vector<1x1x2x128xbf16>
      %54 = vector.shape_cast %53 : vector<1x1x2x128xbf16> to vector<2x128xbf16>
      %c6 = arith.constant 6 : index
      %c0_49 = arith.constant 0 : index
      %c0_50 = arith.constant 0 : index
      %55 = vector.load %arg2[%c6, %c0_49, %c0_50] : memref<9x128x128xbf16, #tpu.memory_space<vmem>>, vector<1x128x128xbf16>
      %56 = vector.shape_cast %55 : vector<1x128x128xbf16> to vector<128x128xbf16>
      %cst_51 = arith.constant dense<0.000000e+00> : vector<2x128xf32>
      %57 = tpu.matmul %54, %56, %cst_51 {dimension_numbers = #tpu.dot_dimension_numbers<[1], [0], [0], [1], [0, 0, 1, 1], [], []>} : vector<2x128xbf16>, vector<128x128xbf16>, vector<2x128xf32> -> vector<2x128xf32>
      %58 = arith.addf %50, %57 : vector<2x128xf32>
      %c2_i32_52 = arith.constant 2 : i32
      %59 = arith.addi %arg5, %c2_i32_52 : i32
      %c0_53 = arith.constant 0 : index
      %60 = arith.index_cast %59 : i32 to index
      %c1_54 = arith.constant 1 : index
      %c0_55 = arith.constant 0 : index
      %61 = vector.load %arg1[%c0_53, %60, %c1_54, %c0_55] : memref<1x4x4x128xbf16, #tpu.memory_space<vmem>>, vector<1x1x2x128xbf16>
      %62 = vector.shape_cast %61 : vector<1x1x2x128xbf16> to vector<2x128xbf16>
      %c7 = arith.constant 7 : index
      %c0_56 = arith.constant 0 : index
      %c0_57 = arith.constant 0 : index
      %63 = vector.load %arg2[%c7, %c0_56, %c0_57] : memref<9x128x128xbf16, #tpu.memory_space<vmem>>, vector<1x128x128xbf16>
      %64 = vector.shape_cast %63 : vector<1x128x128xbf16> to vector<128x128xbf16>
      %cst_58 = arith.constant dense<0.000000e+00> : vector<2x128xf32>
      %65 = tpu.matmul %62, %64, %cst_58 {dimension_numbers = #tpu.dot_dimension_numbers<[1], [0], [0], [1], [0, 0, 1, 1], [], []>} : vector<2x128xbf16>, vector<128x128xbf16>, vector<2x128xf32> -> vector<2x128xf32>
      %66 = arith.addf %58, %65 : vector<2x128xf32>
      %c2_i32_59 = arith.constant 2 : i32
      %67 = arith.addi %arg5, %c2_i32_59 : i32
      %c0_60 = arith.constant 0 : index
      %68 = arith.index_cast %67 : i32 to index
      %c2_61 = arith.constant 2 : index
      %c0_62 = arith.constant 0 : index
      %69 = vector.load %arg1[%c0_60, %68, %c2_61, %c0_62] : memref<1x4x4x128xbf16, #tpu.memory_space<vmem>>, vector<1x1x2x128xbf16>
      %70 = vector.shape_cast %69 : vector<1x1x2x128xbf16> to vector<2x128xbf16>
      %c8 = arith.constant 8 : index
      %c0_63 = arith.constant 0 : index
      %c0_64 = arith.constant 0 : index
      %71 = vector.load %arg2[%c8, %c0_63, %c0_64] : memref<9x128x128xbf16, #tpu.memory_space<vmem>>, vector<1x128x128xbf16>
      %72 = vector.shape_cast %71 : vector<1x128x128xbf16> to vector<128x128xbf16>
      %cst_65 = arith.constant dense<0.000000e+00> : vector<2x128xf32>
      %73 = tpu.matmul %70, %72, %cst_65 {dimension_numbers = #tpu.dot_dimension_numbers<[1], [0], [0], [1], [0, 0, 1, 1], [], []>} : vector<2x128xbf16>, vector<128x128xbf16>, vector<2x128xf32> -> vector<2x128xf32>
      %74 = arith.addf %66, %73 : vector<2x128xf32>
      %75 = vector.broadcast %0 : vector<1x128xf32> to vector<2x128xf32>
      %76 = arith.addf %74, %75 : vector<2x128xf32>
      %cst_66 = arith.constant 0.000000e+00 : f32
      %77 = vector.broadcast %cst_66 : f32 to vector<2x128xf32>
      %78 = arith.maximumf %76, %77 : vector<2x128xf32>
      %79 = arith.truncf %78 : vector<2x128xf32> to vector<2x128xbf16>
      %c0_67 = arith.constant 0 : index
      %80 = arith.index_cast %arg5 : i32 to index
      %c0_68 = arith.constant 0 : index
      %c0_69 = arith.constant 0 : index
      %81 = vector.load %arg4[%c0_67, %80, %c0_68, %c0_69] : memref<1x2x2x128xbf16, #tpu.memory_space<vmem>>, vector<1x1x2x128xbf16>
      %82 = vector.shape_cast %81 : vector<1x1x2x128xbf16> to vector<2x128xbf16>
      %83 = vector.shape_cast %79 : vector<2x128xbf16> to vector<1x1x2x128xbf16>
      tpu.vector_store %arg4[%c0_67, %80, %c0_68, %c0_69], %83 {strides = array<i32>} : memref<1x2x2x128xbf16, #tpu.memory_space<vmem>>, vector<1x1x2x128xbf16>,
    }
    %c2_i32_1 = arith.constant 2 : i32
    return
  }
  func.func @transform_0(%arg0: i32) -> (i32, i32, i32, i32) {
    %c0_i32 = arith.constant 0 : i32
    %c0_i32_0 = arith.constant 0 : i32
    %c0_i32_1 = arith.constant 0 : i32
    %c0_i32_2 = arith.constant 0 : i32
    return %arg0, %c0_i32, %c0_i32_0, %c0_i32_1 : i32, i32, i32, i32
  }
  func.func @transform_1(%arg0: i32) -> (i32, i32, i32) {
    %c0_i32 = arith.constant 0 : i32
    %c0_i32_0 = arith.constant 0 : i32
    %c0_i32_1 = arith.constant 0 : i32
    %c0_i32_2 = arith.constant 0 : i32
    return %c0_i32, %c0_i32_0, %c0_i32_1 : i32, i32, i32
  }
  func.func @transform_2(%arg0: i32) -> (i32, i32) {
    %c0_i32 = arith.constant 0 : i32
    %c0_i32_0 = arith.constant 0 : i32
    %c0_i32_1 = arith.constant 0 : i32
    return %c0_i32, %c0_i32_0 : i32, i32
  }
  func.func @transform_3(%arg0: i32) -> (i32, i32, i32, i32) {
    %c0_i32 = arith.constant 0 : i32
    %c0_i32_0 = arith.constant 0 : i32
    %c0_i32_1 = arith.constant 0 : i32
    %c0_i32_2 = arith.constant 0 : i32
    return %arg0, %c0_i32, %c0_i32_0, %c0_i32_1 : i32, i32, i32, i32
  }
}

module attributes {stable_mosaic.version = 11 : i64} {
  func.func @_head_kernel(%arg0: i32, %arg1: memref<8x128xbf16, #tpu.memory_space<vmem>>, %arg2: memref<8x8xbf16, #tpu.memory_space<vmem>>, %arg3: memref<8x512xbf16, #tpu.memory_space<vmem>>, %arg4: memref<1x512xf32, #tpu.memory_space<vmem>>, %arg5: memref<512x128xbf16, #tpu.memory_space<vmem>>, %arg6: memref<1x128xf32, #tpu.memory_space<vmem>>, %arg7: memref<128x256xbf16, #tpu.memory_space<vmem>>, %arg8: memref<128x256xbf16, #tpu.memory_space<vmem>>, %arg9: memref<1x256xf32, #tpu.memory_space<vmem>>, %arg10: memref<256x128xbf16, #tpu.memory_space<vmem>>, %arg11: memref<1x128xf32, #tpu.memory_space<vmem>>, %arg12: memref<128x128xbf16, #tpu.memory_space<vmem>>, %arg13: memref<1x128xf32, #tpu.memory_space<vmem>>, %arg14: memref<128x10xbf16, #tpu.memory_space<vmem>>, %arg15: memref<1x10xf32, #tpu.memory_space<vmem>>, %arg16: memref<8x10xf32, #tpu.memory_space<vmem>>) attributes {dimension_semantics = [#tpu.dimension_semantics<parallel>], iteration_bounds = array<i64: 1>, scalar_prefetch = 0 : i64, scratch_operands = 0 : i64, tpu.core_type = #tpu.core_type<tc>, window_params = [{transform_indices = @transform_0, window_bounds = array<i64: 8, 128>}, {transform_indices = @transform_1, window_bounds = array<i64: 8, 8>}, {pipeline_mode = #tpu.pipeline_mode<synchronous>, transform_indices = @transform_2, window_bounds = array<i64: 8, 512>}, {pipeline_mode = #tpu.pipeline_mode<synchronous>, transform_indices = @transform_3, window_bounds = array<i64: 1, 512>}, {pipeline_mode = #tpu.pipeline_mode<synchronous>, transform_indices = @transform_4, window_bounds = array<i64: 512, 128>}, {pipeline_mode = #tpu.pipeline_mode<synchronous>, transform_indices = @transform_5, window_bounds = array<i64: 1, 128>}, {pipeline_mode = #tpu.pipeline_mode<synchronous>, transform_indices = @transform_6, window_bounds = array<i64: 128, 256>}, {pipeline_mode = #tpu.pipeline_mode<synchronous>, transform_indices = @transform_7, window_bounds = array<i64: 128, 256>}, {pipeline_mode = #tpu.pipeline_mode<synchronous>, transform_indices = @transform_8, window_bounds = array<i64: 1, 256>}, {pipeline_mode = #tpu.pipeline_mode<synchronous>, transform_indices = @transform_9, window_bounds = array<i64: 256, 128>}, {pipeline_mode = #tpu.pipeline_mode<synchronous>, transform_indices = @transform_10, window_bounds = array<i64: 1, 128>}, {pipeline_mode = #tpu.pipeline_mode<synchronous>, transform_indices = @transform_11, window_bounds = array<i64: 128, 128>}, {pipeline_mode = #tpu.pipeline_mode<synchronous>, transform_indices = @transform_12, window_bounds = array<i64: 1, 128>}, {pipeline_mode = #tpu.pipeline_mode<synchronous>, transform_indices = @transform_13, window_bounds = array<i64: 128, 10>}, {pipeline_mode = #tpu.pipeline_mode<synchronous>, transform_indices = @transform_14, window_bounds = array<i64: 1, 10>}, {transform_indices = @transform_15, window_bounds = array<i64: 8, 10>}]} {
    %c0 = arith.constant 0 : index
    %c0_0 = arith.constant 0 : index
    %0 = vector.load %arg2[%c0, %c0_0] : memref<8x8xbf16, #tpu.memory_space<vmem>>, vector<8x8xbf16>
    %c0_1 = arith.constant 0 : index
    %c0_2 = arith.constant 0 : index
    %1 = vector.load %arg3[%c0_1, %c0_2] : memref<8x512xbf16, #tpu.memory_space<vmem>>, vector<8x512xbf16>
    %cst = arith.constant dense<0.000000e+00> : vector<8x512xf32>
    %2 = tpu.matmul %0, %1, %cst {dimension_numbers = #tpu.dot_dimension_numbers<[1], [0], [0], [1], [0, 0, 1, 1], [], []>} : vector<8x8xbf16>, vector<8x512xbf16>, vector<8x512xf32> -> vector<8x512xf32>
    %c0_3 = arith.constant 0 : index
    %c0_4 = arith.constant 0 : index
    %3 = vector.load %arg4[%c0_3, %c0_4] : memref<1x512xf32, #tpu.memory_space<vmem>>, vector<1x512xf32>
    %4 = vector.broadcast %3 : vector<1x512xf32> to vector<8x512xf32>
    %5 = arith.addf %2, %4 : vector<8x512xf32>
    %cst_5 = arith.constant 0.000000e+00 : f32
    %6 = vector.broadcast %cst_5 : f32 to vector<8x512xf32>
    %7 = arith.maximumf %5, %6 : vector<8x512xf32>
    %8 = arith.truncf %7 : vector<8x512xf32> to vector<8x512xbf16>
    %c0_6 = arith.constant 0 : index
    %c0_7 = arith.constant 0 : index
    %9 = vector.load %arg5[%c0_6, %c0_7] : memref<512x128xbf16, #tpu.memory_space<vmem>>, vector<512x128xbf16>
    %cst_8 = arith.constant dense<0.000000e+00> : vector<8x128xf32>
    %10 = tpu.matmul %8, %9, %cst_8 {dimension_numbers = #tpu.dot_dimension_numbers<[1], [0], [0], [1], [0, 0, 1, 1], [], []>} : vector<8x512xbf16>, vector<512x128xbf16>, vector<8x128xf32> -> vector<8x128xf32>
    %c0_9 = arith.constant 0 : index
    %c0_10 = arith.constant 0 : index
    %11 = vector.load %arg6[%c0_9, %c0_10] : memref<1x128xf32, #tpu.memory_space<vmem>>, vector<1x128xf32>
    %12 = vector.broadcast %11 : vector<1x128xf32> to vector<8x128xf32>
    %13 = arith.addf %10, %12 : vector<8x128xf32>
    %cst_11 = arith.constant 0.000000e+00 : f32
    %14 = vector.broadcast %cst_11 : f32 to vector<8x128xf32>
    %15 = arith.maximumf %13, %14 : vector<8x128xf32>
    %c0_12 = arith.constant 0 : index
    %c0_13 = arith.constant 0 : index
    %16 = vector.load %arg1[%c0_12, %c0_13] : memref<8x128xbf16, #tpu.memory_space<vmem>>, vector<8x128xbf16>
    %c0_14 = arith.constant 0 : index
    %c0_15 = arith.constant 0 : index
    %17 = vector.load %arg7[%c0_14, %c0_15] : memref<128x256xbf16, #tpu.memory_space<vmem>>, vector<128x256xbf16>
    %cst_16 = arith.constant dense<0.000000e+00> : vector<8x256xf32>
    %18 = tpu.matmul %16, %17, %cst_16 {dimension_numbers = #tpu.dot_dimension_numbers<[1], [0], [0], [1], [0, 0, 1, 1], [], []>} : vector<8x128xbf16>, vector<128x256xbf16>, vector<8x256xf32> -> vector<8x256xf32>
    %19 = arith.truncf %15 : vector<8x128xf32> to vector<8x128xbf16>
    %c0_17 = arith.constant 0 : index
    %c0_18 = arith.constant 0 : index
    %20 = vector.load %arg8[%c0_17, %c0_18] : memref<128x256xbf16, #tpu.memory_space<vmem>>, vector<128x256xbf16>
    %cst_19 = arith.constant dense<0.000000e+00> : vector<8x256xf32>
    %21 = tpu.matmul %19, %20, %cst_19 {dimension_numbers = #tpu.dot_dimension_numbers<[1], [0], [0], [1], [0, 0, 1, 1], [], []>} : vector<8x128xbf16>, vector<128x256xbf16>, vector<8x256xf32> -> vector<8x256xf32>
    %22 = arith.addf %18, %21 : vector<8x256xf32>
    %c0_20 = arith.constant 0 : index
    %c0_21 = arith.constant 0 : index
    %23 = vector.load %arg9[%c0_20, %c0_21] : memref<1x256xf32, #tpu.memory_space<vmem>>, vector<1x256xf32>
    %24 = vector.broadcast %23 : vector<1x256xf32> to vector<8x256xf32>
    %25 = arith.addf %22, %24 : vector<8x256xf32>
    %cst_22 = arith.constant 0.000000e+00 : f32
    %26 = vector.broadcast %cst_22 : f32 to vector<8x256xf32>
    %27 = arith.maximumf %25, %26 : vector<8x256xf32>
    %28 = arith.truncf %27 : vector<8x256xf32> to vector<8x256xbf16>
    %c0_23 = arith.constant 0 : index
    %c0_24 = arith.constant 0 : index
    %29 = vector.load %arg10[%c0_23, %c0_24] : memref<256x128xbf16, #tpu.memory_space<vmem>>, vector<256x128xbf16>
    %cst_25 = arith.constant dense<0.000000e+00> : vector<8x128xf32>
    %30 = tpu.matmul %28, %29, %cst_25 {dimension_numbers = #tpu.dot_dimension_numbers<[1], [0], [0], [1], [0, 0, 1, 1], [], []>} : vector<8x256xbf16>, vector<256x128xbf16>, vector<8x128xf32> -> vector<8x128xf32>
    %c0_26 = arith.constant 0 : index
    %c0_27 = arith.constant 0 : index
    %31 = vector.load %arg11[%c0_26, %c0_27] : memref<1x128xf32, #tpu.memory_space<vmem>>, vector<1x128xf32>
    %32 = vector.broadcast %31 : vector<1x128xf32> to vector<8x128xf32>
    %33 = arith.addf %30, %32 : vector<8x128xf32>
    %cst_28 = arith.constant 0.000000e+00 : f32
    %34 = vector.broadcast %cst_28 : f32 to vector<8x128xf32>
    %35 = arith.maximumf %33, %34 : vector<8x128xf32>
    %36 = arith.truncf %35 : vector<8x128xf32> to vector<8x128xbf16>
    %c0_29 = arith.constant 0 : index
    %c0_30 = arith.constant 0 : index
    %37 = vector.load %arg12[%c0_29, %c0_30] : memref<128x128xbf16, #tpu.memory_space<vmem>>, vector<128x128xbf16>
    %cst_31 = arith.constant dense<0.000000e+00> : vector<8x128xf32>
    %38 = tpu.matmul %36, %37, %cst_31 {dimension_numbers = #tpu.dot_dimension_numbers<[1], [0], [0], [1], [0, 0, 1, 1], [], []>} : vector<8x128xbf16>, vector<128x128xbf16>, vector<8x128xf32> -> vector<8x128xf32>
    %c0_32 = arith.constant 0 : index
    %c0_33 = arith.constant 0 : index
    %39 = vector.load %arg13[%c0_32, %c0_33] : memref<1x128xf32, #tpu.memory_space<vmem>>, vector<1x128xf32>
    %40 = vector.broadcast %39 : vector<1x128xf32> to vector<8x128xf32>
    %41 = arith.addf %38, %40 : vector<8x128xf32>
    %cst_34 = arith.constant 0.000000e+00 : f32
    %42 = vector.broadcast %cst_34 : f32 to vector<8x128xf32>
    %43 = arith.maximumf %41, %42 : vector<8x128xf32>
    %44 = arith.truncf %43 : vector<8x128xf32> to vector<8x128xbf16>
    %c0_35 = arith.constant 0 : index
    %c0_36 = arith.constant 0 : index
    %45 = vector.load %arg14[%c0_35, %c0_36] : memref<128x10xbf16, #tpu.memory_space<vmem>>, vector<128x10xbf16>
    %cst_37 = arith.constant dense<0.000000e+00> : vector<8x10xf32>
    %46 = tpu.matmul %44, %45, %cst_37 {dimension_numbers = #tpu.dot_dimension_numbers<[1], [0], [0], [1], [0, 0, 1, 1], [], []>} : vector<8x128xbf16>, vector<128x10xbf16>, vector<8x10xf32> -> vector<8x10xf32>
    %c0_38 = arith.constant 0 : index
    %c0_39 = arith.constant 0 : index
    %47 = vector.load %arg15[%c0_38, %c0_39] : memref<1x10xf32, #tpu.memory_space<vmem>>, vector<1x10xf32>
    %48 = vector.broadcast %47 : vector<1x10xf32> to vector<8x10xf32>
    %49 = arith.addf %46, %48 : vector<8x10xf32>
    %c0_40 = arith.constant 0 : index
    %c0_41 = arith.constant 0 : index
    %50 = vector.load %arg16[%c0_40, %c0_41] : memref<8x10xf32, #tpu.memory_space<vmem>>, vector<8x10xf32>
    tpu.vector_store %arg16[%c0_40, %c0_41], %49 {strides = array<i32>} : memref<8x10xf32, #tpu.memory_space<vmem>>, vector<8x10xf32>,
    return
  }
  func.func @transform_0(%arg0: i32) -> (i32, i32) {
    %c0_i32 = arith.constant 0 : i32
    %c0_i32_0 = arith.constant 0 : i32
    return %arg0, %c0_i32 : i32, i32
  }
  func.func @transform_1(%arg0: i32) -> (i32, i32) {
    %c0_i32 = arith.constant 0 : i32
    %c0_i32_0 = arith.constant 0 : i32
    return %arg0, %c0_i32 : i32, i32
  }
  func.func @transform_2(%arg0: i32) -> (i32, i32) {
    %c0_i32 = arith.constant 0 : i32
    %c0_i32_0 = arith.constant 0 : i32
    %c0_i32_1 = arith.constant 0 : i32
    return %c0_i32, %c0_i32_0 : i32, i32
  }
  func.func @transform_3(%arg0: i32) -> (i32, i32) {
    %c0_i32 = arith.constant 0 : i32
    %c0_i32_0 = arith.constant 0 : i32
    %c0_i32_1 = arith.constant 0 : i32
    return %c0_i32, %c0_i32_0 : i32, i32
  }
  func.func @transform_4(%arg0: i32) -> (i32, i32) {
    %c0_i32 = arith.constant 0 : i32
    %c0_i32_0 = arith.constant 0 : i32
    %c0_i32_1 = arith.constant 0 : i32
    return %c0_i32, %c0_i32_0 : i32, i32
  }
  func.func @transform_5(%arg0: i32) -> (i32, i32) {
    %c0_i32 = arith.constant 0 : i32
    %c0_i32_0 = arith.constant 0 : i32
    %c0_i32_1 = arith.constant 0 : i32
    return %c0_i32, %c0_i32_0 : i32, i32
  }
  func.func @transform_6(%arg0: i32) -> (i32, i32) {
    %c0_i32 = arith.constant 0 : i32
    %c0_i32_0 = arith.constant 0 : i32
    %c0_i32_1 = arith.constant 0 : i32
    return %c0_i32, %c0_i32_0 : i32, i32
  }
  func.func @transform_7(%arg0: i32) -> (i32, i32) {
    %c0_i32 = arith.constant 0 : i32
    %c0_i32_0 = arith.constant 0 : i32
    %c0_i32_1 = arith.constant 0 : i32
    return %c0_i32, %c0_i32_0 : i32, i32
  }
  func.func @transform_8(%arg0: i32) -> (i32, i32) {
    %c0_i32 = arith.constant 0 : i32
    %c0_i32_0 = arith.constant 0 : i32
    %c0_i32_1 = arith.constant 0 : i32
    return %c0_i32, %c0_i32_0 : i32, i32
  }
  func.func @transform_9(%arg0: i32) -> (i32, i32) {
    %c0_i32 = arith.constant 0 : i32
    %c0_i32_0 = arith.constant 0 : i32
    %c0_i32_1 = arith.constant 0 : i32
    return %c0_i32, %c0_i32_0 : i32, i32
  }
  func.func @transform_10(%arg0: i32) -> (i32, i32) {
    %c0_i32 = arith.constant 0 : i32
    %c0_i32_0 = arith.constant 0 : i32
    %c0_i32_1 = arith.constant 0 : i32
    return %c0_i32, %c0_i32_0 : i32, i32
  }
  func.func @transform_11(%arg0: i32) -> (i32, i32) {
    %c0_i32 = arith.constant 0 : i32
    %c0_i32_0 = arith.constant 0 : i32
    %c0_i32_1 = arith.constant 0 : i32
    return %c0_i32, %c0_i32_0 : i32, i32
  }
  func.func @transform_12(%arg0: i32) -> (i32, i32) {
    %c0_i32 = arith.constant 0 : i32
    %c0_i32_0 = arith.constant 0 : i32
    %c0_i32_1 = arith.constant 0 : i32
    return %c0_i32, %c0_i32_0 : i32, i32
  }
  func.func @transform_13(%arg0: i32) -> (i32, i32) {
    %c0_i32 = arith.constant 0 : i32
    %c0_i32_0 = arith.constant 0 : i32
    %c0_i32_1 = arith.constant 0 : i32
    return %c0_i32, %c0_i32_0 : i32, i32
  }
  func.func @transform_14(%arg0: i32) -> (i32, i32) {
    %c0_i32 = arith.constant 0 : i32
    %c0_i32_0 = arith.constant 0 : i32
    %c0_i32_1 = arith.constant 0 : i32
    return %c0_i32, %c0_i32_0 : i32, i32
  }
  func.func @transform_15(%arg0: i32) -> (i32, i32) {
    %c0_i32 = arith.constant 0 : i32
    %c0_i32_0 = arith.constant 0 : i32
    return %arg0, %c0_i32 : i32, i32
  }
}

module attributes {stable_mosaic.version = 11 : i64} {
  func.func @_maxpool_kernel(%arg0: i32, %arg1: memref<1x2x1x256xbf16, #tpu.memory_space<vmem>>, %arg2: memref<1x1x128xbf16, #tpu.memory_space<vmem>>) attributes {dimension_semantics = [#tpu.dimension_semantics<parallel>], iteration_bounds = array<i64: 2>, scalar_prefetch = 0 : i64, scratch_operands = 0 : i64, tpu.core_type = #tpu.core_type<tc>, window_params = [{transform_indices = @transform_0, window_bounds = array<i64: 1, 2, 1, 256>}, {transform_indices = @transform_1, window_bounds = array<i64: 1, 1, 128>}]} {
    %c0 = arith.constant 0 : index
    %c0_0 = arith.constant 0 : index
    %c0_1 = arith.constant 0 : index
    %c0_2 = arith.constant 0 : index
    %0 = vector.load %arg1[%c0, %c0_0, %c0_1, %c0_2] : memref<1x2x1x256xbf16, #tpu.memory_space<vmem>>, vector<1x1x1x256xbf16>
    %1 = vector.shape_cast %0 : vector<1x1x1x256xbf16> to vector<1x1x256xbf16>
    %c0_3 = arith.constant 0 : index
    %c1 = arith.constant 1 : index
    %c0_4 = arith.constant 0 : index
    %c0_5 = arith.constant 0 : index
    %2 = vector.load %arg1[%c0_3, %c1, %c0_4, %c0_5] : memref<1x2x1x256xbf16, #tpu.memory_space<vmem>>, vector<1x1x1x256xbf16>
    %3 = vector.shape_cast %2 : vector<1x1x1x256xbf16> to vector<1x1x256xbf16>
    %4 = arith.maximumf %1, %3 : vector<1x1x256xbf16>
    %5 = vector.extract_strided_slice %4 {offsets = [0, 0, 0], sizes = [1, 1, 128], strides = [1, 1, 1]} : vector<1x1x256xbf16> to vector<1x1x128xbf16>
    %6 = vector.extract_strided_slice %4 {offsets = [0, 0, 128], sizes = [1, 1, 128], strides = [1, 1, 1]} : vector<1x1x256xbf16> to vector<1x1x128xbf16>
    %7 = arith.maximumf %5, %6 : vector<1x1x128xbf16>
    %c0_6 = arith.constant 0 : index
    %c0_7 = arith.constant 0 : index
    %c0_8 = arith.constant 0 : index
    %8 = vector.load %arg2[%c0_6, %c0_7, %c0_8] : memref<1x1x128xbf16, #tpu.memory_space<vmem>>, vector<1x1x128xbf16>
    tpu.vector_store %arg2[%c0_6, %c0_7, %c0_8], %7 {strides = array<i32>} : memref<1x1x128xbf16, #tpu.memory_space<vmem>>, vector<1x1x128xbf16>,
    return
  }
  func.func @transform_0(%arg0: i32) -> (i32, i32, i32, i32) {
    %c0_i32 = arith.constant 0 : i32
    %c0_i32_0 = arith.constant 0 : i32
    %c0_i32_1 = arith.constant 0 : i32
    %c0_i32_2 = arith.constant 0 : i32
    return %arg0, %c0_i32, %c0_i32_0, %c0_i32_1 : i32, i32, i32, i32
  }
  func.func @transform_1(%arg0: i32) -> (i32, i32, i32) {
    %c0_i32 = arith.constant 0 : i32
    %c0_i32_0 = arith.constant 0 : i32
    %c0_i32_1 = arith.constant 0 : i32
    return %arg0, %c0_i32, %c0_i32_0 : i32, i32, i32
  }
}

</mosaic_0001>

<bundles_post_ra>
// kernel: forward.13
= control target key start
LH: loop header
LB: loop body
LE: loop exit
PB: predicated region body
PF: predicated region fallthrough
CT: control target
= control target key end

     0   :  { %s1050_s12 = smov 0   ;;  %s1184_s0 = inlined_call_operand.vmem [shape: bf16[2,18,18,4], index: 0, kind: input, shape index: {}]   ;;  %s1185_s1 = inlined_call_operand.vmem [shape: bf16[9,4,128], index: 1, kind: input, shape index: {}]   ;;  %s1186_s2 = inlined_call_operand.vmem [shape: f32[1,128], index: 2, kind: input, shape index: {}]   ;;  %s1187_s3 = inlined_call_operand.vmem [shape: bf16[2,16,16,128], index: 3, kind: output, shape index: {}]  }
   0x1 LB: > { %s844_s13 = sadd.s32 4294967295, %s1022_s12   ;;  %p848_p0 = scmp.ge.s32.totalorder %s1022_s12, 1  ;;  %s1022_s12 = sphi %s1050_s12, %s13_s12  }
   0x2   : > { %p137_p1 = scmp.lt.s32.totalorder %s1022_s12, 3 }
   0x4   : > { %p138_p2 = pnand %p848_p0, %p137_p1 }
   0x5   : > { %p161_p3 = scmp.lt.s32.totalorder (!%p138_p2), %s844_s13, 1  ;;  %s1073_s24 = smov (!%p138_p2), 0  }
   0x6   : > { %141 = sbr.rel (%p138_p2) target bundleno = 267 (0x10b), region = 32 }
   0xb   : > { %v1061_v0 = vld [vmem:[%s1186_s2] ss:$0 sm:$0xff]  ;;  %s1189_s13 = smov (!%p161_p3, %s844_s13), 1 }
   0xc   : > { %s982_s16 = smul.u32 216, %s1189_s13  ;;  %s900_s17 = sshll.u32 %s1189_s13, 7 }
   0xd   : > { %s1066_s20 = scalar_lea.vmem %s1187_s3, %s900_s17 }
   0xe   : > { %s1071_s23 = scalar_lea.vmem %s1184_s0, %s982_s16 }
   0xf LB: >> { %v853_v1 = vld [vmem:[%s1185_s1 + $0x2] sm:$0x3]  ;;  %vm213_vm0 = vcmask 1041408   ;;  %v184_v2 = vld [vmem:[%s1185_s1] sm:$0x3]  ;;  %v1028_v3 = vmov 0.0   ;;  %s1026_s24 = sphi %s1073_s24, %s178_s24  }
  0x10   : >> { %928 = vmatprep.subr.bf16.mxu0 %v1028_v3  ;;  %v215_v4 = vsel %vm213_vm0, %v853_v1, 0  ;;  %934 = vmatprep.subr.bf16.mxu1 %v1028_v3  ;;  %v261_v5 = vsel %vm213_vm0, %v184_v2, 0  ;;  %s901_s29 = smul.u32 12, %s1026_s24  ;;  %vm1029_vm1 = vmmov 0   ;;  %v863_v6 = vld [vmem:[%s1185_s1 + $0x6] sm:$0x3] }
  0x11   : >> { %929 = vmatpush3.bf16.msra.mxu0 %v215_v4  ;;  %935 = vmatpush3.bf16.msra.mxu1 %v261_v5  ;;  %vm209_vm2 = vcmask 31744   ;;  %v380_v11 = vsel %vm213_vm0, %v863_v6, 0  ;;  %v858_v20 = vld [vmem:[%s1185_s1 + $0x4] sm:$0x3]  ;;  %vm196_vm3 = vsmask.f32 7424 }
  0x12   : >> { %930 = vmatprep.mubr.msk.bf16.mxu0 %vm1029_vm1, %v1028_v3  ;;  %936 = vmatprep.mubr.msk.bf16.mxu1 %vm1029_vm1, %v1028_v3  ;;  %s1098_s5 = scalar_lea.vmem %s1071_s23, %s901_s29  ;;  %v874_v24 = vld [vmem:[%s1185_s1 + $0xa] sm:$0x3]  ;;  %v318_v26 = vsel %vm213_vm0, %v858_v20, 0  ;;  %vm310_vm4 = vcmask 1046528   ;;  %v869_v38 = vld [vmem:[%s1185_s1 + $0x8] sm:$0x3] }
  0x13   : >> { %940 = vmatprep.subr.bf16.mxu0 %v1028_v3  ;;  %946 = vmatprep.subr.bf16.mxu1 %v1028_v3  ;;  %v182_v7 = vld [vmem:[%s1098_s5] sm:$0xf]  ;;  %v183_v8 = vld [vmem:[%s1098_s5 + $0x4] sm:$0xf]  ;;  %v866_v16 = vld [vmem:[%s1098_s5 + $0xc] sm:$0xf] }
  0x14   : >> { %v854_v9 = vcombine.low %v182_v7, %v183_v8  ;;  %v1002_v10 = vld [vmem:[%s1098_s5 + $0x8] ss:$0 sps:$4 sm:$0x11]   ;;  %v304_v15 = vld [vmem:[%s1098_s5] sm:$0xe]  ;;  %v1004_v27 = vld [vmem:[%s1098_s5 + $0xc] sm:$0xff]  }
  0x15   : >> { %v205_v14 = vshll.u32 %v1002_v10, 16  ;;  %v867_v17 = vld [vmem:[%s1098_s5 + $0x10] sm:$0xf]  ;;  %v873_v21 = vld [vmem:[%s1098_s5 + $0xc] sm:$0xe]  ;;  %v859_v23 = vcombine.low %v304_v15, %v183_v8  ;;  %v512_v33 = vsel %vm213_vm0, %v874_v24, 0 }
  0x16   : >> { %v198_v12 = vshrl.u32 %v854_v9, 16  ;;  %v200_v13 = vshll.u32 %v854_v9, 16  ;;  %937 = vmatmul.mubr.msk.bf16.vlgmr.msra.gmra.mxu1 %vm209_vm2, %v854_v9  ;;  %v870_v25 = vcombine.low %v866_v16, %v867_v17  ;;  %v882_v28 = vld [vmem:[%s1098_s5 + $0x18] sm:$0xf]  ;;  %v883_v29 = vld [vmem:[%s1098_s5 + $0x1c] sm:$0xf]  ;;  %v875_v31 = vcombine.low %v873_v21, %v867_v17 }
  0x17   : >> { %947 = vmatpush3.bf16.msra.mxu1 %v380_v11  ;;  %948 = vmatprep.mubr.msk.bf16.mxu1 %vm1029_vm1, %v1028_v3  ;;  %v207_v19 = vrot.slane %v205_v14, 1  ;;  %v886_v32 = vcombine.low %v882_v28, %v883_v29  ;;  %v311_v34 = vrot.slane %v859_v23, 1  ;;  %v312_v35 = vrot.slane %v1002_v10, 1  ;;  %v1006_v36 = vld [vmem:[%s1098_s5 + $0x14] ss:$0 sps:$4 sm:$0x11]  }
  0x18   : >> { %v202_v18 = vrot.slane %v200_v13, 1  ;;  %958 = vmatprep.subr.bf16.mxu1 %v1028_v3  ;;  %v441_v37 = vshll.u32 %v870_v25, 16  ;;  %v505_v39 = vrot.slane %v875_v31, 1  ;;  %v506_v40 = vrot.slane %v1006_v36, 1  ;;  %v885_v47 = vld [vmem:[%s1185_s1 + $0xe] sm:$0x3] }
  0x19   : >> { %v1010_v41 = vld [vmem:[%s1098_s5 + $0x20] ss:$0 sps:$4 sm:$0x11]   ;;  %v635_v42 = vshll.u32 %v886_v32, 16  ;;  %v313_v43 = vsel %vm310_vm4, %v311_v34, %v312_v35  ;;  %v439_v44 = vshrl.u32 %v870_v25, 16  ;;  %v446_v46 = vshll.u32 %v1006_v36, 16 }
  0x1a   : >> { %v203_v22 = vor.u32 %v202_v18, %v198_v12  ;;  %v443_v45 = vrot.slane %v441_v37, 1  ;;  %v454_v48 = vsel %vm213_vm0, %v869_v38, 0  ;;  %v507_v49 = vsel %vm310_vm4, %v505_v39, %v506_v40  ;;  %v879_v56 = vld [vmem:[%s1185_s1 + $0xc] sm:$0x3]  ;;  %v889_v62 = vld [vmem:[%s1098_s5 + $0x18] sm:$0xe] }
  0x1b   : >> { %v633_v50 = vshrl.u32 %v886_v32, 16  ;;  %v637_v51 = vrot.slane %v635_v42, 1  ;;  %v640_v52 = vshll.u32 %v1010_v41, 16  ;;  %v648_v53 = vsel %vm213_vm0, %v885_v47, 0  ;;  %v890_v63 = vld [vmem:[%s1185_s1 + $0x10] sm:$0x3] }
  0x1c   : >> { %v208_v30 = vsel %vm196_vm3, %v203_v22, %v207_v19  ;;  %v444_v54 = vor.u32 %v443_v45, %v439_v44  ;;  %v448_v55 = vrot.slane %v446_v46, 1  ;;  %v574_v60 = vsel %vm213_vm0, %v879_v56, 0  ;;  %v1008_v1 = vld [vmem:[%s1098_s5 + $0x18] sm:$0xff]   ;;  %s904_s19 = sshll.u32 %s1026_s24, 3  ;;  %s178_s24 = sadd.s32 1, %s1026_s24  }
  0x1d   : >> { %931 = vmatmul.mubr.msk.bf16.vlgmr.msra.gmra.mxu0 %vm209_vm2, %v208_v30  ;;  %v638_v57 = vor.u32 %v637_v51, %v633_v50  ;;  %v642_v58 = vrot.slane %v640_v52, 1  ;;  %v891_v2 = vcombine.low %v889_v62, %v883_v29  ;;  %v706_v4 = vsel %vm213_vm0, %v890_v63, 0  ;;  %s771_s21 = scalar_lea.vmem %s1066_s20, %s904_s19  ;;  %p175_p4 = scmp.ge.s32.totalorder %s178_s24, 16  }
  0x1e   : >> { %941 = vmatpush3.bf16.msra.mxu0 %v318_v26  ;;  %942 = vmatprep.mubr.msk.bf16.mxu0 %vm1029_vm1, %v1028_v3  ;;  %v449_v59 = vsel %vm196_vm3, %v444_v54, %v448_v55  ;;  %v700_v6 = vrot.slane %v1010_v41, 1 }
  0x1f   : >> { %952 = vmatprep.subr.bf16.mxu0 %v1028_v3  ;;  %949 = vmatmul.mubr.msk.bf16.vlgmr.msra.gmra.mxu1 %vm209_vm2, %v1004_v27  ;;  %v643_v61 = vsel %vm196_vm3, %v638_v57, %v642_v58  ;;  %v699_v5 = vrot.slane %v891_v2, 1 }
  0x20   : >> { %959 = vmatpush3.bf16.msra.mxu1 %v512_v33  ;;  %960 = vmatprep.mubr.msk.bf16.mxu1 %vm1029_vm1, %v1028_v3 }
  0x21   : >> { %970 = vmatprep.subr.bf16.mxu1 %v1028_v3  ;;  %v701_v7 = vsel %vm310_vm4, %v699_v5, %v700_v6 }
  0x25   : >> { %943 = vmatmul.mubr.msk.bf16.vlgmr.msra.gmra.mxu0 %vm209_vm2, %v313_v43 }
  0x26   : >> { %953 = vmatpush3.bf16.msra.mxu0 %v454_v48  ;;  %954 = vmatprep.mubr.msk.bf16.mxu0 %vm1029_vm1, %v1028_v3 }
  0x27   : >> { %964 = vmatprep.subr.bf16.mxu0 %v1028_v3  ;;  %961 = vmatmul.mubr.msk.bf16.vlgmr.msra.gmra.mxu1 %vm209_vm2, %v507_v49 }
  0x28   : >> { %971 = vmatpush3.bf16.msra.mxu1 %v648_v53  ;;  %972 = vmatprep.mubr.msk.bf16.mxu1 %vm1029_vm1, %v1028_v3 }
  0x2d   : >> { %955 = vmatmul.mubr.msk.bf16.vlgmr.msra.gmra.mxu0 %vm209_vm2, %v449_v59 }
  0x2e   : >> { %965 = vmatpush3.bf16.msra.mxu0 %v574_v60  ;;  %966 = vmatprep.mubr.msk.bf16.mxu0 %vm1029_vm1, %v1028_v3 }
  0x2f   : >> { %976 = vmatprep.subr.bf16.mxu0 %v1028_v3  ;;  %973 = vmatmul.mubr.msk.bf16.vlgmr.msra.gmra.mxu1 %vm209_vm2, %v643_v61 }
  0x35   : >> { %967 = vmatmul.mubr.msk.bf16.vlgmr.msra.gmra.mxu0 %vm209_vm2, %v1008_v1 }
  0x36   : >> { %977 = vmatpush3.bf16.msra.mxu0 %v706_v4  ;;  %978 = vmatprep.mubr.msk.bf16.mxu0 %vm1029_vm1, %v1028_v3 }
  0x3d   : >> { %979 = vmatmul.mubr.msk.bf16.vlgmr.msra.gmra.mxu0 %vm209_vm2, %v701_v7 }
  0xd6   : >> { %v297_v8 = vpop.f32.mrf.mxu1 }
  0xd8   : >> { %v938_v9 = vpop.f32.mrf.mxu1 }
  0xda   : >> { %v300_v10 = vpop.f32.mrf.mxu1 }
  0xdc   : >> { %v939_v11 = vpop.f32.mrf.mxu1 }
  0xdd   : >> { %v251_v12 = vpop.f32.mrf.mxu0 }
  0xde   : >> { %v298_v24 = vadd.f32 %v297_v8, %v251_v12 }
  0xdf   : >> { %v932_v13 = vpop.f32.mrf.mxu0  ;;  %v416_v14 = vpop.f32.mrf.mxu1 }
  0xe1   : >> { %v254_v15 = vpop.f32.mrf.mxu0  ;;  %v950_v16 = vpop.f32.mrf.mxu1 }
  0xe2   : >> { %v301_v30 = vadd.f32 %v300_v10, %v254_v15 }
  0xe3   : >> { %v933_v17 = vpop.f32.mrf.mxu0  ;;  %v419_v18 = vpop.f32.mrf.mxu1 }
  0xe5   : >> { %v354_v19 = vpop.f32.mrf.mxu0  ;;  %v951_v20 = vpop.f32.mrf.mxu1 }
  0xe6   : >> { %v361_v27 = vadd.f32 %v354_v19, %v298_v24 }
  0xe7   : >> { %v944_v3 = vpop.f32.mrf.mxu0  ;;  %v548_v21 = vpop.f32.mrf.mxu1 }
  0xe8   : >> { %v423_v33 = vadd.f32 %v416_v14, %v361_v27 }
  0xe9   : >> { %v357_v22 = vpop.f32.mrf.mxu0  ;;  %v962_v23 = vpop.f32.mrf.mxu1 }
  0xea   : >> { %v362_v34 = vadd.f32 %v357_v22, %v301_v30 }
  0xeb   : >> { %v945_v25 = vpop.f32.mrf.mxu0  ;;  %v551_v26 = vpop.f32.mrf.mxu1 }
  0xec   : >> { %v424_v40 = vadd.f32 %v419_v18, %v362_v34 }
  0xed   : >> { %v490_v28 = vpop.f32.mrf.mxu0  ;;  %v963_v29 = vpop.f32.mrf.mxu1 }
  0xee   : >> { %v497_v37 = vadd.f32 %v490_v28, %v423_v33 }
  0xef   : >> { %v956_v31 = vpop.f32.mrf.mxu0  ;;  %v684_v32 = vpop.f32.mrf.mxu1 }
  0xf0   : >> { %v555_v43 = vadd.f32 %v548_v21, %v497_v37 }
  0xf1   : >> { %v493_v35 = vpop.f32.mrf.mxu0  ;;  %v974_v36 = vpop.f32.mrf.mxu1 }
  0xf2   : >> { %v498_v44 = vadd.f32 %v493_v35, %v424_v40 }
  0xf3   : >> { %v957_v38 = vpop.f32.mrf.mxu0  ;;  %v687_v39 = vpop.f32.mrf.mxu1 }
  0xf4   : >> { %v556_v48 = vadd.f32 %v551_v26, %v498_v44 }
  0xf5   : >> { %v610_v41 = vpop.f32.mrf.mxu0  ;;  %v975_v42 = vpop.f32.mrf.mxu1 }
  0xf6   : >> { %v617_v46 = vadd.f32 %v610_v41, %v555_v43 }
  0xf7   : >> { %v968_v45 = vpop.f32.mrf.mxu0 }
  0xf8   : >> { %v691_v50 = vadd.f32 %v684_v32, %v617_v46 }
  0xf9   : >> { %v613_v47 = vpop.f32.mrf.mxu0 }
  0xfa   : >> { %v618_v51 = vadd.f32 %v613_v47, %v556_v48 }
  0xfb   : >> { %v969_v49 = vpop.f32.mrf.mxu0 }
  0xfc   : >> { %v692_v55 = vadd.f32 %v687_v39, %v618_v51 }
  0xfd   : >> { %v742_v52 = vpop.f32.mrf.mxu0 }
  0xfe   : >> { %v749_v53 = vadd.f32 %v742_v52, %v691_v50 }
  0xff   : >> { %v980_v54 = vpop.f32.mrf.mxu0 }
 0x100   : >> { %v757_v57 = vadd.f32 %v1061_v0, %v749_v53 }
 0x101   : >> { %v745_v56 = vpop.f32.mrf.mxu0 }
 0x102   : >> { %v750_v58 = vadd.f32 %v745_v56, %v692_v55  ;;  %v759_v61 = vmax.f32 %v757_v57, 0.0 }
 0x103   : >> { %v981_v59 = vpop.f32.mrf.mxu0 }
 0x104   : >> { %v758_v60 = vadd.f32 %v1061_v0, %v750_v58 }
 0x106   : >> { %v760_v62 = vmax.f32 %v758_v60, 0.0  ;;  %177 = sbr.rel (!%p175_p4) target bundleno = 15 (0xf), region = 81 }
 0x108   : >> { %v908_v63 = vpack.c.bf16 %v760_v62, %v759_v61 }
 0x10a   : >> { %909 = vst [vmem:[%s771_s21] sm:$0xff] %v908_v63  }
 0x10b PF: > { %s13_s12 = sadd.s32 1, %s1022_s12  }
 0x10c   : > { %p10_p5 = scmp.ge.s32.totalorder %s13_s12, 4  }
 0x10e   :  { %12 = sbr.rel (!%p10_p5) target bundleno = 1 (0x1), region = 92 }

// kernel: forward.15
= control target key start
LH: loop header
LB: loop body
LE: loop exit
PB: predicated region body
PF: predicated region fallthrough
CT: control target
= control target key end

     0   :  { %s318_s6 = smov 0   ;;  %s339_s0 = inlined_call_operand.vmem [shape: bf16[16,2,8,256], index: 0, kind: input, shape index: {}]   ;;  %s340_s1 = inlined_call_operand.vmem [shape: bf16[16,8,128], index: 1, kind: output, shape index: {}]  }
   0x1 LB: > { %s244_s7 = sadd.s32 4294967295, %s306_s6   ;;  %p248_p0 = scmp.ge.s32.totalorder %s306_s6, 1  ;;  %s306_s6 = sphi %s318_s6, %s11_s6  }
   0x2   : > { %p89_p1 = scmp.lt.s32.totalorder %s306_s6, 3 }
   0x4   : > { %p90_p2 = pnand %p248_p0, %p89_p1 }
   0x5   : > { %s249_s8 = sshll.u32 (!%p90_p2), %s244_s7, 3 }
   0x6   : > { %93 = sbr.rel (%p90_p2) target bundleno = 29 (0x1d), region = 24  ;;  %p111_p3 = scmp.lt.s32.totalorder (!%p90_p2), %s249_s8, 15 }
   0xb   : > { %s342_s8 = smov (!%p111_p3, %s249_s8), 15 }
   0xc   : > { %s264_s9 = sshll.u32 %s342_s8, 4  ;;  %s253_s13 = sshll.u32 %s342_s8, 2 }
   0xd   : > { %s115_s12 = scalar_lea.vmem %s339_s0, %s264_s9  ;;  %s121_s16 = scalar_lea.vmem %s340_s1, %s253_s13 }
   0xe   : > { %v123_v0 = vld [vmem:[%s115_s12] sm:$0xff]  ;;  %v124_v1 = vld [vmem:[%s115_s12 + $0x10] sm:$0xff]  ;;  %v254_v2 = vld [vmem:[%s115_s12 + $0x8] sm:$0xff] }
   0xf   : > { %v255_v3 = vld [vmem:[%s115_s12 + $0x18] sm:$0xff]  ;;  %v140_v4 = vmax.bf16 %v254_v2, %v123_v0  ;;  %v125_v5 = vld [vmem:[%s115_s12 + $0x20] sm:$0xff]  ;;  %v126_v6 = vld [vmem:[%s115_s12 + $0x30] sm:$0xff] }
  0x10   : > { %v141_v7 = vmax.bf16 %v255_v3, %v124_v1  ;;  %v256_v8 = vld [vmem:[%s115_s12 + $0x28] sm:$0xff]  ;;  %v257_v9 = vld [vmem:[%s115_s12 + $0x38] sm:$0xff]  ;;  %v127_v10 = vld [vmem:[%s115_s12 + $0x40] sm:$0xff] }
  0x11   : > { %v156_v11 = vrot.slane %v140_v4, 4  ;;  %v142_v12 = vmax.bf16 %v256_v8, %v125_v5  ;;  %v143_v13 = vmax.bf16 %v257_v9, %v126_v6  ;;  %v128_v14 = vld [vmem:[%s115_s12 + $0x50] sm:$0xff]  ;;  %v258_v15 = vld [vmem:[%s115_s12 + $0x48] sm:$0xff]  ;;  %v259_v16 = vld [vmem:[%s115_s12 + $0x58] sm:$0xff] }
  0x12   : > { %v157_v17 = vrot.slane %v141_v7, 4  ;;  %v144_v18 = vmax.bf16 %v258_v15, %v127_v10  ;;  %v145_v19 = vmax.bf16 %v259_v16, %v128_v14  ;;  %v129_v20 = vld [vmem:[%s115_s12 + $0x60] sm:$0xff]  ;;  %v130_v21 = vld [vmem:[%s115_s12 + $0x70] sm:$0xff]  ;;  %v260_v22 = vld [vmem:[%s115_s12 + $0x68] sm:$0xff] }
  0x13   : > { %v172_v23 = vmax.bf16 %v156_v11, %v140_v4  ;;  %v158_v24 = vrot.slane %v142_v12, 4  ;;  %v159_v25 = vrot.slane %v143_v13, 4  ;;  %v261_v26 = vld [vmem:[%s115_s12 + $0x78] sm:$0xff]  ;;  %v146_v27 = vmax.bf16 %v260_v22, %v129_v20 }
  0x14   : > { %v173_v28 = vmax.bf16 %v157_v17, %v141_v7  ;;  %v160_v29 = vrot.slane %v144_v18, 4  ;;  %v161_v30 = vrot.slane %v145_v19, 4  ;;  %v147_v31 = vmax.bf16 %v261_v26, %v130_v21 }
  0x15   : > { %v174_v32 = vmax.bf16 %v158_v24, %v142_v12  ;;  %v175_v33 = vmax.bf16 %v159_v25, %v143_v13  ;;  %v162_v34 = vrot.slane %v146_v27, 4 }
  0x16   : > { %v285_v35 = vcombine.low %v172_v23, %v173_v28  ;;  %v176_v36 = vmax.bf16 %v160_v29, %v144_v18  ;;  %v177_v37 = vmax.bf16 %v161_v30, %v145_v19  ;;  %v163_v38 = vrot.slane %v147_v31, 4 }
  0x17   : > { %v286_v39 = vcombine.low %v174_v32, %v175_v33  ;;  %v178_v40 = vmax.bf16 %v162_v34, %v146_v27 }
  0x18   : > { %269 = vst [vmem:[%s121_s16] sm:$0xff] %v285_v35   ;;  %v288_v41 = vcombine.low %v176_v36, %v177_v37  ;;  %v179_v42 = vmax.bf16 %v163_v38, %v147_v31 }
  0x19   : > { %287 = vst [vmem:[%s121_s16 + $0x8] sm:$0xff] %v286_v39  }
  0x1a   : > { %289 = vst [vmem:[%s121_s16 + $0x10] sm:$0xff] %v288_v41   ;;  %v290_v43 = vcombine.low %v178_v40, %v179_v42 }
  0x1c   : > { %291 = vst [vmem:[%s121_s16 + $0x18] sm:$0xff] %v290_v43  }
  0x1d PF: > { %s11_s6 = sadd.s32 1, %s306_s6  }
  0x1e   : > { %p8_p4 = scmp.ge.s32.totalorder %s11_s6, 4  }
  0x20   :  { %10 = sbr.rel (!%p8_p4) target bundleno = 1 (0x1), region = 55 }

// kernel: forward.14
= control target key start
LH: loop header
LB: loop body
LE: loop exit
PB: predicated region body
PF: predicated region fallthrough
CT: control target
= control target key end

     0   :  { %s2015_s12 = smov 0   ;;  %s2408_s0 = inlined_call_operand.vmem [shape: bf16[2,18,18,128], index: 0, kind: input, shape index: {}]   ;;  %s2409_s1 = inlined_call_operand.vmem [shape: bf16[9,128,128], index: 1, kind: input, shape index: {}]   ;;  %s2410_s2 = inlined_call_operand.vmem [shape: f32[1,128], index: 2, kind: input, shape index: {}]   ;;  %s2411_s3 = inlined_call_operand.vmem [shape: bf16[2,16,16,128], index: 3, kind: output, shape index: {}]  }
   0x1 LB: > { %s1365_s13 = sadd.s32 4294967295, %s1987_s12   ;;  %p1369_p0 = scmp.ge.s32.totalorder %s1987_s12, 1  ;;  %s1987_s12 = sphi %s2015_s12, %s13_s12  }
   0x2   : > { %p137_p1 = scmp.lt.s32.totalorder %s1987_s12, 3 }
   0x4   : > { %p138_p2 = pnand %p1369_p0, %p137_p1 }
   0x5   : > { %p161_p3 = scmp.lt.s32.totalorder (!%p138_p2), %s1365_s13, 1  ;;  %s2038_s24 = smov (!%p138_p2), 0  }
   0x6   : > { %141 = sbr.rel (%p138_p2) target bundleno = 382 (0x17e), region = 32 }
   0xb   : > { %v2026_v0 = vld [vmem:[%s2410_s2] ss:$0 sm:$0xff]  ;;  %s2413_s13 = smov (!%p161_p3, %s1365_s13), 1 }
   0xc   : > { %s1875_s16 = smul.u32 216, %s2413_s13  ;;  %s1604_s17 = sshll.u32 %s2413_s13, 7 }
   0xd   : > { %s2031_s20 = scalar_lea.vmem %s2411_s3, %s1604_s17 }
   0xe   : > { %s2036_s23 = scalar_lea.vmem %s2408_s0, %s1875_s16 }
   0xf LB: >> { %v1894_v1 = vld [vmem:[%s2409_s1 + $0x78] sm:$0xff]   ;;  %v1993_v2 = vmov 0.0   ;;  %v1896_v4 = vld [vmem:[%s2409_s1 + $0x70] sm:$0xff]   ;;  %vm1994_vm0 = vmmov 0   ;;  %v1898_v6 = vld [vmem:[%s2409_s1 + $0x68] sm:$0xff]   ;;  %s1605_s10 = smul.u32 12, %s1991_s24  ;;  %s1991_s24 = sphi %s2038_s24, %s178_s24  }
  0x10   : >> { %1695 = vmatprep.subr.bf16.mxu0 %v1993_v2  ;;  %1715 = vmatprep.subr.bf16.mxu1 %v1993_v2  ;;  %v1895_v3 = vld [vmem:[%s2409_s1 + $0x38] sm:$0xff]   ;;  %v1897_v5 = vld [vmem:[%s2409_s1 + $0x30] sm:$0xff]   ;;  %v1899_v7 = vld [vmem:[%s2409_s1 + $0x28] sm:$0xff]   ;;  %vm226_vm1 = vsmask.f32 7424  ;;  %vm440_vm2 = vcmask 1046528  }
  0x11   : >> { %1696 = vmatpush3.bf16.msra.mxu0 %v1894_v1  ;;  %1711 = vmatprep.mubr.msk.bf16.mxu0 %vm1994_vm0, %v1993_v2  ;;  %v1900_v8 = vld [vmem:[%s2409_s1 + $0x60] sm:$0xff]   ;;  %s2081_s16 = scalar_lea.vmem %s2036_s23, %s1605_s10  ;;  %v1902_v10 = vld [vmem:[%s2409_s1 + $0x58] sm:$0xff]   ;;  %v1904_v14 = vld [vmem:[%s2409_s1 + $0x50] sm:$0xff]   ;;  %s1608_s10 = sshll.u32 %s1991_s24, 3 }
  0x12   : >> { %1716 = vmatpush3.bf16.msra.mxu1 %v1895_v3  ;;  %1697 = vmatprep.subr.bf16.mxu0 %v1993_v2  ;;  %v1901_v9 = vld [vmem:[%s2409_s1 + $0x20] sm:$0xff]   ;;  %v1903_v11 = vld [vmem:[%s2409_s1 + $0x18] sm:$0xff]   ;;  %v2100_v16 = vld [vmem:[%s2081_s16 + $0x8] ss:$0 sps:$4 sm:$0x11]   ;;  %s1292_s11 = scalar_lea.vmem %s2031_s20, %s1608_s10  ;;  %s178_s24 = sadd.s32 1, %s1991_s24  }
  0x13   : >> { %1717 = vmatprep.subr.bf16.mxu1 %v1993_v2  ;;  %1731 = vmatprep.mubr.msk.bf16.mxu1 %vm1994_vm0, %v1993_v2  ;;  %v182_v12 = vld [vmem:[%s2081_s16] sm:$0xf]  ;;  %v2093_v13 = vld [vmem:[%s2081_s16 + $0x4] sm:$0xf]  ;;  %v1905_v17 = vld [vmem:[%s2409_s1 + $0x10] sm:$0xff]   ;;  %v235_v22 = vshll.u32 %v2100_v16, 16 }
  0x14   : >> { %v1390_v15 = vcombine.low %v182_v12, %v2093_v13  ;;  %v1906_v19 = vld [vmem:[%s2409_s1 + $0x48] sm:$0xff]   ;;  %v1908_v24 = vld [vmem:[%s2409_s1 + $0x40] sm:$0xff]   ;;  %v1912_v29 = vld [vmem:[%s2409_s1 + $0xb8] sm:$0xff]   ;;  %v442_v52 = vrot.slane %v2100_v16, 1  ;;  %p175_p4 = scmp.ge.s32.totalorder %s178_s24, 16  }
  0x15   : >> { %1698 = vmatpush3.bf16.msra.mxu0 %v1896_v4  ;;  %v1907_v23 = vld [vmem:[%s2409_s1 + $0x8] sm:$0xff]   ;;  %v1909_v25 = vld [vmem:[%s2409_s1] sm:$0xff]   ;;  %v237_v27 = vrot.slane %v235_v22, 1  ;;  %v1913_v30 = vld [vmem:[%s2409_s1 + $0xf8] sm:$0xff]  }
  0x16   : >> { %1718 = vmatpush3.bf16.msra.mxu1 %v1897_v5  ;;  %1699 = vmatprep.subr.bf16.mxu0 %v1993_v2  ;;  %v230_v18 = vshll.u32 %v1390_v15, 16  ;;  %v228_v20 = vshrl.u32 %v1390_v15, 16  ;;  %v1914_v31 = vld [vmem:[%s2409_s1 + $0xb0] sm:$0xff]   ;;  %v1916_v33 = vld [vmem:[%s2409_s1 + $0xa8] sm:$0xff]   ;;  %v1918_v35 = vld [vmem:[%s2409_s1 + $0xa0] sm:$0xff]  }
  0x17   : >> { %1719 = vmatprep.subr.bf16.mxu1 %v1993_v2  ;;  %v1915_v32 = vld [vmem:[%s2409_s1 + $0xf0] sm:$0xff]   ;;  %v1917_v34 = vld [vmem:[%s2409_s1 + $0xe8] sm:$0xff]   ;;  %v1919_v36 = vld [vmem:[%s2409_s1 + $0xe0] sm:$0xff]  }
  0x18   : >> { %v232_v21 = vrot.slane %v230_v18, 1  ;;  %v1920_v37 = vld [vmem:[%s2409_s1 + $0x98] sm:$0xff]   ;;  %v1922_v39 = vld [vmem:[%s2409_s1 + $0x90] sm:$0xff]   ;;  %v419_v41 = vld [vmem:[%s2081_s16] sm:$0xe] }
  0x19   : >> { %1700 = vmatpush3.bf16.msra.mxu0 %v1898_v6  ;;  %v1921_v38 = vld [vmem:[%s2409_s1 + $0xd8] sm:$0xff]   ;;  %v1923_v40 = vld [vmem:[%s2409_s1 + $0xd0] sm:$0xff]   ;;  %v1460_v42 = vld [vmem:[%s2081_s16 + $0xc] sm:$0xf]  ;;  %v1424_v47 = vcombine.low %v419_v41, %v2093_v13 }
  0x1a   : >> { %1720 = vmatpush3.bf16.msra.mxu1 %v1899_v7  ;;  %1701 = vmatprep.subr.bf16.mxu0 %v1993_v2  ;;  %v233_v26 = vor.u32 %v232_v21, %v228_v20  ;;  %v2180_v43 = vld [vmem:[%s2081_s16 + $0x10] sm:$0xf]  ;;  %v2184_v45 = vld [vmem:[%s2081_s16 + $0x14] ss:$0 sps:$4 sm:$0x11]   ;;  %v1924_v46 = vld [vmem:[%s2409_s1 + $0x88] sm:$0xff]  }
  0x1b   : >> { %1721 = vmatprep.subr.bf16.mxu1 %v1993_v2  ;;  %v1479_v44 = vcombine.low %v1460_v42, %v2180_v43  ;;  %v1925_v48 = vld [vmem:[%s2409_s1 + $0xc8] sm:$0xff]   ;;  %v692_v51 = vshll.u32 %v2184_v45, 16  ;;  %v1926_v55 = vld [vmem:[%s2409_s1 + $0x80] sm:$0xff]   ;;  %v441_v56 = vrot.slane %v1424_v47, 1  ;;  %v1929_v59 = vld [vmem:[%s2409_s1 + $0x138] sm:$0xff]  }
  0x1c   : >> { %v238_v28 = vsel %vm226_vm1, %v233_v26, %v237_v27  ;;  %v1927_v57 = vld [vmem:[%s2409_s1 + $0xc0] sm:$0xff]   ;;  %v1930_v62 = vld [vmem:[%s2081_s16 + $0xc] sm:$0xff]   ;;  %v1931_v63 = vld [vmem:[%s2409_s1 + $0x178] sm:$0xff]  }
  0x1d   : >> { %1702 = vmatpush3.bf16.msra.mxu0 %v1900_v8  ;;  %v685_v49 = vshrl.u32 %v1479_v44, 16  ;;  %v687_v50 = vshll.u32 %v1479_v44, 16  ;;  %v694_v54 = vrot.slane %v692_v51, 1  ;;  %v443_v61 = vsel %vm440_vm2, %v441_v56, %v442_v52  ;;  %v1932_v1 = vld [vmem:[%s2409_s1 + $0x130] sm:$0xff]   ;;  %v1934_v4 = vld [vmem:[%s2409_s1 + $0x128] sm:$0xff]   ;;  %v1936_v8 = vld [vmem:[%s2409_s1 + $0x120] sm:$0xff]  }
  0x1e   : >> { %1722 = vmatpush3.bf16.msra.mxu1 %v1901_v9  ;;  %1703 = vmatprep.subr.bf16.mxu0 %v1993_v2  ;;  %v1933_v3 = vld [vmem:[%s2409_s1 + $0x170] sm:$0xff]   ;;  %v1935_v5 = vld [vmem:[%s2409_s1 + $0x168] sm:$0xff]   ;;  %v1542_v6 = vld [vmem:[%s2081_s16 + $0x18] sm:$0xf] }
  0x1f   : >> { %1723 = vmatprep.subr.bf16.mxu1 %v1993_v2  ;;  %v689_v53 = vrot.slane %v687_v50, 1  ;;  %v1543_v7 = vld [vmem:[%s2081_s16 + $0x1c] sm:$0xf]  ;;  %v1571_v20 = vld [vmem:[%s2081_s16 + $0x18] sm:$0xe]  ;;  %v1953_v41 = vld [vmem:[%s2409_s1 + $0x1a8] sm:$0xff]  }
  0x20   : >> { %v1561_v9 = vcombine.low %v1542_v6, %v1543_v7  ;;  %v1939_v18 = vld [vmem:[%s2409_s1 + $0x158] sm:$0xff]   ;;  %v1588_v22 = vcombine.low %v1571_v20, %v1543_v7  ;;  %v1489_v27 = vld [vmem:[%s2081_s16 + $0xc] sm:$0xe]  ;;  %v1956_v44 = vld [vmem:[%s2409_s1 + $0x1e0] sm:$0xff]  }
  0x21   : >> { %1704 = vmatpush3.bf16.msra.mxu0 %v1902_v10  ;;  %v690_v58 = vor.u32 %v689_v53, %v685_v49  ;;  %v1968_v10 = vld [vmem:[%s2081_s16 + $0x20] ss:$0 sps:$4 sm:$0x11]   ;;  %v1954_v42 = vld [vmem:[%s2409_s1 + $0x1e8] sm:$0xff]   ;;  %v1959_v47 = vld [vmem:[%s2409_s1 + $0x190] sm:$0xff]  }
  0x22   : >> { %1724 = vmatpush3.bf16.msra.mxu1 %v1903_v11  ;;  %1705 = vmatprep.subr.bf16.mxu0 %v1993_v2  ;;  %v1937_v11 = vld [vmem:[%s2409_s1 + $0x160] sm:$0xff]   ;;  %v1053_v12 = vshrl.u32 %v1561_v9, 16  ;;  %v1055_v13 = vshll.u32 %v1561_v9, 16  ;;  %v1177_v26 = vrot.slane %v1588_v22, 1  ;;  %v1961_v49 = vld [vmem:[%s2409_s1 + $0x188] sm:$0xff]   ;;  %v1965_v53 = vld [vmem:[%s2081_s16 + $0x18] sm:$0xff]  }
  0x23   : >> { %1725 = vmatprep.subr.bf16.mxu1 %v1993_v2  ;;  %v2209_v60 = vsel %vm226_vm1, %v690_v58, %v694_v54  ;;  %v1962_v50 = vld [vmem:[%s2409_s1 + $0x1c8] sm:$0xff]   ;;  %v1963_v51 = vld [vmem:[%s2409_s1 + $0x180] sm:$0xff]   ;;  %v1966_v54 = vld [vmem:[%s2409_s1 + $0x238] sm:$0xff]  }
  0x24   : >> { %v1057_v16 = vrot.slane %v1055_v13, 1  ;;  %v1964_v52 = vld [vmem:[%s2409_s1 + $0x1c0] sm:$0xff]   ;;  %v1970_v56 = vld [vmem:[%s2409_s1 + $0x228] sm:$0xff]   ;;  %v1972_v58 = vld [vmem:[%s2409_s1 + $0x218] sm:$0xff]  }
  0x25   : >> { %1706 = vmatpush3.bf16.msra.mxu0 %v1904_v14  ;;  %v1060_v14 = vshll.u32 %v1968_v10, 16 }
  0x26   : >> { %1726 = vmatpush3.bf16.msra.mxu1 %v1905_v17  ;;  %1707 = vmatprep.subr.bf16.mxu0 %v1993_v2 }
  0x27   : >> { %1727 = vmatprep.subr.bf16.mxu1 %v1993_v2  ;;  %v1062_v17 = vrot.slane %v1060_v14, 1 }
  0x29   : >> { %1708 = vmatpush3.bf16.msra.mxu0 %v1906_v19  ;;  %v1058_v19 = vor.u32 %v1057_v16, %v1053_v12 }
  0x2a   : >> { %1728 = vmatpush3.bf16.msra.mxu1 %v1907_v23  ;;  %1709 = vmatprep.subr.bf16.mxu0 %v1993_v2  ;;  %v1178_v23 = vrot.slane %v1968_v10, 1 }
  0x2b   : >> { %1729 = vmatprep.subr.bf16.mxu1 %v1993_v2  ;;  %v2259_v21 = vsel %vm226_vm1, %v1058_v19, %v1062_v17 }
  0x2d   : >> { %1710 = vmatpush3.bf16.msra.mxu0 %v1908_v24  ;;  %v1940_v24 = vld [vmem:[%s2409_s1 + $0x110] sm:$0xff]  }
  0x2e   : >> { %1730 = vmatpush3.bf16.msra.mxu1 %v1909_v25  ;;  %1735 = vmatprep.subr.bf16.mxu0 %v1993_v2  ;;  %v1941_v25 = vld [vmem:[%s2409_s1 + $0x150] sm:$0xff]  }
  0x2f   : >> { %1755 = vmatprep.subr.bf16.mxu1 %v1993_v2 }
  0x30   : >> { %1712 = vmatmul.mubr.bf16.vlgmr.msra.gmra.mxu0 %v238_v28  ;;  %v2271_v28 = vsel %vm440_vm2, %v1177_v26, %v1178_v23 }
  0x31   : >> { %1732 = vmatmul.mubr.bf16.vlgmr.msra.gmra.mxu1 %v1390_v15  ;;  %1736 = vmatpush3.bf16.msra.mxu0 %v1912_v29  ;;  %v1938_v15 = vld [vmem:[%s2409_s1 + $0x118] sm:$0xff]   ;;  %v1942_v29 = vld [vmem:[%s2409_s1 + $0x108] sm:$0xff]  }
  0x32   : >> { %1756 = vmatpush3.bf16.msra.mxu1 %v1913_v30  ;;  %1737 = vmatprep.subr.bf16.mxu0 %v1993_v2  ;;  %v1943_v30 = vld [vmem:[%s2409_s1 + $0x148] sm:$0xff]  }
  0x33   : >> { %1757 = vmatprep.subr.bf16.mxu1 %v1993_v2  ;;  %1751 = vmatprep.mubr.msk.bf16.mxu0 %vm1994_vm0, %v1993_v2 }
  0x34   : >> { %1771 = vmatprep.mubr.msk.bf16.mxu1 %vm1994_vm0, %v1993_v2 }
  0x35   : >> { %1738 = vmatpush3.bf16.msra.mxu0 %v1914_v31  ;;  %v1506_v31 = vcombine.low %v1489_v27, %v2180_v43  ;;  %v1955_v43 = vld [vmem:[%s2409_s1 + $0x1a0] sm:$0xff]  }
  0x36   : >> { %1758 = vmatpush3.bf16.msra.mxu1 %v1915_v32  ;;  %1739 = vmatprep.subr.bf16.mxu0 %v1993_v2  ;;  %v1944_v32 = vld [vmem:[%s2409_s1 + $0x100] sm:$0xff]  }
  0x37   : >> { %1759 = vmatprep.subr.bf16.mxu1 %v1993_v2 }
  0x39   : >> { %1740 = vmatpush3.bf16.msra.mxu0 %v1916_v33  ;;  %v1945_v33 = vld [vmem:[%s2409_s1 + $0x140] sm:$0xff]  }
  0x3a   : >> { %1760 = vmatpush3.bf16.msra.mxu1 %v1917_v34  ;;  %1741 = vmatprep.subr.bf16.mxu0 %v1993_v2  ;;  %v809_v34 = vrot.slane %v1506_v31, 1 }
  0x3b   : >> { %1761 = vmatprep.subr.bf16.mxu1 %v1993_v2 }
  0x3d   : >> { %1742 = vmatpush3.bf16.msra.mxu0 %v1918_v35  ;;  %v810_v35 = vrot.slane %v2184_v45, 1  ;;  %v1957_v45 = vld [vmem:[%s2409_s1 + $0x198] sm:$0xff]  }
  0x3e   : >> { %1762 = vmatpush3.bf16.msra.mxu1 %v1919_v36  ;;  %1743 = vmatprep.subr.bf16.mxu0 %v1993_v2  ;;  %v1948_v36 = vld [vmem:[%s2409_s1 + $0x1b8] sm:$0xff]  }
  0x3f   : >> { %1763 = vmatprep.subr.bf16.mxu1 %v1993_v2 }
  0x41   : >> { %1744 = vmatpush3.bf16.msra.mxu0 %v1920_v37  ;;  %v811_v37 = vsel %vm440_vm2, %v809_v34, %v810_v35 }
  0x42   : >> { %1764 = vmatpush3.bf16.msra.mxu1 %v1921_v38  ;;  %1745 = vmatprep.subr.bf16.mxu0 %v1993_v2  ;;  %v1950_v38 = vld [vmem:[%s2409_s1 + $0x1f8] sm:$0xff]  }
  0x43   : >> { %1765 = vmatprep.subr.bf16.mxu1 %v1993_v2 }
  0x45   : >> { %1746 = vmatpush3.bf16.msra.mxu0 %v1922_v39  ;;  %v1951_v39 = vld [vmem:[%s2409_s1 + $0x1b0] sm:$0xff]  }
  0x46   : >> { %1766 = vmatpush3.bf16.msra.mxu1 %v1923_v40  ;;  %1747 = vmatprep.subr.bf16.mxu0 %v1993_v2  ;;  %v1952_v40 = vld [vmem:[%s2409_s1 + $0x1f0] sm:$0xff]  }
  0x47   : >> { %1767 = vmatprep.subr.bf16.mxu1 %v1993_v2 }
  0x49   : >> { %1748 = vmatpush3.bf16.msra.mxu0 %v1924_v46  ;;  %v1958_v46 = vld [vmem:[%s2409_s1 + $0x1d8] sm:$0xff]  }
  0x4a   : >> { %1768 = vmatpush3.bf16.msra.mxu1 %v1925_v48  ;;  %1749 = vmatprep.subr.bf16.mxu0 %v1993_v2  ;;  %v1960_v48 = vld [vmem:[%s2409_s1 + $0x1d0] sm:$0xff]  }
  0x4b   : >> { %1769 = vmatprep.subr.bf16.mxu1 %v1993_v2 }
  0x4d   : >> { %1750 = vmatpush3.bf16.msra.mxu0 %v1926_v55  ;;  %v1969_v55 = vld [vmem:[%s2409_s1 + $0x230] sm:$0xff]  }
  0x4e   : >> { %1770 = vmatpush3.bf16.msra.mxu1 %v1927_v57  ;;  %1775 = vmatprep.subr.bf16.mxu0 %v1993_v2  ;;  %v1971_v57 = vld [vmem:[%s2409_s1 + $0x220] sm:$0xff]  }
  0x4f   : >> { %1795 = vmatprep.subr.bf16.mxu1 %v1993_v2 }
  0x50   : >> { %1752 = vmatmul.mubr.bf16.vlgmr.msra.gmra.mxu0 %v443_v61  ;;  %v1975_v61 = vld [vmem:[%s2409_s1 + $0x200] sm:$0xff]  }
  0x51   : >> { %1776 = vmatpush3.bf16.msra.mxu0 %v1929_v59  ;;  %1772 = vmatmul.mubr.bf16.vlgmr.msra.gmra.mxu1 %v1930_v62  ;;  %v1973_v59 = vld [vmem:[%s2409_s1 + $0x210] sm:$0xff]  }
  0x52   : >> { %1796 = vmatpush3.bf16.msra.mxu1 %v1931_v63  ;;  %1777 = vmatprep.subr.bf16.mxu0 %v1993_v2 }
  0x53   : >> { %1797 = vmatprep.subr.bf16.mxu1 %v1993_v2  ;;  %1791 = vmatprep.mubr.msk.bf16.mxu0 %vm1994_vm0, %v1993_v2 }
  0x54   : >> { %1811 = vmatprep.mubr.msk.bf16.mxu1 %vm1994_vm0, %v1993_v2 }
  0x55   : >> { %1778 = vmatpush3.bf16.msra.mxu0 %v1932_v1 }
  0x56   : >> { %1798 = vmatpush3.bf16.msra.mxu1 %v1933_v3  ;;  %1779 = vmatprep.subr.bf16.mxu0 %v1993_v2 }
  0x57   : >> { %1799 = vmatprep.subr.bf16.mxu1 %v1993_v2 }
  0x59   : >> { %1780 = vmatpush3.bf16.msra.mxu0 %v1934_v4 }
  0x5a   : >> { %1800 = vmatpush3.bf16.msra.mxu1 %v1935_v5  ;;  %1781 = vmatprep.subr.bf16.mxu0 %v1993_v2 }
  0x5b   : >> { %1801 = vmatprep.subr.bf16.mxu1 %v1993_v2 }
  0x5d   : >> { %1782 = vmatpush3.bf16.msra.mxu0 %v1936_v8 }
  0x5e   : >> { %1802 = vmatpush3.bf16.msra.mxu1 %v1937_v11  ;;  %1783 = vmatprep.subr.bf16.mxu0 %v1993_v2 }
  0x5f   : >> { %1803 = vmatprep.subr.bf16.mxu1 %v1993_v2 }
  0x61   : >> { %1784 = vmatpush3.bf16.msra.mxu0 %v1938_v15 }
  0x62   : >> { %1804 = vmatpush3.bf16.msra.mxu1 %v1939_v18  ;;  %1785 = vmatprep.subr.bf16.mxu0 %v1993_v2 }
  0x63   : >> { %1805 = vmatprep.subr.bf16.mxu1 %v1993_v2 }
  0x65   : >> { %1786 = vmatpush3.bf16.msra.mxu0 %v1940_v24 }
  0x66   : >> { %1806 = vmatpush3.bf16.msra.mxu1 %v1941_v25  ;;  %1787 = vmatprep.subr.bf16.mxu0 %v1993_v2 }
  0x67   : >> { %1807 = vmatprep.subr.bf16.mxu1 %v1993_v2 }
  0x69   : >> { %1788 = vmatpush3.bf16.msra.mxu0 %v1942_v29 }
  0x6a   : >> { %1808 = vmatpush3.bf16.msra.mxu1 %v1943_v30  ;;  %1789 = vmatprep.subr.bf16.mxu0 %v1993_v2 }
  0x6b   : >> { %1809 = vmatprep.subr.bf16.mxu1 %v1993_v2 }
  0x6d   : >> { %1790 = vmatpush3.bf16.msra.mxu0 %v1944_v32 }
  0x6e   : >> { %1810 = vmatpush3.bf16.msra.mxu1 %v1945_v33  ;;  %1815 = vmatprep.subr.bf16.mxu0 %v1993_v2 }
  0x6f   : >> { %1835 = vmatprep.subr.bf16.mxu1 %v1993_v2 }
  0x70   : >> { %1792 = vmatmul.mubr.bf16.vlgmr.msra.gmra.mxu0 %v2209_v60  ;;  %v1974_v60 = vld [vmem:[%s2409_s1 + $0x208] sm:$0xff]  }
  0x71   : >> { %1816 = vmatpush3.bf16.msra.mxu0 %v1948_v36  ;;  %1812 = vmatmul.mubr.bf16.vlgmr.msra.gmra.mxu1 %v811_v37 }
  0x72   : >> { %1836 = vmatpush3.bf16.msra.mxu1 %v1950_v38  ;;  %1817 = vmatprep.subr.bf16.mxu0 %v1993_v2 }
  0x73   : >> { %1837 = vmatprep.subr.bf16.mxu1 %v1993_v2  ;;  %1831 = vmatprep.mubr.msk.bf16.mxu0 %vm1994_vm0, %v1993_v2 }
  0x74   : >> { %1851 = vmatprep.mubr.msk.bf16.mxu1 %vm1994_vm0, %v1993_v2 }
  0x75   : >> { %1818 = vmatpush3.bf16.msra.mxu0 %v1951_v39 }
  0x76   : >> { %1838 = vmatpush3.bf16.msra.mxu1 %v1952_v40  ;;  %1819 = vmatprep.subr.bf16.mxu0 %v1993_v2 }
  0x77   : >> { %1839 = vmatprep.subr.bf16.mxu1 %v1993_v2 }
  0x79   : >> { %1820 = vmatpush3.bf16.msra.mxu0 %v1953_v41 }
  0x7a   : >> { %1840 = vmatpush3.bf16.msra.mxu1 %v1954_v42  ;;  %1821 = vmatprep.subr.bf16.mxu0 %v1993_v2 }
  0x7b   : >> { %1841 = vmatprep.subr.bf16.mxu1 %v1993_v2 }
  0x7d   : >> { %1822 = vmatpush3.bf16.msra.mxu0 %v1955_v43 }
  0x7e   : >> { %1842 = vmatpush3.bf16.msra.mxu1 %v1956_v44  ;;  %1823 = vmatprep.subr.bf16.mxu0 %v1993_v2 }
  0x7f   : >> { %1843 = vmatprep.subr.bf16.mxu1 %v1993_v2 }
  0x81   : >> { %1824 = vmatpush3.bf16.msra.mxu0 %v1957_v45 }
  0x82   : >> { %1844 = vmatpush3.bf16.msra.mxu1 %v1958_v46  ;;  %1825 = vmatprep.subr.bf16.mxu0 %v1993_v2 }
  0x83   : >> { %1845 = vmatprep.subr.bf16.mxu1 %v1993_v2 }
  0x85   : >> { %1826 = vmatpush3.bf16.msra.mxu0 %v1959_v47 }
  0x86   : >> { %1846 = vmatpush3.bf16.msra.mxu1 %v1960_v48  ;;  %1827 = vmatprep.subr.bf16.mxu0 %v1993_v2 }
  0x87   : >> { %1847 = vmatprep.subr.bf16.mxu1 %v1993_v2 }
  0x89   : >> { %1828 = vmatpush3.bf16.msra.mxu0 %v1961_v49 }
  0x8a   : >> { %1848 = vmatpush3.bf16.msra.mxu1 %v1962_v50  ;;  %1829 = vmatprep.subr.bf16.mxu0 %v1993_v2 }
  0x8b   : >> { %1849 = vmatprep.subr.bf16.mxu1 %v1993_v2 }
  0x8d   : >> { %1830 = vmatpush3.bf16.msra.mxu0 %v1963_v51 }
  0x8e   : >> { %1850 = vmatpush3.bf16.msra.mxu1 %v1964_v52  ;;  %1855 = vmatprep.subr.bf16.mxu0 %v1993_v2 }
  0x90   : >> { %1832 = vmatmul.mubr.bf16.vlgmr.msra.gmra.mxu0 %v1965_v53 }
  0x91   : >> { %1856 = vmatpush3.bf16.msra.mxu0 %v1966_v54  ;;  %1852 = vmatmul.mubr.bf16.vlgmr.msra.gmra.mxu1 %v2259_v21 }
  0x92   : >> { %1857 = vmatprep.subr.bf16.mxu0 %v1993_v2  ;;  %1871 = vmatprep.mubr.msk.bf16.mxu0 %vm1994_vm0, %v1993_v2 }
  0x95   : >> { %1858 = vmatpush3.bf16.msra.mxu0 %v1969_v55 }
  0x96   : >> { %1859 = vmatprep.subr.bf16.mxu0 %v1993_v2 }
  0x99   : >> { %1860 = vmatpush3.bf16.msra.mxu0 %v1970_v56 }
  0x9a   : >> { %1861 = vmatprep.subr.bf16.mxu0 %v1993_v2 }
  0x9d   : >> { %1862 = vmatpush3.bf16.msra.mxu0 %v1971_v57 }
  0x9e   : >> { %1863 = vmatprep.subr.bf16.mxu0 %v1993_v2 }
  0xa1   : >> { %1864 = vmatpush3.bf16.msra.mxu0 %v1972_v58 }
  0xa2   : >> { %1865 = vmatprep.subr.bf16.mxu0 %v1993_v2 }
  0xa5   : >> { %1866 = vmatpush3.bf16.msra.mxu0 %v1973_v59 }
  0xa6   : >> { %1867 = vmatprep.subr.bf16.mxu0 %v1993_v2 }
  0xa9   : >> { %1868 = vmatpush3.bf16.msra.mxu0 %v1974_v60 }
  0xaa   : >> { %1869 = vmatprep.subr.bf16.mxu0 %v1993_v2 }
  0xad   : >> { %1870 = vmatpush3.bf16.msra.mxu0 %v1975_v61 }
  0xb0   : >> { %1872 = vmatmul.mubr.bf16.vlgmr.msra.gmra.mxu0 %v2271_v28 }
  0xf0   : >> { %v322_v62 = vpop.f32.mrf.mxu0 }
  0xf1   : >> { %v412_v63 = vpop.f32.mrf.mxu1 }
  0xf2   : >> { %v413_v1 = vadd.f32 %v412_v63, %v322_v62  ;;  %v1713_v3 = vpop.f32.mrf.mxu0 }
  0xf3   : >> { %v1733_v4 = vpop.f32.mrf.mxu1 }
  0xf4   : >> { %v325_v5 = vpop.f32.mrf.mxu0 }
  0xf5   : >> { %v415_v6 = vpop.f32.mrf.mxu1 }
  0xf6   : >> { %v416_v7 = vadd.f32 %v415_v6, %v325_v5  ;;  %v1714_v8 = vpop.f32.mrf.mxu0 }
  0xf7   : >> { %v1734_v9 = vpop.f32.mrf.mxu1 }
 0x110   : >> { %v527_v10 = vpop.f32.mrf.mxu0 }
 0x111   : >> { %v534_v11 = vadd.f32 %v527_v10, %v413_v1  ;;  %v647_v12 = vpop.f32.mrf.mxu1 }
 0x112   : >> { %v1753_v13 = vpop.f32.mrf.mxu0 }
 0x113   : >> { %v654_v14 = vadd.f32 %v647_v12, %v534_v11  ;;  %v1773_v15 = vpop.f32.mrf.mxu1 }
 0x114   : >> { %v530_v2 = vpop.f32.mrf.mxu0 }
 0x115   : >> { %v535_v16 = vadd.f32 %v530_v2, %v416_v7  ;;  %v650_v17 = vpop.f32.mrf.mxu1 }
 0x116   : >> { %v1754_v18 = vpop.f32.mrf.mxu0 }
 0x117   : >> { %v655_v19 = vadd.f32 %v650_v17, %v535_v16  ;;  %v1774_v20 = vpop.f32.mrf.mxu1 }
 0x130   : >> { %v779_v21 = vpop.f32.mrf.mxu0 }
 0x131   : >> { %v895_v22 = vpop.f32.mrf.mxu1  ;;  %v786_v37 = vadd.f32 %v779_v21, %v654_v14 }
 0x132   : >> { %v1793_v23 = vpop.f32.mrf.mxu0 }
 0x133   : >> { %v1813_v24 = vpop.f32.mrf.mxu1  ;;  %v902_v38 = vadd.f32 %v895_v22, %v786_v37 }
 0x134   : >> { %v782_v25 = vpop.f32.mrf.mxu0 }
 0x135   : >> { %v898_v26 = vpop.f32.mrf.mxu1  ;;  %v787_v39 = vadd.f32 %v782_v25, %v655_v19 }
 0x136   : >> { %v1794_v27 = vpop.f32.mrf.mxu0 }
 0x137   : >> { %v1814_v28 = vpop.f32.mrf.mxu1  ;;  %v903_v41 = vadd.f32 %v898_v26, %v787_v39 }
 0x150   : >> { %v1015_v29 = vpop.f32.mrf.mxu0 }
 0x151   : >> { %v1147_v30 = vpop.f32.mrf.mxu1  ;;  %v1022_v40 = vadd.f32 %v1015_v29, %v902_v38 }
 0x152   : >> { %v1833_v31 = vpop.f32.mrf.mxu0 }
 0x153   : >> { %v1853_v32 = vpop.f32.mrf.mxu1  ;;  %v1154_v42 = vadd.f32 %v1147_v30, %v1022_v40 }
 0x154   : >> { %v1018_v33 = vpop.f32.mrf.mxu0 }
 0x155   : >> { %v1150_v34 = vpop.f32.mrf.mxu1  ;;  %v1023_v43 = vadd.f32 %v1018_v33, %v903_v41 }
 0x156   : >> { %v1834_v35 = vpop.f32.mrf.mxu0 }
 0x157   : >> { %v1854_v36 = vpop.f32.mrf.mxu1  ;;  %v1155_v47 = vadd.f32 %v1150_v34, %v1023_v43 }
 0x170   : >> { %v1263_v44 = vpop.f32.mrf.mxu0 }
 0x171   : >> { %v1270_v45 = vadd.f32 %v1263_v44, %v1154_v42 }
 0x172   : >> { %v1873_v46 = vpop.f32.mrf.mxu0 }
 0x173   : >> { %v1278_v49 = vadd.f32 %v2026_v0, %v1270_v45 }
 0x174   : >> { %v1266_v48 = vpop.f32.mrf.mxu0 }
 0x175   : >> { %v1271_v50 = vadd.f32 %v1266_v48, %v1155_v47  ;;  %v1280_v53 = vmax.f32 %v1278_v49, 0.0 }
 0x176   : >> { %v1874_v51 = vpop.f32.mrf.mxu0 }
 0x177   : >> { %v1279_v52 = vadd.f32 %v2026_v0, %v1271_v50 }
 0x179   : >> { %v1281_v54 = vmax.f32 %v1279_v52, 0.0  ;;  %177 = sbr.rel (!%p175_p4) target bundleno = 15 (0xf), region = 81 }
 0x17b   : >> { %v1612_v55 = vpack.c.bf16 %v1281_v54, %v1280_v53 }
 0x17d   : >> { %1613 = vst [vmem:[%s1292_s11] sm:$0xff] %v1612_v55  }
 0x17e PF: > { %s13_s12 = sadd.s32 1, %s1987_s12  }
 0x17f   : > { %p10_p5 = scmp.ge.s32.totalorder %s13_s12, 4  }
 0x181   :  { %12 = sbr.rel (!%p10_p5) target bundleno = 1 (0x1), region = 92 }

// kernel: forward.18
= control target key start
LH: loop header
LB: loop body
LE: loop exit
PB: predicated region body
PF: predicated region fallthrough
CT: control target
= control target key end

     0   :  { %s255_s6 = smov 0   ;;  %s272_s0 = inlined_call_operand.vmem [shape: bf16[8,2,4,256], index: 0, kind: input, shape index: {}]   ;;  %s273_s1 = inlined_call_operand.vmem [shape: bf16[8,4,128], index: 1, kind: output, shape index: {}]  }
   0x1 LB: > { %s212_s7 = sadd.s32 4294967295, %s243_s6   ;;  %p216_p0 = scmp.ge.s32.totalorder %s243_s6, 1  ;;  %s243_s6 = sphi %s255_s6, %s11_s6  }
   0x2   : > { %p89_p1 = scmp.lt.s32.totalorder %s243_s6, 3 }
   0x4   : > { %p90_p2 = pnand %p216_p0, %p89_p1 }
   0x5   : > { %s217_s8 = sshll.u32 (!%p90_p2), %s212_s7, 2 }
   0x6   : > { %93 = sbr.rel (%p90_p2) target bundleno = 24 (0x18), region = 24  ;;  %p111_p3 = scmp.lt.s32.totalorder (!%p90_p2), %s217_s8, 7 }
   0xb   : > { %s275_s8 = smov (!%p111_p3, %s217_s8), 7 }
   0xc   : > { %s228_s9 = sshll.u32 %s275_s8, 3  ;;  %s221_s13 = sshll.u32 %s275_s8, 1 }
   0xd   : > { %s115_s12 = scalar_lea.vmem %s272_s0, %s228_s9  ;;  %s121_s16 = scalar_lea.vmem %s273_s1, %s221_s13 }
   0xe   : > { %v123_v0 = vld [vmem:[%s115_s12] sm:$0xf]  ;;  %v222_v1 = vld [vmem:[%s115_s12 + $0x4] sm:$0xf]  ;;  %v124_v2 = vld [vmem:[%s115_s12 + $0x8] sm:$0xf] }
   0xf   : > { %v132_v3 = vmax.bf16 %v222_v1, %v123_v0  ;;  %v223_v4 = vld [vmem:[%s115_s12 + $0xc] sm:$0xf]  ;;  %v125_v5 = vld [vmem:[%s115_s12 + $0x10] sm:$0xf]  ;;  %v224_v6 = vld [vmem:[%s115_s12 + $0x14] sm:$0xf] }
  0x10   : > { %v133_v7 = vmax.bf16 %v223_v4, %v124_v2  ;;  %v134_v8 = vmax.bf16 %v224_v6, %v125_v5  ;;  %v126_v9 = vld [vmem:[%s115_s12 + $0x18] sm:$0xf]  ;;  %v225_v10 = vld [vmem:[%s115_s12 + $0x1c] sm:$0xf] }
  0x11   : > { %v140_v11 = vrot.slane %v132_v3, 2  ;;  %v135_v12 = vmax.bf16 %v225_v10, %v126_v9 }
  0x12   : > { %v141_v13 = vrot.slane %v133_v7, 2  ;;  %v142_v14 = vrot.slane %v134_v8, 2 }
  0x13   : > { %v148_v15 = vmax.bf16 %v140_v11, %v132_v3  ;;  %v143_v16 = vrot.slane %v135_v12, 2 }
  0x14   : > { %v149_v17 = vmax.bf16 %v141_v13, %v133_v7  ;;  %v150_v18 = vmax.bf16 %v142_v14, %v134_v8 }
  0x15   : > { %152 = vst [vmem:[%s121_s16] sm:$0x3] %v148_v15  ;;  %v151_v19 = vmax.bf16 %v143_v16, %v135_v12 }
  0x16   : > { %153 = vst [vmem:[%s121_s16 + $0x2] sm:$0x3] %v149_v17  ;;  %154 = vst [vmem:[%s121_s16 + $0x4] sm:$0x3] %v150_v18 }
  0x17   : > { %155 = vst [vmem:[%s121_s16 + $0x6] sm:$0x3] %v151_v19 }
  0x18 PF: > { %s11_s6 = sadd.s32 1, %s243_s6  }
  0x19   : > { %p8_p4 = scmp.ge.s32.totalorder %s11_s6, 4  }
  0x1b   :  { %10 = sbr.rel (!%p8_p4) target bundleno = 1 (0x1), region = 55 }

// kernel: forward.21
= control target key start
LH: loop header
LB: loop body
LE: loop exit
PB: predicated region body
PF: predicated region fallthrough
CT: control target
= control target key end

     0   :  { %s223_s6 = smov 0   ;;  %s234_s0 = inlined_call_operand.vmem [shape: bf16[4,2,2,256], index: 0, kind: input, shape index: {}]   ;;  %s235_s1 = inlined_call_operand.vmem [shape: bf16[4,2,128], index: 1, kind: output, shape index: {}]  }
   0x1 LB: > { %s185_s7 = sadd.s32 4294967295, %s211_s6   ;;  %p189_p0 = scmp.ge.s32.totalorder %s211_s6, 1  ;;  %s211_s6 = sphi %s223_s6, %s11_s6  }
   0x2   : > { %p88_p1 = scmp.lt.s32.totalorder %s211_s6, 3 }
   0x4   : > { %p89_p2 = pnand %p189_p0, %p88_p1 }
   0x5   : > { %s190_s8 = sshll.u32 (!%p89_p2), %s185_s7, 1 }
   0x6   : > { %92 = sbr.rel (%p89_p2) target bundleno = 23 (0x17), region = 24  ;;  %p108_p3 = scmp.lt.s32.totalorder (!%p89_p2), %s190_s8, 3 }
   0xb   : > { %s237_s8 = smov (!%p108_p3, %s190_s8), 3 }
   0xc   : > { %s191_s9 = sshll.u32 %s237_s8, 2  ;;  %s116_s15 = scalar_lea.vmem %s235_s1, %s237_s8 }
   0xd   : > { %s111_s12 = scalar_lea.vmem %s234_s0, %s191_s9 }
   0xe   : > { %v118_v0 = vld [vmem:[%s111_s12] sm:$0x3]  ;;  %v193_v1 = vld [vmem:[%s111_s12 + $0x2] sm:$0x3]  ;;  %v119_v2 = vld [vmem:[%s111_s12 + $0x4] sm:$0x3] }
   0xf   : > { %v123_v3 = vmax.bf16 %v193_v1, %v118_v0  ;;  %v194_v4 = vld [vmem:[%s111_s12 + $0x6] sm:$0x3] }
  0x10   : > { %v124_v5 = vmax.bf16 %v194_v4, %v119_v2 }
  0x11   : > { %v127_v6 = vrot.slane %v123_v3, 1 }
  0x12   : > { %v128_v7 = vrot.slane %v124_v5, 1 }
  0x13   : > { %v131_v8 = vmax.bf16 %v127_v6, %v123_v3 }
  0x14   : > { %v132_v9 = vmax.bf16 %v128_v7, %v124_v5 }
  0x15   : > { %133 = vst [vmem:[%s116_s15] sm:$0x1] %v131_v8 }
  0x16   : > { %134 = vst [vmem:[%s116_s15 + $0x1] sm:$0x1] %v132_v9 }
  0x17 PF: > { %s11_s6 = sadd.s32 1, %s211_s6  }
  0x18   : > { %p8_p4 = scmp.ge.s32.totalorder %s11_s6, 4  }
  0x1a   :  { %10 = sbr.rel (!%p8_p4) target bundleno = 1 (0x1), region = 55 }

// kernel: forward.19
= control target key start
LH: loop header
LB: loop body
LE: loop exit
PB: predicated region body
PF: predicated region fallthrough
CT: control target
= control target key end

     0   :  { %s1901_s12 = smov 0   ;;  %s2257_s0 = inlined_call_operand.vmem [shape: bf16[2,6,6,128], index: 0, kind: input, shape index: {}]   ;;  %s2258_s1 = inlined_call_operand.vmem [shape: bf16[9,128,128], index: 1, kind: input, shape index: {}]   ;;  %s2259_s2 = inlined_call_operand.vmem [shape: f32[1,128], index: 2, kind: input, shape index: {}]   ;;  %s2260_s3 = inlined_call_operand.vmem [shape: bf16[2,4,4,128], index: 3, kind: output, shape index: {}]  }
   0x1 LB: > { %s1277_s13 = sadd.s32 4294967295, %s1873_s12   ;;  %p1281_p0 = scmp.ge.s32.totalorder %s1873_s12, 1  ;;  %s1873_s12 = sphi %s1901_s12, %s13_s12  }
   0x2   : > { %p137_p1 = scmp.lt.s32.totalorder %s1873_s12, 3 }
   0x4   : > { %p138_p2 = pnand %p1281_p0, %p137_p1 }
   0x5   : > { %p161_p3 = scmp.lt.s32.totalorder (!%p138_p2), %s1277_s13, 1  ;;  %s1924_s24 = smov (!%p138_p2), 0  }
   0x6   : > { %141 = sbr.rel (%p138_p2) target bundleno = 378 (0x17a), region = 32 }
   0xb   : > { %v1912_v0 = vld [vmem:[%s2259_s2] ss:$0 sm:$0xff]  ;;  %s2262_s13 = smov (!%p161_p3, %s1277_s13), 1 }
   0xc   : > { %s1766_s16 = smul.u32 24, %s2262_s13  ;;  %s1504_s17 = sshll.u32 %s2262_s13, 3 }
   0xd   : > { %s1917_s20 = scalar_lea.vmem %s2260_s3, %s1504_s17 }
   0xe   : > { %s1922_s23 = scalar_lea.vmem %s2257_s0, %s1766_s16 }
   0xf LB: >> { %v1785_v1 = vld [vmem:[%s2258_s1 + $0x78] sm:$0xff]   ;;  %v1879_v2 = vmov 0.0   ;;  %v1787_v4 = vld [vmem:[%s2258_s1 + $0x70] sm:$0xff]   ;;  %vm1880_vm0 = vmmov 0   ;;  %v1789_v6 = vld [vmem:[%s2258_s1 + $0x68] sm:$0xff]   ;;  %s1285_s13 = sshll.u32 %s1877_s24, 2  ;;  %s1877_s24 = sphi %s1924_s24, %s178_s24  }
  0x10   : >> { %1586 = vmatprep.subr.bf16.mxu0 %v1879_v2  ;;  %1606 = vmatprep.subr.bf16.mxu1 %v1879_v2  ;;  %v1786_v3 = vld [vmem:[%s2258_s1 + $0x38] sm:$0xff]   ;;  %v1788_v5 = vld [vmem:[%s2258_s1 + $0x30] sm:$0xff]   ;;  %v1790_v7 = vld [vmem:[%s2258_s1 + $0x28] sm:$0xff]   ;;  %s1967_s16 = scalar_lea.vmem %s1922_s23, %s1285_s13 }
  0x11   : >> { %1587 = vmatpush3.bf16.msra.mxu0 %v1785_v1  ;;  %1602 = vmatprep.mubr.msk.bf16.mxu0 %vm1880_vm0, %v1879_v2  ;;  %v1791_v8 = vld [vmem:[%s2258_s1 + $0x60] sm:$0xff]   ;;  %v1793_v10 = vld [vmem:[%s2258_s1 + $0x58] sm:$0xff]   ;;  %v1795_v13 = vld [vmem:[%s2258_s1 + $0x50] sm:$0xff]  }
  0x12   : >> { %1607 = vmatpush3.bf16.msra.mxu1 %v1786_v3  ;;  %1588 = vmatprep.subr.bf16.mxu0 %v1879_v2  ;;  %v1792_v9 = vld [vmem:[%s2258_s1 + $0x20] sm:$0xff]   ;;  %v1794_v11 = vld [vmem:[%s2258_s1 + $0x18] sm:$0xff]   ;;  %v1796_v14 = vld [vmem:[%s2258_s1 + $0x10] sm:$0xff]  }
  0x13   : >> { %1608 = vmatprep.subr.bf16.mxu1 %v1879_v2  ;;  %1622 = vmatprep.mubr.msk.bf16.mxu1 %vm1880_vm0, %v1879_v2  ;;  %v1801_v12 = vld [vmem:[%s1967_s16] ss:$0 sps:$4 sm:$0x77]   ;;  %v1797_v16 = vld [vmem:[%s2258_s1 + $0x48] sm:$0xff]   ;;  %v1802_v23 = vld [vmem:[%s2258_s1 + $0xb8] sm:$0xff]  }
  0x14   : >> { %v222_v15 = vshll.u32 %v1801_v12, 16  ;;  %v1798_v17 = vld [vmem:[%s2258_s1 + $0x8] sm:$0xff]   ;;  %v220_v18 = vshrl.u32 %v1801_v12, 16  ;;  %v1799_v20 = vld [vmem:[%s2258_s1 + $0x40] sm:$0xff]   ;;  %v1803_v25 = vld [vmem:[%s2258_s1 + $0xf8] sm:$0xff]  }
  0x15   : >> { %1589 = vmatpush3.bf16.msra.mxu0 %v1787_v4  ;;  %v1800_v21 = vld [vmem:[%s2258_s1] sm:$0xff]   ;;  %v1804_v26 = vld [vmem:[%s2258_s1 + $0xb0] sm:$0xff]   ;;  %v1806_v28 = vld [vmem:[%s2258_s1 + $0xa8] sm:$0xff]  }
  0x16   : >> { %1609 = vmatpush3.bf16.msra.mxu1 %v1788_v5  ;;  %1590 = vmatprep.subr.bf16.mxu0 %v1879_v2  ;;  %v224_v19 = vrot.slane %v222_v15, 1  ;;  %v181_v24 = vld [vmem:[%s1967_s16] sm:$0x3]  ;;  %v1805_v27 = vld [vmem:[%s2258_s1 + $0xf0] sm:$0xff]   ;;  %v1807_v29 = vld [vmem:[%s2258_s1 + $0xe8] sm:$0xff]  }
  0x17   : >> { %1610 = vmatprep.subr.bf16.mxu1 %v1879_v2  ;;  %v1808_v30 = vld [vmem:[%s2258_s1 + $0xa0] sm:$0xff]   ;;  %v1810_v32 = vld [vmem:[%s2258_s1 + $0x98] sm:$0xff]   ;;  %v1812_v34 = vld [vmem:[%s2258_s1 + $0x90] sm:$0xff]  }
  0x18   : >> { %v225_v22 = vor.u32 %v224_v19, %v220_v18  ;;  %v1809_v31 = vld [vmem:[%s2258_s1 + $0xe0] sm:$0xff]   ;;  %v1811_v33 = vld [vmem:[%s2258_s1 + $0xd8] sm:$0xff]   ;;  %v1813_v35 = vld [vmem:[%s2258_s1 + $0xd0] sm:$0xff]  }
  0x19   : >> { %1591 = vmatpush3.bf16.msra.mxu0 %v1789_v6  ;;  %v1814_v36 = vld [vmem:[%s2258_s1 + $0x88] sm:$0xff]   ;;  %v1818_v38 = vld [vmem:[%s1967_s16] ss:$0 sps:$4 sm:$0x66]   ;;  %v1819_v42 = vld [vmem:[%s2258_s1 + $0x138] sm:$0xff]  }
  0x1a   : >> { %1611 = vmatpush3.bf16.msra.mxu1 %v1790_v7  ;;  %1592 = vmatprep.subr.bf16.mxu0 %v1879_v2  ;;  %v1815_v37 = vld [vmem:[%s2258_s1 + $0xc8] sm:$0xff]   ;;  %v1816_v39 = vld [vmem:[%s2258_s1 + $0x80] sm:$0xff]   ;;  %v424_v41 = vrot.slane %v1818_v38, 1  ;;  %v1820_v44 = vld [vmem:[%s2258_s1 + $0x178] sm:$0xff]  }
  0x1b   : >> { %1612 = vmatprep.subr.bf16.mxu1 %v1879_v2  ;;  %v1817_v40 = vld [vmem:[%s2258_s1 + $0xc0] sm:$0xff]   ;;  %v1821_v45 = vld [vmem:[%s2258_s1 + $0x130] sm:$0xff]   ;;  %v1823_v47 = vld [vmem:[%s2258_s1 + $0x128] sm:$0xff]  }
  0x1c   : >> { %v1345_v43 = vld [vmem:[%s1967_s16 + $0x4] sm:$0x3]  ;;  %v1822_v46 = vld [vmem:[%s2258_s1 + $0x170] sm:$0xff]   ;;  %v1824_v48 = vld [vmem:[%s2258_s1 + $0x168] sm:$0xff]  }
  0x1d   : >> { %1593 = vmatpush3.bf16.msra.mxu0 %v1791_v8  ;;  %v1825_v49 = vld [vmem:[%s2258_s1 + $0x120] sm:$0xff]   ;;  %v1827_v51 = vld [vmem:[%s2258_s1 + $0x118] sm:$0xff]   ;;  %v1829_v54 = vld [vmem:[%s2258_s1 + $0x110] sm:$0xff]  }
  0x1e   : >> { %1613 = vmatpush3.bf16.msra.mxu1 %v1792_v9  ;;  %1594 = vmatprep.subr.bf16.mxu0 %v1879_v2  ;;  %v1826_v50 = vld [vmem:[%s2258_s1 + $0x160] sm:$0xff]   ;;  %v1828_v52 = vld [vmem:[%s2258_s1 + $0x158] sm:$0xff]   ;;  %v1830_v55 = vld [vmem:[%s2258_s1 + $0x150] sm:$0xff]  }
  0x1f   : >> { %1614 = vmatprep.subr.bf16.mxu1 %v1879_v2  ;;  %v1835_v53 = vld [vmem:[%s1967_s16 + $0x4] ss:$0 sps:$4 sm:$0x77]   ;;  %v1831_v57 = vld [vmem:[%s2258_s1 + $0x108] sm:$0xff]   ;;  %v1836_v3 = vld [vmem:[%s2258_s1 + $0x1b8] sm:$0xff]  }
  0x20   : >> { %v649_v56 = vshll.u32 %v1835_v53, 16  ;;  %v1832_v58 = vld [vmem:[%s2258_s1 + $0x148] sm:$0xff]   ;;  %v647_v59 = vshrl.u32 %v1835_v53, 16  ;;  %v1833_v61 = vld [vmem:[%s2258_s1 + $0x100] sm:$0xff]   ;;  %v1838_v5 = vld [vmem:[%s2258_s1 + $0x1f8] sm:$0xff]  }
  0x21   : >> { %1595 = vmatpush3.bf16.msra.mxu0 %v1793_v10  ;;  %v1837_v62 = vld [vmem:[%s1967_s16 + $0x4] ss:$0 sps:$4 sm:$0x66]   ;;  %v1839_v6 = vld [vmem:[%s2258_s1 + $0x1b0] sm:$0xff]   ;;  %v1841_v8 = vld [vmem:[%s2258_s1 + $0x1a8] sm:$0xff]  }
  0x22   : >> { %1615 = vmatpush3.bf16.msra.mxu1 %v1794_v11  ;;  %1596 = vmatprep.subr.bf16.mxu0 %v1879_v2  ;;  %v651_v60 = vrot.slane %v649_v56, 1  ;;  %v1834_v63 = vld [vmem:[%s2258_s1 + $0x140] sm:$0xff]   ;;  %v764_v4 = vrot.slane %v1837_v62, 1  ;;  %v1840_v7 = vld [vmem:[%s2258_s1 + $0x1f0] sm:$0xff]   ;;  %v1842_v9 = vld [vmem:[%s2258_s1 + $0x1e8] sm:$0xff]  }
  0x23   : >> { %1616 = vmatprep.subr.bf16.mxu1 %v1879_v2  ;;  %v1843_v10 = vld [vmem:[%s2258_s1 + $0x1a0] sm:$0xff]   ;;  %v1845_v12 = vld [vmem:[%s2258_s1 + $0x198] sm:$0xff]   ;;  %v1854_v15 = vld [vmem:[%s1967_s16 + $0x8] ss:$0 sps:$4 sm:$0x77]  }
  0x24   : >> { %v652_v1 = vor.u32 %v651_v60, %v647_v59  ;;  %v1844_v11 = vld [vmem:[%s2258_s1 + $0x1e0] sm:$0xff]   ;;  %v989_v18 = vshll.u32 %v1854_v15, 16  ;;  %v1850_v19 = vld [vmem:[%s2258_s1 + $0x1c8] sm:$0xff]  }
  0x25   : >> { %1597 = vmatpush3.bf16.msra.mxu0 %v1795_v13  ;;  %v1846_v13 = vld [vmem:[%s2258_s1 + $0x1d8] sm:$0xff]  }
  0x26   : >> { %1617 = vmatpush3.bf16.msra.mxu1 %v1796_v14  ;;  %1598 = vmatprep.subr.bf16.mxu0 %v1879_v2  ;;  %v1847_v14 = vld [vmem:[%s2258_s1 + $0x190] sm:$0xff]  }
  0x27   : >> { %1618 = vmatprep.subr.bf16.mxu1 %v1879_v2 }
  0x29   : >> { %1599 = vmatpush3.bf16.msra.mxu0 %v1797_v16  ;;  %v1848_v16 = vld [vmem:[%s2258_s1 + $0x1d0] sm:$0xff]  }
  0x2a   : >> { %1619 = vmatpush3.bf16.msra.mxu1 %v1798_v17  ;;  %1600 = vmatprep.subr.bf16.mxu0 %v1879_v2  ;;  %v1849_v17 = vld [vmem:[%s2258_s1 + $0x188] sm:$0xff]  }
  0x2b   : >> { %1620 = vmatprep.subr.bf16.mxu1 %v1879_v2 }
  0x2d   : >> { %1601 = vmatpush3.bf16.msra.mxu0 %v1799_v20  ;;  %v1851_v20 = vld [vmem:[%s2258_s1 + $0x180] sm:$0xff]  }
  0x2e   : >> { %1621 = vmatpush3.bf16.msra.mxu1 %v1800_v21  ;;  %1626 = vmatprep.subr.bf16.mxu0 %v1879_v2  ;;  %v987_v21 = vshrl.u32 %v1854_v15, 16 }
  0x2f   : >> { %1646 = vmatprep.subr.bf16.mxu1 %v1879_v2 }
  0x30   : >> { %1603 = vmatmul.mubr.bf16.vlgmr.msra.gmra.mxu0 %v225_v22  ;;  %v991_v22 = vrot.slane %v989_v18, 1 }
  0x31   : >> { %1623 = vmatmul.mubr.bf16.vlgmr.msra.gmra.mxu1 %v181_v24  ;;  %1627 = vmatpush3.bf16.msra.mxu0 %v1802_v23  ;;  %v1852_v23 = vld [vmem:[%s2258_s1 + $0x1c0] sm:$0xff]   ;;  %v1423_v24 = vld [vmem:[%s1967_s16 + $0x8] sm:$0x3] }
  0x32   : >> { %1647 = vmatpush3.bf16.msra.mxu1 %v1803_v25  ;;  %1628 = vmatprep.subr.bf16.mxu0 %v1879_v2  ;;  %v1853_v25 = vld [vmem:[%s2258_s1 + $0x238] sm:$0xff]  }
  0x33   : >> { %1648 = vmatprep.subr.bf16.mxu1 %v1879_v2  ;;  %1642 = vmatprep.mubr.msk.bf16.mxu0 %vm1880_vm0, %v1879_v2 }
  0x34   : >> { %1662 = vmatprep.mubr.msk.bf16.mxu1 %vm1880_vm0, %v1879_v2 }
  0x35   : >> { %1629 = vmatpush3.bf16.msra.mxu0 %v1804_v26  ;;  %v992_v26 = vor.u32 %v991_v22, %v987_v21 }
  0x36   : >> { %1649 = vmatpush3.bf16.msra.mxu1 %v1805_v27  ;;  %1630 = vmatprep.subr.bf16.mxu0 %v1879_v2  ;;  %v1855_v27 = vld [vmem:[%s2258_s1 + $0x230] sm:$0xff]  }
  0x37   : >> { %1650 = vmatprep.subr.bf16.mxu1 %v1879_v2 }
  0x39   : >> { %1631 = vmatpush3.bf16.msra.mxu0 %v1806_v28  ;;  %v1856_v28 = vld [vmem:[%s2258_s1 + $0x228] sm:$0xff]  }
  0x3a   : >> { %1651 = vmatpush3.bf16.msra.mxu1 %v1807_v29  ;;  %1632 = vmatprep.subr.bf16.mxu0 %v1879_v2  ;;  %v1857_v29 = vld [vmem:[%s2258_s1 + $0x220] sm:$0xff]  }
  0x3b   : >> { %1652 = vmatprep.subr.bf16.mxu1 %v1879_v2 }
  0x3d   : >> { %1633 = vmatpush3.bf16.msra.mxu0 %v1808_v30  ;;  %v1858_v30 = vld [vmem:[%s2258_s1 + $0x218] sm:$0xff]  }
  0x3e   : >> { %1653 = vmatpush3.bf16.msra.mxu1 %v1809_v31  ;;  %1634 = vmatprep.subr.bf16.mxu0 %v1879_v2  ;;  %v1859_v31 = vld [vmem:[%s2258_s1 + $0x210] sm:$0xff]  }
  0x3f   : >> { %1654 = vmatprep.subr.bf16.mxu1 %v1879_v2 }
  0x41   : >> { %1635 = vmatpush3.bf16.msra.mxu0 %v1810_v32  ;;  %v1860_v32 = vld [vmem:[%s2258_s1 + $0x208] sm:$0xff]  }
  0x42   : >> { %1655 = vmatpush3.bf16.msra.mxu1 %v1811_v33  ;;  %1636 = vmatprep.subr.bf16.mxu0 %v1879_v2  ;;  %v1862_v33 = vld [vmem:[%s1967_s16 + $0x8] ss:$0 sps:$4 sm:$0x66]   ;;  %s1501_s16 = sshll.u32 %s1877_s24, 1  ;;  %s178_s24 = sadd.s32 1, %s1877_s24  }
  0x43   : >> { %1656 = vmatprep.subr.bf16.mxu1 %v1879_v2  ;;  %s1205_s11 = scalar_lea.vmem %s1917_s20, %s1501_s16  ;;  %p175_p4 = scmp.ge.s32.totalorder %s178_s24, 4  }
  0x45   : >> { %1637 = vmatpush3.bf16.msra.mxu0 %v1812_v34  ;;  %v1861_v34 = vld [vmem:[%s2258_s1 + $0x200] sm:$0xff]  }
  0x46   : >> { %1657 = vmatpush3.bf16.msra.mxu1 %v1813_v35  ;;  %1638 = vmatprep.subr.bf16.mxu0 %v1879_v2  ;;  %v1104_v35 = vrot.slane %v1862_v33, 1 }
  0x47   : >> { %1658 = vmatprep.subr.bf16.mxu1 %v1879_v2 }
  0x49   : >> { %1639 = vmatpush3.bf16.msra.mxu0 %v1814_v36 }
  0x4a   : >> { %1659 = vmatpush3.bf16.msra.mxu1 %v1815_v37  ;;  %1640 = vmatprep.subr.bf16.mxu0 %v1879_v2 }
  0x4b   : >> { %1660 = vmatprep.subr.bf16.mxu1 %v1879_v2 }
  0x4d   : >> { %1641 = vmatpush3.bf16.msra.mxu0 %v1816_v39 }
  0x4e   : >> { %1661 = vmatpush3.bf16.msra.mxu1 %v1817_v40  ;;  %1666 = vmatprep.subr.bf16.mxu0 %v1879_v2 }
  0x4f   : >> { %1686 = vmatprep.subr.bf16.mxu1 %v1879_v2 }
  0x50   : >> { %1643 = vmatmul.mubr.bf16.vlgmr.msra.gmra.mxu0 %v424_v41 }
  0x51   : >> { %1667 = vmatpush3.bf16.msra.mxu0 %v1819_v42  ;;  %1663 = vmatmul.mubr.bf16.vlgmr.msra.gmra.mxu1 %v1345_v43 }
  0x52   : >> { %1687 = vmatpush3.bf16.msra.mxu1 %v1820_v44  ;;  %1668 = vmatprep.subr.bf16.mxu0 %v1879_v2 }
  0x53   : >> { %1688 = vmatprep.subr.bf16.mxu1 %v1879_v2  ;;  %1682 = vmatprep.mubr.msk.bf16.mxu0 %vm1880_vm0, %v1879_v2 }
  0x54   : >> { %1702 = vmatprep.mubr.msk.bf16.mxu1 %vm1880_vm0, %v1879_v2 }
  0x55   : >> { %1669 = vmatpush3.bf16.msra.mxu0 %v1821_v45 }
  0x56   : >> { %1689 = vmatpush3.bf16.msra.mxu1 %v1822_v46  ;;  %1670 = vmatprep.subr.bf16.mxu0 %v1879_v2 }
  0x57   : >> { %1690 = vmatprep.subr.bf16.mxu1 %v1879_v2 }
  0x59   : >> { %1671 = vmatpush3.bf16.msra.mxu0 %v1823_v47 }
  0x5a   : >> { %1691 = vmatpush3.bf16.msra.mxu1 %v1824_v48  ;;  %1672 = vmatprep.subr.bf16.mxu0 %v1879_v2 }
  0x5b   : >> { %1692 = vmatprep.subr.bf16.mxu1 %v1879_v2 }
  0x5d   : >> { %1673 = vmatpush3.bf16.msra.mxu0 %v1825_v49 }
  0x5e   : >> { %1693 = vmatpush3.bf16.msra.mxu1 %v1826_v50  ;;  %1674 = vmatprep.subr.bf16.mxu0 %v1879_v2 }
  0x5f   : >> { %1694 = vmatprep.subr.bf16.mxu1 %v1879_v2 }
  0x61   : >> { %1675 = vmatpush3.bf16.msra.mxu0 %v1827_v51 }
  0x62   : >> { %1695 = vmatpush3.bf16.msra.mxu1 %v1828_v52  ;;  %1676 = vmatprep.subr.bf16.mxu0 %v1879_v2 }
  0x63   : >> { %1696 = vmatprep.subr.bf16.mxu1 %v1879_v2 }
  0x65   : >> { %1677 = vmatpush3.bf16.msra.mxu0 %v1829_v54 }
  0x66   : >> { %1697 = vmatpush3.bf16.msra.mxu1 %v1830_v55  ;;  %1678 = vmatprep.subr.bf16.mxu0 %v1879_v2 }
  0x67   : >> { %1698 = vmatprep.subr.bf16.mxu1 %v1879_v2 }
  0x69   : >> { %1679 = vmatpush3.bf16.msra.mxu0 %v1831_v57 }
  0x6a   : >> { %1699 = vmatpush3.bf16.msra.mxu1 %v1832_v58  ;;  %1680 = vmatprep.subr.bf16.mxu0 %v1879_v2 }
  0x6b   : >> { %1700 = vmatprep.subr.bf16.mxu1 %v1879_v2 }
  0x6d   : >> { %1681 = vmatpush3.bf16.msra.mxu0 %v1833_v61 }
  0x6e   : >> { %1701 = vmatpush3.bf16.msra.mxu1 %v1834_v63  ;;  %1706 = vmatprep.subr.bf16.mxu0 %v1879_v2 }
  0x6f   : >> { %1726 = vmatprep.subr.bf16.mxu1 %v1879_v2 }
  0x70   : >> { %1683 = vmatmul.mubr.bf16.vlgmr.msra.gmra.mxu0 %v652_v1 }
  0x71   : >> { %1707 = vmatpush3.bf16.msra.mxu0 %v1836_v3  ;;  %1703 = vmatmul.mubr.bf16.vlgmr.msra.gmra.mxu1 %v764_v4 }
  0x72   : >> { %1727 = vmatpush3.bf16.msra.mxu1 %v1838_v5  ;;  %1708 = vmatprep.subr.bf16.mxu0 %v1879_v2 }
  0x73   : >> { %1728 = vmatprep.subr.bf16.mxu1 %v1879_v2  ;;  %1722 = vmatprep.mubr.msk.bf16.mxu0 %vm1880_vm0, %v1879_v2 }
  0x74   : >> { %1742 = vmatprep.mubr.msk.bf16.mxu1 %vm1880_vm0, %v1879_v2 }
  0x75   : >> { %1709 = vmatpush3.bf16.msra.mxu0 %v1839_v6 }
  0x76   : >> { %1729 = vmatpush3.bf16.msra.mxu1 %v1840_v7  ;;  %1710 = vmatprep.subr.bf16.mxu0 %v1879_v2 }
  0x77   : >> { %1730 = vmatprep.subr.bf16.mxu1 %v1879_v2 }
  0x79   : >> { %1711 = vmatpush3.bf16.msra.mxu0 %v1841_v8 }
  0x7a   : >> { %1731 = vmatpush3.bf16.msra.mxu1 %v1842_v9  ;;  %1712 = vmatprep.subr.bf16.mxu0 %v1879_v2 }
  0x7b   : >> { %1732 = vmatprep.subr.bf16.mxu1 %v1879_v2 }
  0x7d   : >> { %1713 = vmatpush3.bf16.msra.mxu0 %v1843_v10 }
  0x7e   : >> { %1733 = vmatpush3.bf16.msra.mxu1 %v1844_v11  ;;  %1714 = vmatprep.subr.bf16.mxu0 %v1879_v2 }
  0x7f   : >> { %1734 = vmatprep.subr.bf16.mxu1 %v1879_v2 }
  0x81   : >> { %1715 = vmatpush3.bf16.msra.mxu0 %v1845_v12 }
  0x82   : >> { %1735 = vmatpush3.bf16.msra.mxu1 %v1846_v13  ;;  %1716 = vmatprep.subr.bf16.mxu0 %v1879_v2 }
  0x83   : >> { %1736 = vmatprep.subr.bf16.mxu1 %v1879_v2 }
  0x85   : >> { %1717 = vmatpush3.bf16.msra.mxu0 %v1847_v14 }
  0x86   : >> { %1737 = vmatpush3.bf16.msra.mxu1 %v1848_v16  ;;  %1718 = vmatprep.subr.bf16.mxu0 %v1879_v2 }
  0x87   : >> { %1738 = vmatprep.subr.bf16.mxu1 %v1879_v2 }
  0x89   : >> { %1719 = vmatpush3.bf16.msra.mxu0 %v1849_v17 }
  0x8a   : >> { %1739 = vmatpush3.bf16.msra.mxu1 %v1850_v19  ;;  %1720 = vmatprep.subr.bf16.mxu0 %v1879_v2 }
  0x8b   : >> { %1740 = vmatprep.subr.bf16.mxu1 %v1879_v2 }
  0x8d   : >> { %1721 = vmatpush3.bf16.msra.mxu0 %v1851_v20 }
  0x8e   : >> { %1741 = vmatpush3.bf16.msra.mxu1 %v1852_v23  ;;  %1746 = vmatprep.subr.bf16.mxu0 %v1879_v2 }
  0x90   : >> { %1723 = vmatmul.mubr.bf16.vlgmr.msra.gmra.mxu0 %v1423_v24 }
  0x91   : >> { %1747 = vmatpush3.bf16.msra.mxu0 %v1853_v25  ;;  %1743 = vmatmul.mubr.bf16.vlgmr.msra.gmra.mxu1 %v992_v26 }
  0x92   : >> { %1748 = vmatprep.subr.bf16.mxu0 %v1879_v2  ;;  %1762 = vmatprep.mubr.msk.bf16.mxu0 %vm1880_vm0, %v1879_v2 }
  0x95   : >> { %1749 = vmatpush3.bf16.msra.mxu0 %v1855_v27 }
  0x96   : >> { %1750 = vmatprep.subr.bf16.mxu0 %v1879_v2 }
  0x99   : >> { %1751 = vmatpush3.bf16.msra.mxu0 %v1856_v28 }
  0x9a   : >> { %1752 = vmatprep.subr.bf16.mxu0 %v1879_v2 }
  0x9d   : >> { %1753 = vmatpush3.bf16.msra.mxu0 %v1857_v29 }
  0x9e   : >> { %1754 = vmatprep.subr.bf16.mxu0 %v1879_v2 }
  0xa1   : >> { %1755 = vmatpush3.bf16.msra.mxu0 %v1858_v30 }
  0xa2   : >> { %1756 = vmatprep.subr.bf16.mxu0 %v1879_v2 }
  0xa5   : >> { %1757 = vmatpush3.bf16.msra.mxu0 %v1859_v31 }
  0xa6   : >> { %1758 = vmatprep.subr.bf16.mxu0 %v1879_v2 }
  0xa9   : >> { %1759 = vmatpush3.bf16.msra.mxu0 %v1860_v32 }
  0xaa   : >> { %1760 = vmatprep.subr.bf16.mxu0 %v1879_v2 }
  0xad   : >> { %1761 = vmatpush3.bf16.msra.mxu0 %v1861_v34 }
  0xb0   : >> { %1763 = vmatmul.mubr.bf16.vlgmr.msra.gmra.mxu0 %v1104_v35 }
  0xf0   : >> { %v309_v36 = vpop.f32.mrf.mxu0 }
  0xf1   : >> { %v397_v37 = vpop.f32.mrf.mxu1 }
  0xf2   : >> { %v398_v38 = vadd.f32 %v397_v37, %v309_v36  ;;  %v1604_v39 = vpop.f32.mrf.mxu0 }
  0xf3   : >> { %v1624_v40 = vpop.f32.mrf.mxu1 }
  0xf4   : >> { %v312_v41 = vpop.f32.mrf.mxu0 }
  0xf5   : >> { %v400_v42 = vpop.f32.mrf.mxu1 }
  0xf6   : >> { %v1605_v43 = vpop.f32.mrf.mxu0 }
  0xf7   : >> { %v1625_v44 = vpop.f32.mrf.mxu1 }
 0x110   : >> { %v508_v45 = vpop.f32.mrf.mxu0 }
 0x111   : >> { %v514_v46 = vadd.f32 %v508_v45, %v398_v38  ;;  %v618_v47 = vpop.f32.mrf.mxu1 }
 0x112   : >> { %v1644_v48 = vpop.f32.mrf.mxu0 }
 0x113   : >> { %v624_v49 = vadd.f32 %v618_v47, %v514_v46  ;;  %v1664_v50 = vpop.f32.mrf.mxu1 }
 0x114   : >> { %v511_v51 = vpop.f32.mrf.mxu0 }
 0x115   : >> { %v621_v2 = vpop.f32.mrf.mxu1 }
 0x116   : >> { %v1645_v52 = vpop.f32.mrf.mxu0 }
 0x117   : >> { %v1665_v53 = vpop.f32.mrf.mxu1 }
 0x130   : >> { %v736_v54 = vpop.f32.mrf.mxu0 }
 0x131   : >> { %v848_v55 = vpop.f32.mrf.mxu1  ;;  %v742_v8 = vadd.f32 %v736_v54, %v624_v49 }
 0x132   : >> { %v1684_v56 = vpop.f32.mrf.mxu0 }
 0x133   : >> { %v1704_v57 = vpop.f32.mrf.mxu1  ;;  %v854_v9 = vadd.f32 %v848_v55, %v742_v8 }
 0x134   : >> { %v739_v58 = vpop.f32.mrf.mxu0 }
 0x135   : >> { %v851_v59 = vpop.f32.mrf.mxu1 }
 0x136   : >> { %v1685_v60 = vpop.f32.mrf.mxu0 }
 0x137   : >> { %v1705_v61 = vpop.f32.mrf.mxu1 }
 0x150   : >> { %v958_v62 = vpop.f32.mrf.mxu0 }
 0x151   : >> { %v1076_v63 = vpop.f32.mrf.mxu1  ;;  %v964_v10 = vadd.f32 %v958_v62, %v854_v9 }
 0x152   : >> { %v1724_v1 = vpop.f32.mrf.mxu0 }
 0x153   : >> { %v1744_v3 = vpop.f32.mrf.mxu1  ;;  %v1082_v11 = vadd.f32 %v1076_v63, %v964_v10 }
 0x154   : >> { %v961_v4 = vpop.f32.mrf.mxu0 }
 0x155   : >> { %v1079_v5 = vpop.f32.mrf.mxu1 }
 0x156   : >> { %v1725_v6 = vpop.f32.mrf.mxu0 }
 0x157   : >> { %v1745_v7 = vpop.f32.mrf.mxu1 }
 0x170   : >> { %v1188_v12 = vpop.f32.mrf.mxu0 }
 0x171   : >> { %v1194_v13 = vadd.f32 %v1188_v12, %v1082_v11 }
 0x172   : >> { %v1764_v14 = vpop.f32.mrf.mxu0 }
 0x173   : >> { %v1201_v15 = vadd.f32 %v1912_v0, %v1194_v13 }
 0x174   : >> { %v1191_v16 = vpop.f32.mrf.mxu0 }
 0x175   : >> { %v1202_v17 = vmax.f32 %v1201_v15, 0.0  ;;  %177 = sbr.rel (!%p175_p4) target bundleno = 15 (0xf), region = 81 }
 0x176   : >> { %v1765_v18 = vpop.f32.mrf.mxu0 }
 0x177   : >> { %v1203_v19 = vpack.c.bf16 %v1202_v17, %v1202_v17 }
 0x179   : >> { %1206 = vst [vmem:[%s1205_s11] sm:$0x3] %v1203_v19 }
 0x17a PF: > { %s13_s12 = sadd.s32 1, %s1873_s12  }
 0x17b   : > { %p10_p5 = scmp.ge.s32.totalorder %s13_s12, 4  }
 0x17d   :  { %12 = sbr.rel (!%p10_p5) target bundleno = 1 (0x1), region = 92 }

// kernel: forward.16
= control target key start
LH: loop header
LB: loop body
LE: loop exit
PB: predicated region body
PF: predicated region fallthrough
CT: control target
= control target key end

     0   :  { %s1916_s12 = smov 0   ;;  %s2278_s0 = inlined_call_operand.vmem [shape: bf16[2,10,10,128], index: 0, kind: input, shape index: {}]   ;;  %s2279_s1 = inlined_call_operand.vmem [shape: bf16[9,128,128], index: 1, kind: input, shape index: {}]   ;;  %s2280_s2 = inlined_call_operand.vmem [shape: f32[1,128], index: 2, kind: input, shape index: {}]   ;;  %s2281_s3 = inlined_call_operand.vmem [shape: bf16[2,8,8,128], index: 3, kind: output, shape index: {}]  }
   0x1 LB: > { %s1288_s13 = sadd.s32 4294967295, %s1888_s12   ;;  %p1292_p0 = scmp.ge.s32.totalorder %s1888_s12, 1  ;;  %s1888_s12 = sphi %s1916_s12, %s13_s12  }
   0x2   : > { %p137_p1 = scmp.lt.s32.totalorder %s1888_s12, 3 }
   0x4   : > { %p138_p2 = pnand %p1292_p0, %p137_p1 }
   0x5   : > { %p161_p3 = scmp.lt.s32.totalorder (!%p138_p2), %s1288_s13, 1  ;;  %s1939_s24 = smov (!%p138_p2), 0  }
   0x6   : > { %141 = sbr.rel (%p138_p2) target bundleno = 378 (0x17a), region = 32 }
   0xb   : > { %v1927_v0 = vld [vmem:[%s2280_s2] ss:$0 sm:$0xff]  ;;  %s2283_s13 = smov (!%p161_p3, %s1288_s13), 1 }
   0xc   : > { %s1781_s16 = smul.u32 80, %s2283_s13  ;;  %s1518_s17 = sshll.u32 %s2283_s13, 5 }
   0xd   : > { %s1932_s20 = scalar_lea.vmem %s2281_s3, %s1518_s17 }
   0xe   : > { %s1937_s23 = scalar_lea.vmem %s2278_s0, %s1781_s16 }
   0xf LB: >> { %v1800_v1 = vld [vmem:[%s2279_s1 + $0x78] sm:$0xff]   ;;  %v1894_v2 = vmov 0.0   ;;  %v1802_v4 = vld [vmem:[%s2279_s1 + $0x70] sm:$0xff]   ;;  %vm1895_vm0 = vmmov 0   ;;  %v1804_v6 = vld [vmem:[%s2279_s1 + $0x68] sm:$0xff]   ;;  %s1519_s13 = sshll.u32 %s1892_s24, 3  ;;  %s1892_s24 = sphi %s1939_s24, %s178_s24  }
  0x10   : >> { %1601 = vmatprep.subr.bf16.mxu0 %v1894_v2  ;;  %1621 = vmatprep.subr.bf16.mxu1 %v1894_v2  ;;  %v1801_v3 = vld [vmem:[%s2279_s1 + $0x38] sm:$0xff]   ;;  %v1803_v5 = vld [vmem:[%s2279_s1 + $0x30] sm:$0xff]   ;;  %v1805_v7 = vld [vmem:[%s2279_s1 + $0x28] sm:$0xff]   ;;  %s1982_s16 = scalar_lea.vmem %s1937_s23, %s1519_s13 }
  0x11   : >> { %1602 = vmatpush3.bf16.msra.mxu0 %v1800_v1  ;;  %1617 = vmatprep.mubr.msk.bf16.mxu0 %vm1895_vm0, %v1894_v2  ;;  %v1806_v8 = vld [vmem:[%s2279_s1 + $0x60] sm:$0xff]   ;;  %v1808_v10 = vld [vmem:[%s2279_s1 + $0x58] sm:$0xff]   ;;  %v1810_v15 = vld [vmem:[%s2279_s1 + $0x50] sm:$0xff]  }
  0x12   : >> { %1622 = vmatpush3.bf16.msra.mxu1 %v1801_v3  ;;  %1603 = vmatprep.subr.bf16.mxu0 %v1894_v2  ;;  %v1807_v9 = vld [vmem:[%s2279_s1 + $0x20] sm:$0xff]   ;;  %v1809_v11 = vld [vmem:[%s2279_s1 + $0x18] sm:$0xff]   ;;  %v1811_v16 = vld [vmem:[%s2279_s1 + $0x10] sm:$0xff]  }
  0x13   : >> { %1623 = vmatprep.subr.bf16.mxu1 %v1894_v2  ;;  %1637 = vmatprep.mubr.msk.bf16.mxu1 %vm1895_vm0, %v1894_v2  ;;  %v182_v12 = vld [vmem:[%s1982_s16] sm:$0xf]  ;;  %v1994_v13 = vld [vmem:[%s1982_s16 + $0x4] sm:$0x1]  ;;  %v1812_v18 = vld [vmem:[%s2279_s1 + $0x48] sm:$0xff]  }
  0x14   : >> { %v1314_v14 = vcombine.low %v182_v12, %v1994_v13  ;;  %v1813_v19 = vld [vmem:[%s2279_s1 + $0x8] sm:$0xff]   ;;  %v1814_v22 = vld [vmem:[%s2279_s1 + $0x40] sm:$0xff]   ;;  %v1817_v25 = vld [vmem:[%s2279_s1 + $0xb8] sm:$0xff]  }
  0x15   : >> { %1604 = vmatpush3.bf16.msra.mxu0 %v1802_v4  ;;  %v1815_v23 = vld [vmem:[%s2279_s1] sm:$0xff]   ;;  %v1818_v26 = vld [vmem:[%s2279_s1 + $0xf8] sm:$0xff]   ;;  %v1819_v27 = vld [vmem:[%s2279_s1 + $0xb0] sm:$0xff]  }
  0x16   : >> { %1624 = vmatpush3.bf16.msra.mxu1 %v1803_v5  ;;  %1605 = vmatprep.subr.bf16.mxu0 %v1894_v2  ;;  %v225_v17 = vshll.u32 %v1314_v14, 16  ;;  %v223_v20 = vshrl.u32 %v1314_v14, 16  ;;  %v1820_v28 = vld [vmem:[%s2279_s1 + $0xf0] sm:$0xff]   ;;  %v1821_v29 = vld [vmem:[%s2279_s1 + $0xa8] sm:$0xff]   ;;  %v1823_v31 = vld [vmem:[%s2279_s1 + $0xa0] sm:$0xff]  }
  0x17   : >> { %1625 = vmatprep.subr.bf16.mxu1 %v1894_v2  ;;  %v1822_v30 = vld [vmem:[%s2279_s1 + $0xe8] sm:$0xff]   ;;  %v1824_v32 = vld [vmem:[%s2279_s1 + $0xe0] sm:$0xff]   ;;  %v1825_v33 = vld [vmem:[%s2279_s1 + $0x98] sm:$0xff]  }
  0x18   : >> { %v227_v21 = vrot.slane %v225_v17, 1  ;;  %v1826_v34 = vld [vmem:[%s2279_s1 + $0xd8] sm:$0xff]   ;;  %v1827_v35 = vld [vmem:[%s2279_s1 + $0x90] sm:$0xff]   ;;  %v1829_v37 = vld [vmem:[%s2279_s1 + $0x88] sm:$0xff]  }
  0x19   : >> { %1606 = vmatpush3.bf16.msra.mxu0 %v1804_v6  ;;  %v1828_v36 = vld [vmem:[%s2279_s1 + $0xd0] sm:$0xff]   ;;  %v1830_v38 = vld [vmem:[%s2279_s1 + $0xc8] sm:$0xff]   ;;  %v406_v39 = vld [vmem:[%s1982_s16] sm:$0xe] }
  0x1a   : >> { %1626 = vmatpush3.bf16.msra.mxu1 %v1805_v7  ;;  %1607 = vmatprep.subr.bf16.mxu0 %v1894_v2  ;;  %v228_v24 = vor.u32 %v227_v21, %v223_v20  ;;  %v1347_v40 = vcombine.low %v406_v39, %v1994_v13  ;;  %v1831_v41 = vld [vmem:[%s2279_s1 + $0x80] sm:$0xff]   ;;  %v1834_v44 = vld [vmem:[%s2279_s1 + $0x138] sm:$0xff]   ;;  %v1357_v45 = vld [vmem:[%s1982_s16 + $0x8] sm:$0xf] }
  0x1b   : >> { %1627 = vmatprep.subr.bf16.mxu1 %v1894_v2  ;;  %v1832_v42 = vld [vmem:[%s2279_s1 + $0xc0] sm:$0xff]   ;;  %v1835_v46 = vld [vmem:[%s2279_s1 + $0x178] sm:$0xff]   ;;  %v1836_v47 = vld [vmem:[%s2279_s1 + $0x130] sm:$0xff]  }
  0x1c   : >> { %v427_v43 = vrot.slane %v1347_v40, 1  ;;  %v1837_v48 = vld [vmem:[%s2279_s1 + $0x170] sm:$0xff]   ;;  %v1838_v49 = vld [vmem:[%s2279_s1 + $0x128] sm:$0xff]   ;;  %v1840_v51 = vld [vmem:[%s2279_s1 + $0x120] sm:$0xff]  }
  0x1d   : >> { %1608 = vmatpush3.bf16.msra.mxu0 %v1806_v8  ;;  %v1839_v50 = vld [vmem:[%s2279_s1 + $0x168] sm:$0xff]   ;;  %v1841_v52 = vld [vmem:[%s2279_s1 + $0x160] sm:$0xff]   ;;  %v1842_v53 = vld [vmem:[%s2279_s1 + $0x118] sm:$0xff]  }
  0x1e   : >> { %1628 = vmatpush3.bf16.msra.mxu1 %v1807_v9  ;;  %1609 = vmatprep.subr.bf16.mxu0 %v1894_v2  ;;  %v1382_v54 = vld [vmem:[%s1982_s16 + $0x8] sm:$0xf]  ;;  %v1383_v55 = vld [vmem:[%s1982_s16 + $0xc] sm:$0x1]  ;;  %v1843_v56 = vld [vmem:[%s2279_s1 + $0x158] sm:$0xff]  }
  0x1f   : >> { %1629 = vmatprep.subr.bf16.mxu1 %v1894_v2  ;;  %v1400_v57 = vcombine.low %v1382_v54, %v1383_v55  ;;  %v1844_v58 = vld [vmem:[%s2279_s1 + $0x110] sm:$0xff]   ;;  %v1846_v61 = vld [vmem:[%s2279_s1 + $0x108] sm:$0xff]   ;;  %v1848_v4 = vld [vmem:[%s2279_s1 + $0x100] sm:$0xff]  }
  0x20   : >> { %v1845_v59 = vld [vmem:[%s2279_s1 + $0x150] sm:$0xff]   ;;  %v1847_v62 = vld [vmem:[%s2279_s1 + $0x148] sm:$0xff]   ;;  %v1849_v6 = vld [vmem:[%s2279_s1 + $0x140] sm:$0xff]  }
  0x21   : >> { %1610 = vmatpush3.bf16.msra.mxu0 %v1808_v10  ;;  %v656_v60 = vshll.u32 %v1400_v57, 16  ;;  %v1409_v63 = vld [vmem:[%s1982_s16 + $0x8] sm:$0xe]  ;;  %v654_v1 = vshrl.u32 %v1400_v57, 16  ;;  %v1851_v8 = vld [vmem:[%s2279_s1 + $0x1b8] sm:$0xff]   ;;  %v1862_v21 = vld [vmem:[%s2279_s1 + $0x190] sm:$0xff]  }
  0x22   : >> { %1630 = vmatpush3.bf16.msra.mxu1 %v1809_v11  ;;  %1611 = vmatprep.subr.bf16.mxu0 %v1894_v2  ;;  %v1426_v5 = vcombine.low %v1409_v63, %v1383_v55  ;;  %v1853_v10 = vld [vmem:[%s2279_s1 + $0x1f8] sm:$0xff]   ;;  %v1854_v11 = vld [vmem:[%s2279_s1 + $0x1b0] sm:$0xff]   ;;  %v1856_v13 = vld [vmem:[%s2279_s1 + $0x1a8] sm:$0xff]  }
  0x23   : >> { %1631 = vmatprep.subr.bf16.mxu1 %v1894_v2  ;;  %v658_v3 = vrot.slane %v656_v60, 1  ;;  %v1857_v14 = vld [vmem:[%s2279_s1 + $0x1e8] sm:$0xff]   ;;  %v1860_v17 = vld [vmem:[%s2279_s1 + $0x198] sm:$0xff]   ;;  %v1462_v20 = vld [vmem:[%s1982_s16 + $0x14] sm:$0x1] }
  0x24   : >> { %v771_v9 = vrot.slane %v1426_v5, 1  ;;  %v1875_v39 = vld [vmem:[%s2279_s1 + $0x208] sm:$0xff]   ;;  %v1488_v40 = vld [vmem:[%s1982_s16 + $0x10] sm:$0xe] }
  0x25   : >> { %1612 = vmatpush3.bf16.msra.mxu0 %v1810_v15  ;;  %v659_v7 = vor.u32 %v658_v3, %v654_v1  ;;  %v1858_v15 = vld [vmem:[%s2279_s1 + $0x1a0] sm:$0xff]  }
  0x26   : >> { %1632 = vmatpush3.bf16.msra.mxu1 %v1811_v16  ;;  %1613 = vmatprep.subr.bf16.mxu0 %v1894_v2  ;;  %v1859_v16 = vld [vmem:[%s2279_s1 + $0x1e0] sm:$0xff]  }
  0x27   : >> { %1633 = vmatprep.subr.bf16.mxu1 %v1894_v2 }
  0x29   : >> { %1614 = vmatpush3.bf16.msra.mxu0 %v1812_v18  ;;  %v1861_v18 = vld [vmem:[%s2279_s1 + $0x1d8] sm:$0xff]  }
  0x2a   : >> { %1634 = vmatpush3.bf16.msra.mxu1 %v1813_v19  ;;  %1615 = vmatprep.subr.bf16.mxu0 %v1894_v2  ;;  %v1461_v19 = vld [vmem:[%s1982_s16 + $0x10] sm:$0xf] }
  0x2b   : >> { %1635 = vmatprep.subr.bf16.mxu1 %v1894_v2 }
  0x2d   : >> { %1616 = vmatpush3.bf16.msra.mxu0 %v1814_v22  ;;  %v1479_v22 = vcombine.low %v1461_v19, %v1462_v20 }
  0x2e   : >> { %1636 = vmatpush3.bf16.msra.mxu1 %v1815_v23  ;;  %1641 = vmatprep.subr.bf16.mxu0 %v1894_v2  ;;  %v1863_v23 = vld [vmem:[%s2279_s1 + $0x1d0] sm:$0xff]  }
  0x2f   : >> { %1661 = vmatprep.subr.bf16.mxu1 %v1894_v2 }
  0x30   : >> { %1618 = vmatmul.mubr.bf16.vlgmr.msra.gmra.mxu0 %v228_v24  ;;  %v1864_v24 = vld [vmem:[%s2279_s1 + $0x188] sm:$0xff]  }
  0x31   : >> { %1638 = vmatmul.mubr.bf16.vlgmr.msra.gmra.mxu1 %v182_v12  ;;  %1642 = vmatpush3.bf16.msra.mxu0 %v1817_v25  ;;  %v1855_v12 = vld [vmem:[%s2279_s1 + $0x1f0] sm:$0xff]   ;;  %v1000_v25 = vshll.u32 %v1479_v22, 16 }
  0x32   : >> { %1662 = vmatpush3.bf16.msra.mxu1 %v1818_v26  ;;  %1643 = vmatprep.subr.bf16.mxu0 %v1894_v2  ;;  %v1865_v26 = vld [vmem:[%s2279_s1 + $0x1c8] sm:$0xff]  }
  0x33   : >> { %1663 = vmatprep.subr.bf16.mxu1 %v1894_v2  ;;  %1657 = vmatprep.mubr.msk.bf16.mxu0 %vm1895_vm0, %v1894_v2 }
  0x34   : >> { %1677 = vmatprep.mubr.msk.bf16.mxu1 %vm1895_vm0, %v1894_v2 }
  0x35   : >> { %1644 = vmatpush3.bf16.msra.mxu0 %v1819_v27  ;;  %v1866_v27 = vld [vmem:[%s2279_s1 + $0x180] sm:$0xff]  }
  0x36   : >> { %1664 = vmatpush3.bf16.msra.mxu1 %v1820_v28  ;;  %1645 = vmatprep.subr.bf16.mxu0 %v1894_v2  ;;  %v998_v28 = vshrl.u32 %v1479_v22, 16 }
  0x37   : >> { %1665 = vmatprep.subr.bf16.mxu1 %v1894_v2 }
  0x39   : >> { %1646 = vmatpush3.bf16.msra.mxu0 %v1821_v29  ;;  %v1002_v29 = vrot.slane %v1000_v25, 1 }
  0x3a   : >> { %1666 = vmatpush3.bf16.msra.mxu1 %v1822_v30  ;;  %1647 = vmatprep.subr.bf16.mxu0 %v1894_v2  ;;  %v1867_v30 = vld [vmem:[%s2279_s1 + $0x1c0] sm:$0xff]  }
  0x3b   : >> { %1667 = vmatprep.subr.bf16.mxu1 %v1894_v2 }
  0x3d   : >> { %1648 = vmatpush3.bf16.msra.mxu0 %v1823_v31  ;;  %v1436_v31 = vld [vmem:[%s1982_s16 + $0x10] sm:$0xf]  ;;  %s1515_s16 = sshll.u32 %s1892_s24, 2  ;;  %s178_s24 = sadd.s32 1, %s1892_s24  }
  0x3e   : >> { %1668 = vmatpush3.bf16.msra.mxu1 %v1824_v32  ;;  %1649 = vmatprep.subr.bf16.mxu0 %v1894_v2  ;;  %v1868_v32 = vld [vmem:[%s2279_s1 + $0x238] sm:$0xff]   ;;  %s1216_s11 = scalar_lea.vmem %s1932_s20, %s1515_s16  ;;  %p175_p4 = scmp.ge.s32.totalorder %s178_s24, 8  }
  0x3f   : >> { %1669 = vmatprep.subr.bf16.mxu1 %v1894_v2 }
  0x41   : >> { %1650 = vmatpush3.bf16.msra.mxu0 %v1825_v33  ;;  %v1003_v33 = vor.u32 %v1002_v29, %v998_v28 }
  0x42   : >> { %1670 = vmatpush3.bf16.msra.mxu1 %v1826_v34  ;;  %1651 = vmatprep.subr.bf16.mxu0 %v1894_v2  ;;  %v1870_v34 = vld [vmem:[%s2279_s1 + $0x230] sm:$0xff]  }
  0x43   : >> { %1671 = vmatprep.subr.bf16.mxu1 %v1894_v2 }
  0x45   : >> { %1652 = vmatpush3.bf16.msra.mxu0 %v1827_v35  ;;  %v1871_v35 = vld [vmem:[%s2279_s1 + $0x228] sm:$0xff]  }
  0x46   : >> { %1672 = vmatpush3.bf16.msra.mxu1 %v1828_v36  ;;  %1653 = vmatprep.subr.bf16.mxu0 %v1894_v2  ;;  %v1872_v36 = vld [vmem:[%s2279_s1 + $0x220] sm:$0xff]  }
  0x47   : >> { %1673 = vmatprep.subr.bf16.mxu1 %v1894_v2 }
  0x49   : >> { %1654 = vmatpush3.bf16.msra.mxu0 %v1829_v37  ;;  %v1873_v37 = vld [vmem:[%s2279_s1 + $0x218] sm:$0xff]  }
  0x4a   : >> { %1674 = vmatpush3.bf16.msra.mxu1 %v1830_v38  ;;  %1655 = vmatprep.subr.bf16.mxu0 %v1894_v2  ;;  %v1874_v38 = vld [vmem:[%s2279_s1 + $0x210] sm:$0xff]  }
  0x4b   : >> { %1675 = vmatprep.subr.bf16.mxu1 %v1894_v2 }
  0x4d   : >> { %1656 = vmatpush3.bf16.msra.mxu0 %v1831_v41  ;;  %v1505_v41 = vcombine.low %v1488_v40, %v1462_v20 }
  0x4e   : >> { %1676 = vmatpush3.bf16.msra.mxu1 %v1832_v42  ;;  %1681 = vmatprep.subr.bf16.mxu0 %v1894_v2  ;;  %v1876_v42 = vld [vmem:[%s2279_s1 + $0x200] sm:$0xff]  }
  0x4f   : >> { %1701 = vmatprep.subr.bf16.mxu1 %v1894_v2 }
  0x50   : >> { %1658 = vmatmul.mubr.bf16.vlgmr.msra.gmra.mxu0 %v427_v43  ;;  %v1115_v43 = vrot.slane %v1505_v41, 1 }
  0x51   : >> { %1682 = vmatpush3.bf16.msra.mxu0 %v1834_v44  ;;  %1678 = vmatmul.mubr.bf16.vlgmr.msra.gmra.mxu1 %v1357_v45 }
  0x52   : >> { %1702 = vmatpush3.bf16.msra.mxu1 %v1835_v46  ;;  %1683 = vmatprep.subr.bf16.mxu0 %v1894_v2 }
  0x53   : >> { %1703 = vmatprep.subr.bf16.mxu1 %v1894_v2  ;;  %1697 = vmatprep.mubr.msk.bf16.mxu0 %vm1895_vm0, %v1894_v2 }
  0x54   : >> { %1717 = vmatprep.mubr.msk.bf16.mxu1 %vm1895_vm0, %v1894_v2 }
  0x55   : >> { %1684 = vmatpush3.bf16.msra.mxu0 %v1836_v47 }
  0x56   : >> { %1704 = vmatpush3.bf16.msra.mxu1 %v1837_v48  ;;  %1685 = vmatprep.subr.bf16.mxu0 %v1894_v2 }
  0x57   : >> { %1705 = vmatprep.subr.bf16.mxu1 %v1894_v2 }
  0x59   : >> { %1686 = vmatpush3.bf16.msra.mxu0 %v1838_v49 }
  0x5a   : >> { %1706 = vmatpush3.bf16.msra.mxu1 %v1839_v50  ;;  %1687 = vmatprep.subr.bf16.mxu0 %v1894_v2 }
  0x5b   : >> { %1707 = vmatprep.subr.bf16.mxu1 %v1894_v2 }
  0x5d   : >> { %1688 = vmatpush3.bf16.msra.mxu0 %v1840_v51 }
  0x5e   : >> { %1708 = vmatpush3.bf16.msra.mxu1 %v1841_v52  ;;  %1689 = vmatprep.subr.bf16.mxu0 %v1894_v2 }
  0x5f   : >> { %1709 = vmatprep.subr.bf16.mxu1 %v1894_v2 }
  0x61   : >> { %1690 = vmatpush3.bf16.msra.mxu0 %v1842_v53 }
  0x62   : >> { %1710 = vmatpush3.bf16.msra.mxu1 %v1843_v56  ;;  %1691 = vmatprep.subr.bf16.mxu0 %v1894_v2 }
  0x63   : >> { %1711 = vmatprep.subr.bf16.mxu1 %v1894_v2 }
  0x65   : >> { %1692 = vmatpush3.bf16.msra.mxu0 %v1844_v58 }
  0x66   : >> { %1712 = vmatpush3.bf16.msra.mxu1 %v1845_v59  ;;  %1693 = vmatprep.subr.bf16.mxu0 %v1894_v2 }
  0x67   : >> { %1713 = vmatprep.subr.bf16.mxu1 %v1894_v2 }
  0x69   : >> { %1694 = vmatpush3.bf16.msra.mxu0 %v1846_v61 }
  0x6a   : >> { %1714 = vmatpush3.bf16.msra.mxu1 %v1847_v62  ;;  %1695 = vmatprep.subr.bf16.mxu0 %v1894_v2 }
  0x6b   : >> { %1715 = vmatprep.subr.bf16.mxu1 %v1894_v2 }
  0x6d   : >> { %1696 = vmatpush3.bf16.msra.mxu0 %v1848_v4 }
  0x6e   : >> { %1716 = vmatpush3.bf16.msra.mxu1 %v1849_v6  ;;  %1721 = vmatprep.subr.bf16.mxu0 %v1894_v2 }
  0x6f   : >> { %1741 = vmatprep.subr.bf16.mxu1 %v1894_v2 }
  0x70   : >> { %1698 = vmatmul.mubr.bf16.vlgmr.msra.gmra.mxu0 %v659_v7 }
  0x71   : >> { %1722 = vmatpush3.bf16.msra.mxu0 %v1851_v8  ;;  %1718 = vmatmul.mubr.bf16.vlgmr.msra.gmra.mxu1 %v771_v9 }
  0x72   : >> { %1742 = vmatpush3.bf16.msra.mxu1 %v1853_v10  ;;  %1723 = vmatprep.subr.bf16.mxu0 %v1894_v2 }
  0x73   : >> { %1743 = vmatprep.subr.bf16.mxu1 %v1894_v2  ;;  %1737 = vmatprep.mubr.msk.bf16.mxu0 %vm1895_vm0, %v1894_v2 }
  0x74   : >> { %1757 = vmatprep.mubr.msk.bf16.mxu1 %vm1895_vm0, %v1894_v2 }
  0x75   : >> { %1724 = vmatpush3.bf16.msra.mxu0 %v1854_v11 }
  0x76   : >> { %1744 = vmatpush3.bf16.msra.mxu1 %v1855_v12  ;;  %1725 = vmatprep.subr.bf16.mxu0 %v1894_v2 }
  0x77   : >> { %1745 = vmatprep.subr.bf16.mxu1 %v1894_v2 }
  0x79   : >> { %1726 = vmatpush3.bf16.msra.mxu0 %v1856_v13 }
  0x7a   : >> { %1746 = vmatpush3.bf16.msra.mxu1 %v1857_v14  ;;  %1727 = vmatprep.subr.bf16.mxu0 %v1894_v2 }
  0x7b   : >> { %1747 = vmatprep.subr.bf16.mxu1 %v1894_v2 }
  0x7d   : >> { %1728 = vmatpush3.bf16.msra.mxu0 %v1858_v15 }
  0x7e   : >> { %1748 = vmatpush3.bf16.msra.mxu1 %v1859_v16  ;;  %1729 = vmatprep.subr.bf16.mxu0 %v1894_v2 }
  0x7f   : >> { %1749 = vmatprep.subr.bf16.mxu1 %v1894_v2 }
  0x81   : >> { %1730 = vmatpush3.bf16.msra.mxu0 %v1860_v17 }
  0x82   : >> { %1750 = vmatpush3.bf16.msra.mxu1 %v1861_v18  ;;  %1731 = vmatprep.subr.bf16.mxu0 %v1894_v2 }
  0x83   : >> { %1751 = vmatprep.subr.bf16.mxu1 %v1894_v2 }
  0x85   : >> { %1732 = vmatpush3.bf16.msra.mxu0 %v1862_v21 }
  0x86   : >> { %1752 = vmatpush3.bf16.msra.mxu1 %v1863_v23  ;;  %1733 = vmatprep.subr.bf16.mxu0 %v1894_v2 }
  0x87   : >> { %1753 = vmatprep.subr.bf16.mxu1 %v1894_v2 }
  0x89   : >> { %1734 = vmatpush3.bf16.msra.mxu0 %v1864_v24 }
  0x8a   : >> { %1754 = vmatpush3.bf16.msra.mxu1 %v1865_v26  ;;  %1735 = vmatprep.subr.bf16.mxu0 %v1894_v2 }
  0x8b   : >> { %1755 = vmatprep.subr.bf16.mxu1 %v1894_v2 }
  0x8d   : >> { %1736 = vmatpush3.bf16.msra.mxu0 %v1866_v27 }
  0x8e   : >> { %1756 = vmatpush3.bf16.msra.mxu1 %v1867_v30  ;;  %1761 = vmatprep.subr.bf16.mxu0 %v1894_v2 }
  0x90   : >> { %1738 = vmatmul.mubr.bf16.vlgmr.msra.gmra.mxu0 %v1436_v31 }
  0x91   : >> { %1762 = vmatpush3.bf16.msra.mxu0 %v1868_v32  ;;  %1758 = vmatmul.mubr.bf16.vlgmr.msra.gmra.mxu1 %v1003_v33 }
  0x92   : >> { %1763 = vmatprep.subr.bf16.mxu0 %v1894_v2  ;;  %1777 = vmatprep.mubr.msk.bf16.mxu0 %vm1895_vm0, %v1894_v2 }
  0x95   : >> { %1764 = vmatpush3.bf16.msra.mxu0 %v1870_v34 }
  0x96   : >> { %1765 = vmatprep.subr.bf16.mxu0 %v1894_v2 }
  0x99   : >> { %1766 = vmatpush3.bf16.msra.mxu0 %v1871_v35 }
  0x9a   : >> { %1767 = vmatprep.subr.bf16.mxu0 %v1894_v2 }
  0x9d   : >> { %1768 = vmatpush3.bf16.msra.mxu0 %v1872_v36 }
  0x9e   : >> { %1769 = vmatprep.subr.bf16.mxu0 %v1894_v2 }
  0xa1   : >> { %1770 = vmatpush3.bf16.msra.mxu0 %v1873_v37 }
  0xa2   : >> { %1771 = vmatprep.subr.bf16.mxu0 %v1894_v2 }
  0xa5   : >> { %1772 = vmatpush3.bf16.msra.mxu0 %v1874_v38 }
  0xa6   : >> { %1773 = vmatprep.subr.bf16.mxu0 %v1894_v2 }
  0xa9   : >> { %1774 = vmatpush3.bf16.msra.mxu0 %v1875_v39 }
  0xaa   : >> { %1775 = vmatprep.subr.bf16.mxu0 %v1894_v2 }
  0xad   : >> { %1776 = vmatpush3.bf16.msra.mxu0 %v1876_v42 }
  0xb0   : >> { %1778 = vmatmul.mubr.bf16.vlgmr.msra.gmra.mxu0 %v1115_v43 }
  0xf0   : >> { %v312_v44 = vpop.f32.mrf.mxu0 }
  0xf1   : >> { %v400_v45 = vpop.f32.mrf.mxu1 }
  0xf2   : >> { %v401_v46 = vadd.f32 %v400_v45, %v312_v44  ;;  %v1619_v47 = vpop.f32.mrf.mxu0 }
  0xf3   : >> { %v1639_v48 = vpop.f32.mrf.mxu1 }
  0xf4   : >> { %v315_v49 = vpop.f32.mrf.mxu0 }
  0xf5   : >> { %v403_v50 = vpop.f32.mrf.mxu1 }
  0xf6   : >> { %v1620_v51 = vpop.f32.mrf.mxu0 }
  0xf7   : >> { %v1640_v52 = vpop.f32.mrf.mxu1 }
 0x110   : >> { %v511_v53 = vpop.f32.mrf.mxu0 }
 0x111   : >> { %v517_v54 = vadd.f32 %v511_v53, %v401_v46  ;;  %v622_v55 = vpop.f32.mrf.mxu1 }
 0x112   : >> { %v1659_v56 = vpop.f32.mrf.mxu0 }
 0x113   : >> { %v628_v57 = vadd.f32 %v622_v55, %v517_v54  ;;  %v1679_v58 = vpop.f32.mrf.mxu1 }
 0x114   : >> { %v514_v59 = vpop.f32.mrf.mxu0 }
 0x115   : >> { %v625_v2 = vpop.f32.mrf.mxu1 }
 0x116   : >> { %v1660_v60 = vpop.f32.mrf.mxu0 }
 0x117   : >> { %v1680_v61 = vpop.f32.mrf.mxu1 }
 0x130   : >> { %v743_v62 = vpop.f32.mrf.mxu0 }
 0x131   : >> { %v855_v63 = vpop.f32.mrf.mxu1  ;;  %v749_v16 = vadd.f32 %v743_v62, %v628_v57 }
 0x132   : >> { %v1699_v1 = vpop.f32.mrf.mxu0 }
 0x133   : >> { %v1719_v3 = vpop.f32.mrf.mxu1  ;;  %v861_v17 = vadd.f32 %v855_v63, %v749_v16 }
 0x134   : >> { %v746_v4 = vpop.f32.mrf.mxu0 }
 0x135   : >> { %v858_v5 = vpop.f32.mrf.mxu1 }
 0x136   : >> { %v1700_v6 = vpop.f32.mrf.mxu0 }
 0x137   : >> { %v1720_v7 = vpop.f32.mrf.mxu1 }
 0x150   : >> { %v966_v8 = vpop.f32.mrf.mxu0 }
 0x151   : >> { %v1087_v9 = vpop.f32.mrf.mxu1  ;;  %v972_v18 = vadd.f32 %v966_v8, %v861_v17 }
 0x152   : >> { %v1739_v10 = vpop.f32.mrf.mxu0 }
 0x153   : >> { %v1759_v11 = vpop.f32.mrf.mxu1  ;;  %v1093_v19 = vadd.f32 %v1087_v9, %v972_v18 }
 0x154   : >> { %v969_v12 = vpop.f32.mrf.mxu0 }
 0x155   : >> { %v1090_v13 = vpop.f32.mrf.mxu1 }
 0x156   : >> { %v1740_v14 = vpop.f32.mrf.mxu0 }
 0x157   : >> { %v1760_v15 = vpop.f32.mrf.mxu1 }
 0x170   : >> { %v1199_v20 = vpop.f32.mrf.mxu0 }
 0x171   : >> { %v1205_v21 = vadd.f32 %v1199_v20, %v1093_v19 }
 0x172   : >> { %v1779_v22 = vpop.f32.mrf.mxu0 }
 0x173   : >> { %v1212_v23 = vadd.f32 %v1927_v0, %v1205_v21 }
 0x174   : >> { %v1202_v24 = vpop.f32.mrf.mxu0 }
 0x175   : >> { %v1213_v25 = vmax.f32 %v1212_v23, 0.0  ;;  %177 = sbr.rel (!%p175_p4) target bundleno = 15 (0xf), region = 81 }
 0x176   : >> { %v1780_v26 = vpop.f32.mrf.mxu0 }
 0x177   : >> { %v1214_v27 = vpack.c.bf16 %v1213_v25, %v1213_v25 }
 0x179   : >> { %1217 = vst [vmem:[%s1216_s11] sm:$0xf] %v1214_v27 }
 0x17a PF: > { %s13_s12 = sadd.s32 1, %s1888_s12  }
 0x17b   : > { %p10_p5 = scmp.ge.s32.totalorder %s13_s12, 4  }
 0x17d   :  { %12 = sbr.rel (!%p10_p5) target bundleno = 1 (0x1), region = 92 }

// kernel: forward.22
= control target key start
LH: loop header
LB: loop body
LE: loop exit
PB: predicated region body
PF: predicated region fallthrough
CT: control target
= control target key end

     0   :  { %s1917_s12 = smov 0   ;;  %s2273_s0 = inlined_call_operand.vmem [shape: bf16[2,4,4,128], index: 0, kind: input, shape index: {}]   ;;  %s2274_s1 = inlined_call_operand.vmem [shape: bf16[9,128,128], index: 1, kind: input, shape index: {}]   ;;  %s2275_s2 = inlined_call_operand.vmem [shape: f32[1,128], index: 2, kind: input, shape index: {}]   ;;  %s2276_s3 = inlined_call_operand.vmem [shape: bf16[2,2,2,128], index: 3, kind: output, shape index: {}]  }
   0x1 LB: > { %s1301_s13 = sadd.s32 4294967295, %s1889_s12   ;;  %p1305_p0 = scmp.ge.s32.totalorder %s1889_s12, 1  ;;  %s1889_s12 = sphi %s1917_s12, %s13_s12  }
   0x2   : > { %p137_p1 = scmp.lt.s32.totalorder %s1889_s12, 3 }
   0x4   : > { %p138_p2 = pnand %p1305_p0, %p137_p1 }
   0x5   : > { %p160_p3 = scmp.lt.s32.totalorder (!%p138_p2), %s1301_s13, 1  ;;  %s1940_s24 = smov (!%p138_p2), 0  }
   0x6   : > { %141 = sbr.rel (%p138_p2) target bundleno = 377 (0x179), region = 32 }
   0xb   : > { %v1928_v0 = vld [vmem:[%s2275_s2] ss:$0 sm:$0xff]  ;;  %s2278_s13 = smov (!%p160_p3, %s1301_s13), 1 }
   0xc   : > { %s1527_s16 = sshll.u32 %s2278_s13, 3  ;;  %s1308_s17 = sshll.u32 %s2278_s13, 1 }
   0xd   : > { %s1933_s20 = scalar_lea.vmem %s2273_s0, %s1527_s16  ;;  %s1938_s23 = scalar_lea.vmem %s2276_s3, %s1308_s17 }
   0xe LB: >> { %v1807_v1 = vld [vmem:[%s2274_s1 + $0x78] sm:$0xff]   ;;  %v1895_v2 = vmov 0.0   ;;  %v1809_v4 = vld [vmem:[%s2274_s1 + $0x70] sm:$0xff]   ;;  %vm1896_vm0 = vmmov 0   ;;  %v1811_v6 = vld [vmem:[%s2274_s1 + $0x68] sm:$0xff]   ;;  %s1309_s13 = sshll.u32 %s1893_s24, 1  ;;  %s1893_s24 = sphi %s1940_s24, %s176_s24  }
   0xf   : >> { %1609 = vmatprep.subr.bf16.mxu0 %v1895_v2  ;;  %1629 = vmatprep.subr.bf16.mxu1 %v1895_v2  ;;  %v1808_v3 = vld [vmem:[%s2274_s1 + $0x38] sm:$0xff]   ;;  %v1810_v5 = vld [vmem:[%s2274_s1 + $0x30] sm:$0xff]   ;;  %v1812_v7 = vld [vmem:[%s2274_s1 + $0x28] sm:$0xff]   ;;  %s1983_s16 = scalar_lea.vmem %s1933_s20, %s1309_s13 }
  0x10   : >> { %1610 = vmatpush3.bf16.msra.mxu0 %v1807_v1  ;;  %1625 = vmatprep.mubr.msk.bf16.mxu0 %vm1896_vm0, %v1895_v2  ;;  %v1813_v8 = vld [vmem:[%s2274_s1 + $0x60] sm:$0xff]   ;;  %v1815_v10 = vld [vmem:[%s2274_s1 + $0x58] sm:$0xff]   ;;  %v1817_v13 = vld [vmem:[%s2274_s1 + $0x50] sm:$0xff]  }
  0x11   : >> { %1630 = vmatpush3.bf16.msra.mxu1 %v1808_v3  ;;  %1611 = vmatprep.subr.bf16.mxu0 %v1895_v2  ;;  %v1814_v9 = vld [vmem:[%s2274_s1 + $0x20] sm:$0xff]   ;;  %v1816_v11 = vld [vmem:[%s2274_s1 + $0x18] sm:$0xff]   ;;  %v1818_v14 = vld [vmem:[%s2274_s1 + $0x10] sm:$0xff]  }
  0x12   : >> { %1631 = vmatprep.subr.bf16.mxu1 %v1895_v2  ;;  %1645 = vmatprep.mubr.msk.bf16.mxu1 %vm1896_vm0, %v1895_v2  ;;  %v1326_v12 = vld.sshfl [vmem:[%s1983_s16] sm:$0x3 pattern:$0x76325410]  ;;  %v1819_v16 = vld [vmem:[%s2274_s1 + $0x48] sm:$0xff]   ;;  %v1823_v24 = vld [vmem:[%s2274_s1 + $0xb8] sm:$0xff]  }
  0x13   : >> { %v225_v15 = vshll.u32 %v1326_v12, 16  ;;  %v1820_v17 = vld [vmem:[%s2274_s1 + $0x8] sm:$0xff]   ;;  %v223_v18 = vshrl.u32 %v1326_v12, 16  ;;  %v1821_v20 = vld [vmem:[%s2274_s1 + $0x40] sm:$0xff]   ;;  %v1824_v25 = vld [vmem:[%s2274_s1 + $0xf8] sm:$0xff]  }
  0x14   : >> { %1612 = vmatpush3.bf16.msra.mxu0 %v1809_v4  ;;  %v1822_v21 = vld [vmem:[%s2274_s1] sm:$0xff]   ;;  %v1825_v26 = vld [vmem:[%s2274_s1 + $0xb0] sm:$0xff]   ;;  %v1827_v28 = vld [vmem:[%s2274_s1 + $0xa8] sm:$0xff]  }
  0x15   : >> { %1632 = vmatpush3.bf16.msra.mxu1 %v1810_v5  ;;  %1613 = vmatprep.subr.bf16.mxu0 %v1895_v2  ;;  %v227_v19 = vrot.slane %v225_v15, 1  ;;  %v179_v23 = vld [vmem:[%s1983_s16] sm:$0x1]  ;;  %v1826_v27 = vld [vmem:[%s2274_s1 + $0xf0] sm:$0xff]   ;;  %v1828_v29 = vld [vmem:[%s2274_s1 + $0xe8] sm:$0xff]  }
  0x16   : >> { %1633 = vmatprep.subr.bf16.mxu1 %v1895_v2  ;;  %v1829_v30 = vld [vmem:[%s2274_s1 + $0xa0] sm:$0xff]   ;;  %v1831_v32 = vld [vmem:[%s2274_s1 + $0x98] sm:$0xff]   ;;  %v1833_v34 = vld [vmem:[%s2274_s1 + $0x90] sm:$0xff]  }
  0x17   : >> { %v228_v22 = vor.u32 %v227_v19, %v223_v18  ;;  %v1830_v31 = vld [vmem:[%s2274_s1 + $0xe0] sm:$0xff]   ;;  %v1832_v33 = vld [vmem:[%s2274_s1 + $0xd8] sm:$0xff]   ;;  %v1834_v35 = vld [vmem:[%s2274_s1 + $0xd0] sm:$0xff]  }
  0x18   : >> { %1614 = vmatpush3.bf16.msra.mxu0 %v1811_v6  ;;  %v1835_v36 = vld [vmem:[%s2274_s1 + $0x88] sm:$0xff]   ;;  %v1359_v38 = vld.sshfl [vmem:[%s1983_s16] sm:$0x2 pattern:$0x76325410]  ;;  %v1839_v42 = vld [vmem:[%s2274_s1 + $0x138] sm:$0xff]  }
  0x19   : >> { %1634 = vmatpush3.bf16.msra.mxu1 %v1812_v7  ;;  %1615 = vmatprep.subr.bf16.mxu0 %v1895_v2  ;;  %v1836_v37 = vld [vmem:[%s2274_s1 + $0xc8] sm:$0xff]   ;;  %v1837_v39 = vld [vmem:[%s2274_s1 + $0x80] sm:$0xff]   ;;  %v432_v41 = vrot.slane %v1359_v38, 1  ;;  %v1840_v43 = vld [vmem:[%s2274_s1 + $0x178] sm:$0xff]  }
  0x1a   : >> { %1635 = vmatprep.subr.bf16.mxu1 %v1895_v2  ;;  %v1838_v40 = vld [vmem:[%s2274_s1 + $0xc0] sm:$0xff]   ;;  %v1841_v45 = vld [vmem:[%s2274_s1 + $0x130] sm:$0xff]   ;;  %v1843_v47 = vld [vmem:[%s2274_s1 + $0x128] sm:$0xff]  }
  0x1b   : >> { %v1369_v44 = vld [vmem:[%s1983_s16 + $0x2] sm:$0x1]  ;;  %v1842_v46 = vld [vmem:[%s2274_s1 + $0x170] sm:$0xff]   ;;  %v1844_v48 = vld [vmem:[%s2274_s1 + $0x168] sm:$0xff]  }
  0x1c   : >> { %1616 = vmatpush3.bf16.msra.mxu0 %v1813_v8  ;;  %v1845_v49 = vld [vmem:[%s2274_s1 + $0x120] sm:$0xff]   ;;  %v1847_v51 = vld [vmem:[%s2274_s1 + $0x118] sm:$0xff]   ;;  %v1849_v53 = vld [vmem:[%s2274_s1 + $0x110] sm:$0xff]  }
  0x1d   : >> { %1636 = vmatpush3.bf16.msra.mxu1 %v1814_v9  ;;  %1617 = vmatprep.subr.bf16.mxu0 %v1895_v2  ;;  %v1846_v50 = vld [vmem:[%s2274_s1 + $0x160] sm:$0xff]   ;;  %v1848_v52 = vld [vmem:[%s2274_s1 + $0x158] sm:$0xff]   ;;  %v1850_v55 = vld [vmem:[%s2274_s1 + $0x150] sm:$0xff]  }
  0x1e   : >> { %1637 = vmatprep.subr.bf16.mxu1 %v1895_v2  ;;  %v1411_v54 = vld.sshfl [vmem:[%s1983_s16 + $0x2] sm:$0x3 pattern:$0x76325410]  ;;  %v1851_v57 = vld [vmem:[%s2274_s1 + $0x108] sm:$0xff]   ;;  %v1855_v3 = vld [vmem:[%s2274_s1 + $0x1b8] sm:$0xff]  }
  0x1f   : >> { %v662_v56 = vshll.u32 %v1411_v54, 16  ;;  %v1852_v58 = vld [vmem:[%s2274_s1 + $0x148] sm:$0xff]   ;;  %v660_v59 = vshrl.u32 %v1411_v54, 16  ;;  %v1853_v61 = vld [vmem:[%s2274_s1 + $0x100] sm:$0xff]   ;;  %v1856_v5 = vld [vmem:[%s2274_s1 + $0x1f8] sm:$0xff]  }
  0x20   : >> { %1618 = vmatpush3.bf16.msra.mxu0 %v1815_v10  ;;  %v1854_v62 = vld [vmem:[%s2274_s1 + $0x140] sm:$0xff]   ;;  %v1857_v6 = vld [vmem:[%s2274_s1 + $0x1b0] sm:$0xff]   ;;  %v1859_v8 = vld [vmem:[%s2274_s1 + $0x1a8] sm:$0xff]  }
  0x21   : >> { %1638 = vmatpush3.bf16.msra.mxu1 %v1816_v11  ;;  %1619 = vmatprep.subr.bf16.mxu0 %v1895_v2  ;;  %v664_v60 = vrot.slane %v662_v56, 1  ;;  %v1437_v63 = vld.sshfl [vmem:[%s1983_s16 + $0x2] sm:$0x2 pattern:$0x76325410]  ;;  %v1858_v7 = vld [vmem:[%s2274_s1 + $0x1f0] sm:$0xff]  }
  0x22   : >> { %1639 = vmatprep.subr.bf16.mxu1 %v1895_v2  ;;  %v782_v4 = vrot.slane %v1437_v63, 1  ;;  %v1860_v9 = vld [vmem:[%s2274_s1 + $0x1e8] sm:$0xff]   ;;  %v1861_v10 = vld [vmem:[%s2274_s1 + $0x1a0] sm:$0xff]   ;;  %v1863_v12 = vld [vmem:[%s2274_s1 + $0x198] sm:$0xff]  }
  0x23   : >> { %v665_v1 = vor.u32 %v664_v60, %v660_v59  ;;  %v1862_v11 = vld [vmem:[%s2274_s1 + $0x1e0] sm:$0xff]   ;;  %v1866_v15 = vld [vmem:[%s2274_s1 + $0x1d0] sm:$0xff]   ;;  %v1868_v19 = vld [vmem:[%s2274_s1 + $0x1c8] sm:$0xff]  }
  0x24   : >> { %1620 = vmatpush3.bf16.msra.mxu0 %v1817_v13  ;;  %v1864_v13 = vld [vmem:[%s2274_s1 + $0x1d8] sm:$0xff]  }
  0x25   : >> { %1640 = vmatpush3.bf16.msra.mxu1 %v1818_v14  ;;  %1621 = vmatprep.subr.bf16.mxu0 %v1895_v2  ;;  %v1865_v14 = vld [vmem:[%s2274_s1 + $0x190] sm:$0xff]  }
  0x26   : >> { %1641 = vmatprep.subr.bf16.mxu1 %v1895_v2 }
  0x28   : >> { %1622 = vmatpush3.bf16.msra.mxu0 %v1819_v16  ;;  %v1489_v16 = vld.sshfl [vmem:[%s1983_s16 + $0x4] sm:$0x3 pattern:$0x76325410] }
  0x29   : >> { %1642 = vmatpush3.bf16.msra.mxu1 %v1820_v17  ;;  %1623 = vmatprep.subr.bf16.mxu0 %v1895_v2  ;;  %v1867_v17 = vld [vmem:[%s2274_s1 + $0x188] sm:$0xff]   ;;  %v1012_v18 = vshll.u32 %v1489_v16, 16 }
  0x2a   : >> { %1643 = vmatprep.subr.bf16.mxu1 %v1895_v2 }
  0x2c   : >> { %1624 = vmatpush3.bf16.msra.mxu0 %v1821_v20  ;;  %v1869_v20 = vld [vmem:[%s2274_s1 + $0x180] sm:$0xff]  }
  0x2d   : >> { %1644 = vmatpush3.bf16.msra.mxu1 %v1822_v21  ;;  %1649 = vmatprep.subr.bf16.mxu0 %v1895_v2  ;;  %v1010_v21 = vshrl.u32 %v1489_v16, 16 }
  0x2e   : >> { %1669 = vmatprep.subr.bf16.mxu1 %v1895_v2 }
  0x2f   : >> { %1626 = vmatmul.mubr.bf16.vlgmr.msra.gmra.mxu0 %v228_v22  ;;  %v1014_v22 = vrot.slane %v1012_v18, 1 }
  0x30   : >> { %1646 = vmatmul.mubr.bf16.vlgmr.msra.gmra.mxu1 %v179_v23  ;;  %1650 = vmatpush3.bf16.msra.mxu0 %v1823_v24  ;;  %v1870_v23 = vld [vmem:[%s2274_s1 + $0x1c0] sm:$0xff]  }
  0x31   : >> { %1670 = vmatpush3.bf16.msra.mxu1 %v1824_v25  ;;  %1651 = vmatprep.subr.bf16.mxu0 %v1895_v2  ;;  %v1447_v24 = vld [vmem:[%s1983_s16 + $0x4] sm:$0x1]  ;;  %v1871_v25 = vld [vmem:[%s2274_s1 + $0x238] sm:$0xff]  }
  0x32   : >> { %1671 = vmatprep.subr.bf16.mxu1 %v1895_v2  ;;  %1665 = vmatprep.mubr.msk.bf16.mxu0 %vm1896_vm0, %v1895_v2 }
  0x33   : >> { %1685 = vmatprep.mubr.msk.bf16.mxu1 %vm1896_vm0, %v1895_v2 }
  0x34   : >> { %1652 = vmatpush3.bf16.msra.mxu0 %v1825_v26  ;;  %v1015_v26 = vor.u32 %v1014_v22, %v1010_v21 }
  0x35   : >> { %1672 = vmatpush3.bf16.msra.mxu1 %v1826_v27  ;;  %1653 = vmatprep.subr.bf16.mxu0 %v1895_v2  ;;  %v1872_v27 = vld [vmem:[%s2274_s1 + $0x230] sm:$0xff]  }
  0x36   : >> { %1673 = vmatprep.subr.bf16.mxu1 %v1895_v2 }
  0x38   : >> { %1654 = vmatpush3.bf16.msra.mxu0 %v1827_v28  ;;  %v1873_v28 = vld [vmem:[%s2274_s1 + $0x228] sm:$0xff]  }
  0x39   : >> { %1674 = vmatpush3.bf16.msra.mxu1 %v1828_v29  ;;  %1655 = vmatprep.subr.bf16.mxu0 %v1895_v2  ;;  %v1874_v29 = vld [vmem:[%s2274_s1 + $0x220] sm:$0xff]  }
  0x3a   : >> { %1675 = vmatprep.subr.bf16.mxu1 %v1895_v2 }
  0x3c   : >> { %1656 = vmatpush3.bf16.msra.mxu0 %v1829_v30  ;;  %v1875_v30 = vld [vmem:[%s2274_s1 + $0x218] sm:$0xff]  }
  0x3d   : >> { %1676 = vmatpush3.bf16.msra.mxu1 %v1830_v31  ;;  %1657 = vmatprep.subr.bf16.mxu0 %v1895_v2  ;;  %v1876_v31 = vld [vmem:[%s2274_s1 + $0x210] sm:$0xff]  }
  0x3e   : >> { %1677 = vmatprep.subr.bf16.mxu1 %v1895_v2 }
  0x40   : >> { %1658 = vmatpush3.bf16.msra.mxu0 %v1831_v32  ;;  %v1877_v32 = vld [vmem:[%s2274_s1 + $0x208] sm:$0xff]  }
  0x41   : >> { %1678 = vmatpush3.bf16.msra.mxu1 %v1832_v33  ;;  %1659 = vmatprep.subr.bf16.mxu0 %v1895_v2  ;;  %v1878_v33 = vld [vmem:[%s2274_s1 + $0x200] sm:$0xff]  }
  0x42   : >> { %1679 = vmatprep.subr.bf16.mxu1 %v1895_v2 }
  0x44   : >> { %1660 = vmatpush3.bf16.msra.mxu0 %v1833_v34  ;;  %v1515_v34 = vld.sshfl [vmem:[%s1983_s16 + $0x4] sm:$0x2 pattern:$0x76325410]  ;;  %s1232_s16 = scalar_lea.vmem %s1938_s23, %s1893_s24  ;;  %s176_s24 = sadd.s32 1, %s1893_s24  }
  0x45   : >> { %1680 = vmatpush3.bf16.msra.mxu1 %v1834_v35  ;;  %1661 = vmatprep.subr.bf16.mxu0 %v1895_v2  ;;  %v1132_v35 = vrot.slane %v1515_v34, 1  ;;  %p173_p4 = scmp.ge.s32.totalorder %s176_s24, 2  }
  0x46   : >> { %1681 = vmatprep.subr.bf16.mxu1 %v1895_v2 }
  0x48   : >> { %1662 = vmatpush3.bf16.msra.mxu0 %v1835_v36 }
  0x49   : >> { %1682 = vmatpush3.bf16.msra.mxu1 %v1836_v37  ;;  %1663 = vmatprep.subr.bf16.mxu0 %v1895_v2 }
  0x4a   : >> { %1683 = vmatprep.subr.bf16.mxu1 %v1895_v2 }
  0x4c   : >> { %1664 = vmatpush3.bf16.msra.mxu0 %v1837_v39 }
  0x4d   : >> { %1684 = vmatpush3.bf16.msra.mxu1 %v1838_v40  ;;  %1689 = vmatprep.subr.bf16.mxu0 %v1895_v2 }
  0x4e   : >> { %1709 = vmatprep.subr.bf16.mxu1 %v1895_v2 }
  0x4f   : >> { %1666 = vmatmul.mubr.bf16.vlgmr.msra.gmra.mxu0 %v432_v41 }
  0x50   : >> { %1690 = vmatpush3.bf16.msra.mxu0 %v1839_v42  ;;  %1686 = vmatmul.mubr.bf16.vlgmr.msra.gmra.mxu1 %v1369_v44 }
  0x51   : >> { %1710 = vmatpush3.bf16.msra.mxu1 %v1840_v43  ;;  %1691 = vmatprep.subr.bf16.mxu0 %v1895_v2 }
  0x52   : >> { %1711 = vmatprep.subr.bf16.mxu1 %v1895_v2  ;;  %1705 = vmatprep.mubr.msk.bf16.mxu0 %vm1896_vm0, %v1895_v2 }
  0x53   : >> { %1725 = vmatprep.mubr.msk.bf16.mxu1 %vm1896_vm0, %v1895_v2 }
  0x54   : >> { %1692 = vmatpush3.bf16.msra.mxu0 %v1841_v45 }
  0x55   : >> { %1712 = vmatpush3.bf16.msra.mxu1 %v1842_v46  ;;  %1693 = vmatprep.subr.bf16.mxu0 %v1895_v2 }
  0x56   : >> { %1713 = vmatprep.subr.bf16.mxu1 %v1895_v2 }
  0x58   : >> { %1694 = vmatpush3.bf16.msra.mxu0 %v1843_v47 }
  0x59   : >> { %1714 = vmatpush3.bf16.msra.mxu1 %v1844_v48  ;;  %1695 = vmatprep.subr.bf16.mxu0 %v1895_v2 }
  0x5a   : >> { %1715 = vmatprep.subr.bf16.mxu1 %v1895_v2 }
  0x5c   : >> { %1696 = vmatpush3.bf16.msra.mxu0 %v1845_v49 }
  0x5d   : >> { %1716 = vmatpush3.bf16.msra.mxu1 %v1846_v50  ;;  %1697 = vmatprep.subr.bf16.mxu0 %v1895_v2 }
  0x5e   : >> { %1717 = vmatprep.subr.bf16.mxu1 %v1895_v2 }
  0x60   : >> { %1698 = vmatpush3.bf16.msra.mxu0 %v1847_v51 }
  0x61   : >> { %1718 = vmatpush3.bf16.msra.mxu1 %v1848_v52  ;;  %1699 = vmatprep.subr.bf16.mxu0 %v1895_v2 }
  0x62   : >> { %1719 = vmatprep.subr.bf16.mxu1 %v1895_v2 }
  0x64   : >> { %1700 = vmatpush3.bf16.msra.mxu0 %v1849_v53 }
  0x65   : >> { %1720 = vmatpush3.bf16.msra.mxu1 %v1850_v55  ;;  %1701 = vmatprep.subr.bf16.mxu0 %v1895_v2 }
  0x66   : >> { %1721 = vmatprep.subr.bf16.mxu1 %v1895_v2 }
  0x68   : >> { %1702 = vmatpush3.bf16.msra.mxu0 %v1851_v57 }
  0x69   : >> { %1722 = vmatpush3.bf16.msra.mxu1 %v1852_v58  ;;  %1703 = vmatprep.subr.bf16.mxu0 %v1895_v2 }
  0x6a   : >> { %1723 = vmatprep.subr.bf16.mxu1 %v1895_v2 }
  0x6c   : >> { %1704 = vmatpush3.bf16.msra.mxu0 %v1853_v61 }
  0x6d   : >> { %1724 = vmatpush3.bf16.msra.mxu1 %v1854_v62  ;;  %1729 = vmatprep.subr.bf16.mxu0 %v1895_v2 }
  0x6e   : >> { %1749 = vmatprep.subr.bf16.mxu1 %v1895_v2 }
  0x6f   : >> { %1706 = vmatmul.mubr.bf16.vlgmr.msra.gmra.mxu0 %v665_v1 }
  0x70   : >> { %1730 = vmatpush3.bf16.msra.mxu0 %v1855_v3  ;;  %1726 = vmatmul.mubr.bf16.vlgmr.msra.gmra.mxu1 %v782_v4 }
  0x71   : >> { %1750 = vmatpush3.bf16.msra.mxu1 %v1856_v5  ;;  %1731 = vmatprep.subr.bf16.mxu0 %v1895_v2 }
  0x72   : >> { %1751 = vmatprep.subr.bf16.mxu1 %v1895_v2  ;;  %1745 = vmatprep.mubr.msk.bf16.mxu0 %vm1896_vm0, %v1895_v2 }
  0x73   : >> { %1765 = vmatprep.mubr.msk.bf16.mxu1 %vm1896_vm0, %v1895_v2 }
  0x74   : >> { %1732 = vmatpush3.bf16.msra.mxu0 %v1857_v6 }
  0x75   : >> { %1752 = vmatpush3.bf16.msra.mxu1 %v1858_v7  ;;  %1733 = vmatprep.subr.bf16.mxu0 %v1895_v2 }
  0x76   : >> { %1753 = vmatprep.subr.bf16.mxu1 %v1895_v2 }
  0x78   : >> { %1734 = vmatpush3.bf16.msra.mxu0 %v1859_v8 }
  0x79   : >> { %1754 = vmatpush3.bf16.msra.mxu1 %v1860_v9  ;;  %1735 = vmatprep.subr.bf16.mxu0 %v1895_v2 }
  0x7a   : >> { %1755 = vmatprep.subr.bf16.mxu1 %v1895_v2 }
  0x7c   : >> { %1736 = vmatpush3.bf16.msra.mxu0 %v1861_v10 }
  0x7d   : >> { %1756 = vmatpush3.bf16.msra.mxu1 %v1862_v11  ;;  %1737 = vmatprep.subr.bf16.mxu0 %v1895_v2 }
  0x7e   : >> { %1757 = vmatprep.subr.bf16.mxu1 %v1895_v2 }
  0x80   : >> { %1738 = vmatpush3.bf16.msra.mxu0 %v1863_v12 }
  0x81   : >> { %1758 = vmatpush3.bf16.msra.mxu1 %v1864_v13  ;;  %1739 = vmatprep.subr.bf16.mxu0 %v1895_v2 }
  0x82   : >> { %1759 = vmatprep.subr.bf16.mxu1 %v1895_v2 }
  0x84   : >> { %1740 = vmatpush3.bf16.msra.mxu0 %v1865_v14 }
  0x85   : >> { %1760 = vmatpush3.bf16.msra.mxu1 %v1866_v15  ;;  %1741 = vmatprep.subr.bf16.mxu0 %v1895_v2 }
  0x86   : >> { %1761 = vmatprep.subr.bf16.mxu1 %v1895_v2 }
  0x88   : >> { %1742 = vmatpush3.bf16.msra.mxu0 %v1867_v17 }
  0x89   : >> { %1762 = vmatpush3.bf16.msra.mxu1 %v1868_v19  ;;  %1743 = vmatprep.subr.bf16.mxu0 %v1895_v2 }
  0x8a   : >> { %1763 = vmatprep.subr.bf16.mxu1 %v1895_v2 }
  0x8c   : >> { %1744 = vmatpush3.bf16.msra.mxu0 %v1869_v20 }
  0x8d   : >> { %1764 = vmatpush3.bf16.msra.mxu1 %v1870_v23  ;;  %1769 = vmatprep.subr.bf16.mxu0 %v1895_v2 }
  0x8f   : >> { %1746 = vmatmul.mubr.bf16.vlgmr.msra.gmra.mxu0 %v1447_v24 }
  0x90   : >> { %1770 = vmatpush3.bf16.msra.mxu0 %v1871_v25  ;;  %1766 = vmatmul.mubr.bf16.vlgmr.msra.gmra.mxu1 %v1015_v26 }
  0x91   : >> { %1771 = vmatprep.subr.bf16.mxu0 %v1895_v2  ;;  %1785 = vmatprep.mubr.msk.bf16.mxu0 %vm1896_vm0, %v1895_v2 }
  0x94   : >> { %1772 = vmatpush3.bf16.msra.mxu0 %v1872_v27 }
  0x95   : >> { %1773 = vmatprep.subr.bf16.mxu0 %v1895_v2 }
  0x98   : >> { %1774 = vmatpush3.bf16.msra.mxu0 %v1873_v28 }
  0x99   : >> { %1775 = vmatprep.subr.bf16.mxu0 %v1895_v2 }
  0x9c   : >> { %1776 = vmatpush3.bf16.msra.mxu0 %v1874_v29 }
  0x9d   : >> { %1777 = vmatprep.subr.bf16.mxu0 %v1895_v2 }
  0xa0   : >> { %1778 = vmatpush3.bf16.msra.mxu0 %v1875_v30 }
  0xa1   : >> { %1779 = vmatprep.subr.bf16.mxu0 %v1895_v2 }
  0xa4   : >> { %1780 = vmatpush3.bf16.msra.mxu0 %v1876_v31 }
  0xa5   : >> { %1781 = vmatprep.subr.bf16.mxu0 %v1895_v2 }
  0xa8   : >> { %1782 = vmatpush3.bf16.msra.mxu0 %v1877_v32 }
  0xa9   : >> { %1783 = vmatprep.subr.bf16.mxu0 %v1895_v2 }
  0xac   : >> { %1784 = vmatpush3.bf16.msra.mxu0 %v1878_v33 }
  0xaf   : >> { %1786 = vmatmul.mubr.bf16.vlgmr.msra.gmra.mxu0 %v1132_v35 }
  0xef   : >> { %v312_v36 = vpop.f32.mrf.mxu0 }
  0xf0   : >> { %v400_v37 = vpop.f32.mrf.mxu1 }
  0xf1   : >> { %v401_v38 = vadd.f32 %v400_v37, %v312_v36  ;;  %v1627_v39 = vpop.f32.mrf.mxu0 }
  0xf2   : >> { %v1647_v40 = vpop.f32.mrf.mxu1 }
  0xf3   : >> { %v315_v41 = vpop.f32.mrf.mxu0 }
  0xf4   : >> { %v403_v42 = vpop.f32.mrf.mxu1 }
  0xf5   : >> { %v1628_v43 = vpop.f32.mrf.mxu0 }
  0xf6   : >> { %v1648_v44 = vpop.f32.mrf.mxu1 }
 0x10f   : >> { %v516_v45 = vpop.f32.mrf.mxu0 }
 0x110   : >> { %v522_v46 = vadd.f32 %v516_v45, %v401_v38  ;;  %v626_v47 = vpop.f32.mrf.mxu1 }
 0x111   : >> { %v1667_v48 = vpop.f32.mrf.mxu0 }
 0x112   : >> { %v632_v49 = vadd.f32 %v626_v47, %v522_v46  ;;  %v1687_v50 = vpop.f32.mrf.mxu1 }
 0x113   : >> { %v519_v51 = vpop.f32.mrf.mxu0 }
 0x114   : >> { %v629_v2 = vpop.f32.mrf.mxu1 }
 0x115   : >> { %v1668_v52 = vpop.f32.mrf.mxu0 }
 0x116   : >> { %v1688_v53 = vpop.f32.mrf.mxu1 }
 0x12f   : >> { %v749_v54 = vpop.f32.mrf.mxu0 }
 0x130   : >> { %v866_v55 = vpop.f32.mrf.mxu1  ;;  %v755_v8 = vadd.f32 %v749_v54, %v632_v49 }
 0x131   : >> { %v1707_v56 = vpop.f32.mrf.mxu0 }
 0x132   : >> { %v1727_v57 = vpop.f32.mrf.mxu1  ;;  %v872_v9 = vadd.f32 %v866_v55, %v755_v8 }
 0x133   : >> { %v752_v58 = vpop.f32.mrf.mxu0 }
 0x134   : >> { %v869_v59 = vpop.f32.mrf.mxu1 }
 0x135   : >> { %v1708_v60 = vpop.f32.mrf.mxu0 }
 0x136   : >> { %v1728_v61 = vpop.f32.mrf.mxu1 }
 0x14f   : >> { %v976_v62 = vpop.f32.mrf.mxu0 }
 0x150   : >> { %v1099_v63 = vpop.f32.mrf.mxu1  ;;  %v982_v10 = vadd.f32 %v976_v62, %v872_v9 }
 0x151   : >> { %v1747_v1 = vpop.f32.mrf.mxu0 }
 0x152   : >> { %v1767_v3 = vpop.f32.mrf.mxu1  ;;  %v1105_v11 = vadd.f32 %v1099_v63, %v982_v10 }
 0x153   : >> { %v979_v4 = vpop.f32.mrf.mxu0 }
 0x154   : >> { %v1102_v5 = vpop.f32.mrf.mxu1 }
 0x155   : >> { %v1748_v6 = vpop.f32.mrf.mxu0 }
 0x156   : >> { %v1768_v7 = vpop.f32.mrf.mxu1 }
 0x16f   : >> { %v1216_v12 = vpop.f32.mrf.mxu0 }
 0x170   : >> { %v1222_v13 = vadd.f32 %v1216_v12, %v1105_v11 }
 0x171   : >> { %v1787_v14 = vpop.f32.mrf.mxu0 }
 0x172   : >> { %v1229_v15 = vadd.f32 %v1928_v0, %v1222_v13 }
 0x173   : >> { %v1219_v16 = vpop.f32.mrf.mxu0 }
 0x174   : >> { %v1230_v17 = vmax.f32 %v1229_v15, 0.0  ;;  %175 = sbr.rel (!%p173_p4) target bundleno = 14 (0xe), region = 81 }
 0x175   : >> { %v1788_v18 = vpop.f32.mrf.mxu0 }
 0x176   : >> { %v1231_v19 = vpack.c.bf16 %v1230_v17, %v1230_v17 }
 0x178   : >> { %1233 = vst [vmem:[%s1232_s16] sm:$0x1] %v1231_v19 }
 0x179 PF: > { %s13_s12 = sadd.s32 1, %s1889_s12  }
 0x17a   : > { %p10_p5 = scmp.ge.s32.totalorder %s13_s12, 4  }
 0x17c   :  { %12 = sbr.rel (!%p10_p5) target bundleno = 1 (0x1), region = 92 }

// kernel: forward.24
= control target key start
LH: loop header
LB: loop body
LE: loop exit
PB: predicated region body
PF: predicated region fallthrough
CT: control target
= control target key end

     0   :  { %s192_s6 = smov 0   ;;  %s212_s0 = inlined_call_operand.vmem [shape: bf16[2,2,1,256], index: 0, kind: input, shape index: {}]   ;;  %s213_s1 = inlined_call_operand.vmem [shape: bf16[2,1,128], index: 1, kind: output, shape index: {}]  }
   0x1 LB: > { %s171_s7 = sadd.s32 4294967295, %s194_s6   ;;  %p175_p0 = scmp.ge.s32.totalorder %s194_s6, 1  ;;  %s194_s6 = sphi %s192_s6, %s11_s6  }
   0x2   : > { %p86_p1 = scmp.lt.s32.totalorder %s194_s6, 3 }
   0x4   : > { %p87_p2 = pnand %p175_p0, %p86_p1 }
   0x5   : > { %p103_p3 = scmp.lt.s32.totalorder (!%p87_p2), %s171_s7, 1 }
   0x6   : > { %90 = sbr.rel (%p87_p2) target bundleno = 23 (0x17), region = 24 }
   0xb   : > { %s215_s7 = smov (!%p103_p3, %s171_s7), 1  ;;  %vm118_vm0 = vcmask 1040384   ;;  %vm119_vm1 = vsmask.f32 256 }
   0xc   : > { %s176_s8 = sshll.u32 %s215_s7, 2  ;;  %s109_s14 = scalar_lea.vmem %s213_s1, %s215_s7  ;;  %vm120_vm2 = vmand %vm118_vm0, %vm119_vm1 }
   0xd   : > { %s106_s11 = scalar_lea.vmem %s212_s0, %s176_s8  ;;  %v121_v4 = vld [vmem:[%s109_s14] sm:$0x1] }
   0xe   : > { %v110_v0 = vld [vmem:[%s106_s11] sm:$0x3]  ;;  %v177_v1 = vld [vmem:[%s106_s11 + $0x2] sm:$0x3] }
   0xf   : > { %v113_v2 = vmax.bf16 %v177_v1, %v110_v0 }
  0x11   : > { %v115_v3 = vrot.slane %v113_v2, 1 }
  0x13   : > { %v117_v5 = vmax.bf16 %v115_v3, %v113_v2 }
  0x15   : > { %v122_v6 = vsel %vm120_vm2, %v117_v5, %v121_v4 }
  0x16   : > { %123 = vst [vmem:[%s109_s14] sm:$0x1] %v122_v6 }
  0x17 PF: > { %s11_s6 = sadd.s32 1, %s194_s6  }
  0x18   : > { %p8_p4 = scmp.ge.s32.totalorder %s11_s6, 4  }
  0x1a   :  { %10 = sbr.rel (!%p8_p4) target bundleno = 1 (0x1), region = 55 }

// kernel: forward.25
= control target key start
LH: loop header
LB: loop body
LE: loop exit
PB: predicated region body
PF: predicated region fallthrough
CT: control target
= control target key end

     0   :  { %vm90_vm0 = vcmask 1043456   ;;  %v1589_v2 = vmov 0   ;;  %vm86_vm1 = vcmask 64512   ;;  %v56_v44 = vlaneseq  ;;  %s2035_s2 = inlined_call_operand.vmem [shape: bf16[8,512], index: 2, kind: input, shape index: {}]   ;;  %s2036_s1 = inlined_call_operand.vmem [shape: bf16[8,8], index: 1, kind: input, shape index: {}]   ;;  %s2037_s4 = inlined_call_operand.vmem [shape: bf16[512,128], index: 4, kind: input, shape index: {}]   ;;  %s2038_s6 = inlined_call_operand.vmem [shape: bf16[128,256], index: 6, kind: input, shape index: {}]   ;;  %s2039_s7 = inlined_call_operand.vmem [shape: bf16[128,256], index: 7, kind: input, shape index: {}]   ;;  %s2040_s3 = inlined_call_operand.vmem [shape: f32[1,512], index: 3, kind: input, shape index: {}]   ;;  %s2041_s0 = inlined_call_operand.vmem [shape: bf16[8,128], index: 0, kind: input, shape index: {}]   ;;  %s2042_s9 = inlined_call_operand.vmem [shape: bf16[256,128], index: 9, kind: input, shape index: {}]   ;;  %s2043_s5 = inlined_call_operand.vmem [shape: f32[1,128], index: 5, kind: input, shape index: {}]   ;;  %s2044_s11 = inlined_call_operand.vmem [shape: bf16[128,128], index: 11, kind: input, shape index: {}]   ;;  %s2045_s8 = inlined_call_operand.vmem [shape: f32[1,256], index: 8, kind: input, shape index: {}]   ;;  %s2046_s13 = inlined_call_operand.vmem [shape: bf16[128,10], index: 13, kind: input, shape index: {}]   ;;  %s2047_s10 = inlined_call_operand.vmem [shape: f32[1,128], index: 10, kind: input, shape index: {}]   ;;  %s2048_s12 = inlined_call_operand.vmem [shape: f32[1,128], index: 12, kind: input, shape index: {}]   ;;  %s2049_s14 = inlined_call_operand.vmem [shape: f32[1,10], index: 14, kind: input, shape index: {}]   ;;  %s2050_s15 = inlined_call_operand.vmem [shape: f32[8,10], index: 15, kind: output, shape index: {}]  }
   0x1   :  { %v52_v0 = vld [vmem:[%s2035_s2] sm:$0xff]  ;;  %v53_v1 = vld [vmem:[%s2035_s2 + $0x8] sm:$0xff]  ;;  %135 = vmatprep.mubr.bf16.mxu1 %v1589_v2  ;;  %v1477_v7 = vld [vmem:[%s2037_s4 + $0x78] sm:$0xff]   ;;  %vm1591_vm2 = vmmov 0   ;;  %vm1232_vm3 = vcmask 80896  }
   0x2   :  { %v1239_v3 = vcombine.high %v52_v0, %v52_v0  ;;  %v1241_v4 = vcombine.high %v53_v1, %v53_v1  ;;  %v1238_v5 = vcombine.low %v52_v0, %v52_v0  ;;  %v1240_v6 = vcombine.low %v53_v1, %v53_v1  ;;  %v51_v8 = vld [vmem:[%s2036_s1] sm:$0xf]  ;;  %v1478_v9 = vld [vmem:[%s2037_s4 + $0x38] sm:$0xff]   ;;  %1346 = vmatprep.subr.bf16.mxu0 %v1477_v7  ;;  %v1479_v11 = vld [vmem:[%s2037_s4 + $0x70] sm:$0xff]  }
   0x3   :  { %1347 = vmatpush3.bf16.msra.mxu0 %v1478_v9  ;;  %v1480_v13 = vld [vmem:[%s2037_s4 + $0x30] sm:$0xff]   ;;  %v1481_v14 = vld [vmem:[%s2037_s4 + $0x68] sm:$0xff]   ;;  %v1482_v15 = vld [vmem:[%s2037_s4 + $0xf8] sm:$0xff]   ;;  %v1791_v45 = vshrl.u32 %v56_v44, 7 }
   0x4   :  { %1242 = vmatprep.subr.msk.bf16.mxu1 %vm90_vm0, %v1239_v3  ;;  %v92_v10 = vsel %vm90_vm0, %v1238_v5, 0  ;;  %v98_v12 = vsel %vm90_vm0, %v1240_v6, 0  ;;  %1348 = vmatprep.subr.bf16.mxu0 %v1479_v11  ;;  %v1483_v16 = vld [vmem:[%s2037_s4 + $0x28] sm:$0xff]   ;;  %v1485_v17 = vld [vmem:[%s2037_s4 + $0x60] sm:$0xff]   ;;  %v1484_v18 = vld [vmem:[%s2037_s4 + $0xb8] sm:$0xff]  }
   0x5   :  { %118 = vmatpush1.bf16.msra.mxu1 %v92_v10  ;;  %v1486_v19 = vld [vmem:[%s2037_s4 + $0xf0] sm:$0xff]   ;;  %v1487_v20 = vld [vmem:[%s2037_s4 + $0x20] sm:$0xff]   ;;  %v1489_v21 = vld [vmem:[%s2037_s4 + $0x58] sm:$0xff]   ;;  %v58_v46 = vsub.s32 0, %v1791_v45  ;;  %v62_v48 = vsub.s32 1, %v1791_v45  ;;  %v66_v53 = vsub.s32 2, %v1791_v45 }
   0x6   :  { %1244 = vmatprep.subr.msk.bf16.mxu1 %vm90_vm0, %v1241_v4  ;;  %v1488_v22 = vld [vmem:[%s2037_s4 + $0xb0] sm:$0xff]   ;;  %v1490_v23 = vld [vmem:[%s2037_s4 + $0xe8] sm:$0xff]   ;;  %v1491_v24 = vld [vmem:[%s2037_s4 + $0x18] sm:$0xff]   ;;  %v70_v56 = vsub.s32 3, %v1791_v45 }
   0x7   :  { %1349 = vmatpush3.bf16.msra.mxu0 %v1480_v13  ;;  %v1493_v25 = vld [vmem:[%s2037_s4 + $0x50] sm:$0xff]   ;;  %v1492_v26 = vld [vmem:[%s2037_s4 + $0xa8] sm:$0xff]   ;;  %v1494_v27 = vld [vmem:[%s2037_s4 + $0xe0] sm:$0xff]  }
   0x8   :  { %1243 = vmatmul.mubr.msk.bf16.vlgmr.msra.gmra.mxu1 %vm86_vm1, %v51_v8  ;;  %1350 = vmatprep.subr.bf16.mxu0 %v1481_v14  ;;  %v1495_v28 = vld [vmem:[%s2037_s4 + $0x10] sm:$0xff]   ;;  %v1496_v29 = vld [vmem:[%s2037_s4 + $0xa0] sm:$0xff]   ;;  %v1497_v30 = vld [vmem:[%s2037_s4 + $0x48] sm:$0xff]  }
   0x9   :  { %159 = vmatpush1.bf16.msra.mxu1 %v98_v12  ;;  %176 = vmatprep.mubr.bf16.mxu1 %v1589_v2  ;;  %v1498_v31 = vld [vmem:[%s2037_s4 + $0xd8] sm:$0xff]   ;;  %v1499_v32 = vld [vmem:[%s2037_s4 + $0x8] sm:$0xff]   ;;  %v1501_v34 = vld [vmem:[%s2037_s4 + $0x40] sm:$0xff]  }
   0xa   :  { %1368 = vmatprep.subr.bf16.mxu1 %v1482_v15  ;;  %v1500_v33 = vld [vmem:[%s2037_s4 + $0x98] sm:$0xff]   ;;  %v1502_v35 = vld [vmem:[%s2037_s4 + $0xd0] sm:$0xff]   ;;  %v1503_v36 = vld [vmem:[%s2037_s4] sm:$0xff]  }
   0xb   :  { %1351 = vmatpush3.bf16.msra.mxu0 %v1483_v16  ;;  %v1504_v37 = vld [vmem:[%s2037_s4 + $0x90] sm:$0xff]   ;;  %v1505_v38 = vld [vmem:[%s2037_s4 + $0xc8] sm:$0xff]   ;;  %v1507_v40 = vld [vmem:[%s2037_s4 + $0xc0] sm:$0xff]  }
   0xc   :  { %1352 = vmatprep.subr.bf16.mxu0 %v1485_v17  ;;  %v1506_v39 = vld [vmem:[%s2037_s4 + $0x88] sm:$0xff]   ;;  %v1508_v41 = vld [vmem:[%s2037_s4 + $0x80] sm:$0xff]   ;;  %v1511_v42 = vld [vmem:[%s2038_s6 + $0x74] ss:$8 sps:$4 sm:$0xff]  }
   0xd   :  { %v1517_v43 = vld [vmem:[%s2039_s7 + $0x74] ss:$8 sps:$4 sm:$0xff]   ;;  %v54_v47 = vld [vmem:[%s2040_s3] sm:$0xf]  ;;  %v1515_v0 = vld [vmem:[%s2039_s7 + $0x70] ss:$8 sps:$4 sm:$0xff]  }
   0xe   :  { %v59_v49 = vrot.slane %v54_v47, %v58_v46  ;;  %v63_v50 = vrot.slane %v54_v47, %v62_v48  ;;  %v67_v59 = vrot.slane %v54_v47, %v66_v53  ;;  %v71_v63 = vrot.slane %v54_v47, %v70_v56  ;;  %v1523_v4 = vld [vmem:[%s2039_s7 + $0x64] ss:$8 sps:$4 sm:$0xff]   ;;  %v1529_v11 = vld [vmem:[%s2039_s7 + $0x54] ss:$8 sps:$4 sm:$0xff]   ;;  %v1509_v15 = vld [vmem:[%s2038_s6 + $0x70] ss:$8 sps:$4 sm:$0xff]  }
   0xf   :  { %1353 = vmatpush3.bf16.msra.mxu0 %v1487_v20  ;;  %v1527_v16 = vld [vmem:[%s2039_s7 + $0x50] ss:$8 sps:$4 sm:$0xff]   ;;  %v1512_v20 = vld [vmem:[%s2038_s6 + $0x60] ss:$8 sps:$4 sm:$0xff]  }
  0x10   :  { %1245 = vmatmul.mubr.msk.bf16.vlgmr.msra.gmra.mxu1 %vm86_vm1, %v51_v8  ;;  %1354 = vmatprep.subr.bf16.mxu0 %v1489_v21  ;;  %v1521_v8 = vld [vmem:[%s2039_s7 + $0x60] ss:$8 sps:$4 sm:$0xff]  }
  0x11   :  { %1369 = vmatpush3.bf16.msra.mxu1 %v1484_v18  ;;  %v1514_v18 = vld [vmem:[%s2038_s6 + $0x64] ss:$8 sps:$4 sm:$0xff]   ;;  %v1533_v21 = vld [vmem:[%s2039_s7 + $0x40] ss:$8 sps:$4 sm:$0xff]  }
  0x12   :  { %1370 = vmatprep.subr.bf16.mxu1 %v1486_v19  ;;  %v1535_v19 = vld [vmem:[%s2039_s7 + $0x44] ss:$8 sps:$4 sm:$0xff]  }
  0x13   :  { %1355 = vmatpush3.bf16.msra.mxu0 %v1491_v24  ;;  %v1526_v24 = vld [vmem:[%s2038_s6 + $0x44] ss:$8 sps:$4 sm:$0xff]  }
  0x14   :  { %1356 = vmatprep.subr.bf16.mxu0 %v1493_v25  ;;  %v1524_v25 = vld [vmem:[%s2038_s6 + $0x40] ss:$8 sps:$4 sm:$0xff]  }
  0x15   :  { %1371 = vmatpush3.bf16.msra.mxu1 %v1488_v22  ;;  %v1520_v22 = vld [vmem:[%s2038_s6 + $0x54] ss:$8 sps:$4 sm:$0xff]   ;;  %v1579_v45 = vld [vmem:[%s2044_s11 + $0x8] sm:$0xff]  }
  0x16   :  { %1372 = vmatprep.subr.bf16.mxu1 %v1490_v23  ;;  %v1518_v23 = vld [vmem:[%s2038_s6 + $0x50] ss:$8 sps:$4 sm:$0xff]  }
  0x17   :  { %1357 = vmatpush3.bf16.msra.mxu0 %v1495_v28  ;;  %v1536_v28 = vld [vmem:[%s2038_s6 + $0x20] ss:$8 sps:$4 sm:$0xff]  }
  0x18   :  { %1358 = vmatprep.subr.bf16.mxu0 %v1497_v30  ;;  %v1539_v30 = vld [vmem:[%s2039_s7 + $0x30] ss:$8 sps:$4 sm:$0xff]  }
  0x19   :  { %1373 = vmatpush3.bf16.msra.mxu1 %v1492_v26  ;;  %v1530_v26 = vld [vmem:[%s2038_s6 + $0x30] ss:$8 sps:$4 sm:$0xff]  }
  0x1a   :  { %1374 = vmatprep.subr.bf16.mxu1 %v1494_v27  ;;  %v1538_v27 = vld [vmem:[%s2038_s6 + $0x24] ss:$8 sps:$4 sm:$0xff]  }
  0x1b   :  { %1359 = vmatpush3.bf16.msra.mxu0 %v1499_v32  ;;  %v1542_v32 = vld [vmem:[%s2038_s6 + $0x10] ss:$8 sps:$4 sm:$0xff]  }
  0x1c   :  { %1360 = vmatprep.subr.bf16.mxu0 %v1501_v34  ;;  %v1545_v34 = vld [vmem:[%s2039_s7 + $0x20] ss:$8 sps:$4 sm:$0xff]  }
  0x1d   :  { %1375 = vmatpush3.bf16.msra.mxu1 %v1496_v29  ;;  %v1541_v29 = vld [vmem:[%s2039_s7 + $0x34] ss:$8 sps:$4 sm:$0xff]  }
  0x1e   :  { %1376 = vmatprep.subr.bf16.mxu1 %v1498_v31  ;;  %v1544_v31 = vld [vmem:[%s2038_s6 + $0x14] ss:$8 sps:$4 sm:$0xff]  }
  0x1f   :  { %1361 = vmatpush3.bf16.msra.mxu0 %v1503_v36  ;;  %v1548_v36 = vld [vmem:[%s2038_s6] ss:$8 sps:$4 sm:$0xff]  }
  0x20   :  { %651 = vmatprep.subr.bf16.mxu0 %v1517_v43 }
  0x21   :  { %1377 = vmatpush3.bf16.msra.mxu1 %v1500_v33  ;;  %v1547_v33 = vld [vmem:[%s2039_s7 + $0x24] ss:$8 sps:$4 sm:$0xff]  }
  0x22   :  { %1378 = vmatprep.subr.bf16.mxu1 %v1502_v35  ;;  %v1550_v35 = vld [vmem:[%s2038_s6 + $0x4] ss:$8 sps:$4 sm:$0xff]  }
  0x25   :  { %1379 = vmatpush3.bf16.msra.mxu1 %v1504_v37  ;;  %v1553_v37 = vld [vmem:[%s2039_s7 + $0x14] ss:$8 sps:$4 sm:$0xff]  }
  0x26   :  { %1380 = vmatprep.subr.bf16.mxu1 %v1505_v38  ;;  %v1551_v38 = vld [vmem:[%s2039_s7 + $0x10] ss:$8 sps:$4 sm:$0xff]  }
  0x29   :  { %1381 = vmatpush3.bf16.msra.mxu1 %v1506_v39  ;;  %v537_v39 = vld [vmem:[%s2041_s0] sm:$0xf] }
  0x2a   :  { %1382 = vmatprep.subr.bf16.mxu1 %v1507_v40  ;;  %v1556_v40 = vld [vmem:[%s2039_s7 + $0x4] ss:$8 sps:$4 sm:$0xff]  }
  0x2d   :  { %1383 = vmatpush3.bf16.msra.mxu1 %v1508_v41  ;;  %v1554_v41 = vld [vmem:[%s2039_s7] ss:$8 sps:$4 sm:$0xff]  }
  0x2e   :  { %772 = vmatprep.subr.bf16.mxu1 %v1511_v42  ;;  %v1557_v42 = vld [vmem:[%s2042_s9 + $0x78] sm:$0xff]  }
  0xc8   :  { %v137_v51 = vpop.f32.mrf.mxu1 }
  0xc9   :  { %v138_v52 = vadd.f32 %v137_v51, %v59_v49  ;;  %v1246_v51 = vld [vmem:[%s2043_s5] ss:$0 sm:$0xff] }
  0xca   :  { %v139_v54 = vpop.f32.mrf.mxu1 }
  0xcb   :  { %v140_v55 = vadd.f32 %v139_v54, %v63_v50  ;;  %v185_v57 = vmax.f32 %v138_v52, 0.0 }
  0xcc   :  { %v141_v58 = vpop.f32.mrf.mxu1 }
  0xcd   :  { %v186_v60 = vmax.f32 %v140_v55, 0.0  ;;  %v189_v1 = vpack.c.bf16 %v185_v57, %v185_v57 }
  0xce   :  { %v142_v61 = vpop.f32.mrf.mxu1 }
  0xcf   :  { %v190_v62 = vpack.c.bf16 %v186_v60, %v186_v60  ;;  %v1558_v60 = vld [vmem:[%s2042_s9 + $0x38] sm:$0xff]  }
  0xd0   :  { %v178_v3 = vpop.f32.mrf.mxu1 }
  0xd1   :  { %v179_v5 = vadd.f32 %v178_v3, %v67_v59  ;;  %488 = vmatprep.mubr.bf16.mxu0 %v190_v62  ;;  %v1559_v62 = vld [vmem:[%s2042_s9 + $0x70] sm:$0xff]   ;;  %v1563_v3 = vld [vmem:[%s2042_s9 + $0x60] sm:$0xff]  }
  0xd2   :  { %v180_v6 = vpop.f32.mrf.mxu1  ;;  %489 = vmatmul.mubr.bf16.vlgmr.msra.gmra.mxu0 %v189_v1  ;;  %v1562_v1 = vld [vmem:[%s2042_s9 + $0x28] sm:$0xff]  }
  0xd3   :  { %v181_v7 = vadd.f32 %v180_v6, %v71_v63  ;;  %652 = vmatpush1.bf16.msra.mxu0 %v1515_v0  ;;  %683 = vmatprep.mubr.bf16.mxu0 %v1589_v2  ;;  %v187_v9 = vmax.f32 %v179_v5, 0.0  ;;  %v1560_v63 = vld [vmem:[%s2042_s9 + $0x30] sm:$0xff]   ;;  %v1561_v0 = vld [vmem:[%s2042_s9 + $0x68] sm:$0xff]   ;;  %v1565_v5 = vld [vmem:[%s2042_s9 + $0x58] sm:$0xff]  }
  0xd4   :  { %v182_v10 = vpop.f32.mrf.mxu1  ;;  %653 = vmatprep.subr.bf16.mxu0 %v1523_v4  ;;  %v1564_v4 = vld [vmem:[%s2042_s9 + $0x20] sm:$0xff]   ;;  %v1566_v6 = vld [vmem:[%s2042_s9 + $0x18] sm:$0xff]  }
  0xd5   :  { %v188_v12 = vmax.f32 %v181_v7, 0.0  ;;  %v191_v17 = vpack.c.bf16 %v187_v9, %v187_v9  ;;  %v1567_v10 = vld [vmem:[%s2042_s9 + $0x50] sm:$0xff]  }
  0xd6   :  { %v183_v13 = vpop.f32.mrf.mxu1 }
  0xd7   :  { %v192_v14 = vpack.c.bf16 %v188_v12, %v188_v12  ;;  %654 = vmatpush1.bf16.msra.mxu0 %v1521_v8  ;;  %v1569_v13 = vld [vmem:[%s2042_s9 + $0x48] sm:$0xff]  }
  0xd8   :  { %655 = vmatprep.subr.bf16.mxu0 %v1529_v11  ;;  %v1568_v11 = vld [vmem:[%s2042_s9 + $0x10] sm:$0xff]  }
  0xd9   :  { %528 = vmatprep.mubr.bf16.mxu1 %v192_v14  ;;  %v1570_v14 = vld [vmem:[%s2042_s9 + $0x8] sm:$0xff]  }
  0xda   :  { %529 = vmatmul.mubr.bf16.vlgmr.msra.gmra.mxu1 %v191_v17  ;;  %v1590_v17 = vmov 0.0  }
  0xdb   :  { %773 = vmatpush1.bf16.msra.mxu1 %v1509_v15  ;;  %656 = vmatpush1.bf16.msra.mxu0 %v1527_v16  ;;  %v1571_v15 = vld [vmem:[%s2042_s9 + $0x40] sm:$0xff]  }
  0xdc   :  { %774 = vmatprep.subr.bf16.mxu1 %v1514_v18  ;;  %657 = vmatprep.subr.bf16.mxu0 %v1535_v19  ;;  %v1572_v16 = vld [vmem:[%s2042_s9] sm:$0xff]   ;;  %v1573_v18 = vld [vmem:[%s2044_s11 + $0x38] sm:$0xff]   ;;  %v1574_v19 = vld [vmem:[%s2044_s11 + $0x30] sm:$0xff]  }
  0xdd   :  { %804 = vmatprep.mubr.bf16.mxu1 %v1589_v2  ;;  %v1532_v2 = vld [vmem:[%s2038_s6 + $0x34] ss:$8 sps:$4 sm:$0xff]  }
  0xdf   :  { %775 = vmatpush1.bf16.msra.mxu1 %v1512_v20  ;;  %658 = vmatpush1.bf16.msra.mxu0 %v1533_v21  ;;  %v1575_v20 = vld [vmem:[%s2044_s11 + $0x28] sm:$0xff]   ;;  %v1576_v21 = vld [vmem:[%s2044_s11 + $0x20] sm:$0xff]  }
  0xe0   :  { %776 = vmatprep.subr.bf16.mxu1 %v1520_v22  ;;  %659 = vmatprep.subr.bf16.mxu0 %v1541_v29  ;;  %v1577_v22 = vld [vmem:[%s2044_s11 + $0x18] sm:$0xff]  }
  0xe3   :  { %777 = vmatpush1.bf16.msra.mxu1 %v1518_v23  ;;  %660 = vmatpush1.bf16.msra.mxu0 %v1539_v30  ;;  %v813_v23 = vld [vmem:[%s2045_s8] sm:$0x3] }
  0xe4   :  { %778 = vmatprep.subr.bf16.mxu1 %v1526_v24  ;;  %661 = vmatprep.subr.bf16.mxu0 %v1547_v33  ;;  %v818_v24 = vrot.slane %v813_v23, %v58_v46  ;;  %v1578_v46 = vld [vmem:[%s2044_s11 + $0x10] sm:$0xff]  }
  0xe7   :  { %779 = vmatpush1.bf16.msra.mxu1 %v1524_v25  ;;  %662 = vmatpush1.bf16.msra.mxu0 %v1545_v34 }
  0xe8   :  { %780 = vmatprep.subr.bf16.mxu1 %v1532_v2  ;;  %663 = vmatprep.subr.bf16.mxu0 %v1553_v37  ;;  %v1581_v37 = vld [vmem:[%s2046_s13 + $0x38] sm:$0xff]  }
  0xeb   :  { %781 = vmatpush1.bf16.msra.mxu1 %v1530_v26  ;;  %664 = vmatpush1.bf16.msra.mxu0 %v1551_v38  ;;  %v822_v26 = vrot.slane %v813_v23, %v62_v48  ;;  %v1580_v48 = vld [vmem:[%s2044_s11] sm:$0xff]   ;;  %v1582_v38 = vld [vmem:[%s2046_s13 + $0x30] sm:$0xff]  }
  0xec   :  { %782 = vmatprep.subr.bf16.mxu1 %v1538_v27  ;;  %665 = vmatprep.subr.bf16.mxu0 %v1556_v40  ;;  %v1584_v40 = vld [vmem:[%s2046_s13 + $0x20] sm:$0xff]  }
  0xef   :  { %783 = vmatpush1.bf16.msra.mxu1 %v1536_v28  ;;  %666 = vmatpush1.bf16.msra.mxu0 %v1554_v41  ;;  %v1585_v41 = vld [vmem:[%s2046_s13 + $0x18] sm:$0xff]  }
  0xf0   :  { %784 = vmatprep.subr.bf16.mxu1 %v1544_v31  ;;  %1390 = vmatprep.subr.bf16.mxu0 %v1557_v42  ;;  %v1586_v42 = vld [vmem:[%s2046_s13 + $0x10] sm:$0xff]  }
  0xf3   :  { %785 = vmatpush1.bf16.msra.mxu1 %v1542_v32 }
  0xf4   :  { %786 = vmatprep.subr.bf16.mxu1 %v1550_v35 }
  0xf7   :  { %787 = vmatpush1.bf16.msra.mxu1 %v1548_v36 }
  0xf8   :  { %1430 = vmatprep.subr.bf16.mxu1 %v1590_v17 }
  0xfa   :  { %805 = vmatmul.mubr.bf16.vlgmr.msra.gmra.mxu1 %v537_v39  ;;  %v1583_v39 = vld [vmem:[%s2046_s13 + $0x28] sm:$0xff]  }
  0xfb   :  { %1431 = vmatpush3.bf16.msra.mxu1 %v1573_v18  ;;  %1446 = vmatprep.mubr.msk.bf16.mxu1 %vm1591_vm2, %v1590_v17 }
  0xfc   :  { %1432 = vmatprep.subr.bf16.mxu1 %v1590_v17 }
  0xff   :  { %1433 = vmatpush3.bf16.msra.mxu1 %v1574_v19 }
 0x100   :  { %1434 = vmatprep.subr.bf16.mxu1 %v1590_v17 }
 0x103   :  { %1435 = vmatpush3.bf16.msra.mxu1 %v1575_v20 }
 0x104   :  { %1436 = vmatprep.subr.bf16.mxu1 %v1590_v17 }
 0x107   :  { %1437 = vmatpush3.bf16.msra.mxu1 %v1576_v21 }
 0x108   :  { %1438 = vmatprep.subr.bf16.mxu1 %v1590_v17 }
 0x10b   :  { %1439 = vmatpush3.bf16.msra.mxu1 %v1577_v22 }
 0x10c   :  { %1440 = vmatprep.subr.bf16.mxu1 %v1590_v17 }
 0x10f   :  { %1441 = vmatpush3.bf16.msra.mxu1 %v1578_v46 }
 0x110   :  { %1442 = vmatprep.subr.bf16.mxu1 %v1590_v17 }
 0x113   :  { %1443 = vmatpush3.bf16.msra.mxu1 %v1579_v45 }
 0x114   :  { %1444 = vmatprep.subr.bf16.mxu1 %v1590_v17 }
 0x117   :  { %1445 = vmatpush3.bf16.msra.mxu1 %v1580_v48 }
 0x192   :  { %v1362_v43 = vpop.f32.mrf.mxu0 }
 0x194   :  { %v1363_v44 = vpop.f32.mrf.mxu0 }
 0x195   :  { %v1364_v50 = vadd.f32 %v1363_v44, %v1362_v43  ;;  %v1311_v44 = vld [vmem:[%s2047_s10] ss:$0 sm:$0xff] }
 0x196   :  { %v1365_v47 = vpop.f32.mrf.mxu0 }
 0x197   :  { %v491_v54 = vadd.f32 %v1364_v50, %v1246_v51 }
 0x198   :  { %v1366_v49 = vpop.f32.mrf.mxu0 }
 0x19a   :  { %v1384_v52 = vpop.f32.mrf.mxu1 }
 0x19c   :  { %v1385_v53 = vpop.f32.mrf.mxu1 }
 0x19d   :  { %v1386_v55 = vadd.f32 %v1385_v53, %v1384_v52 }
 0x19e   :  { %v1387_v56 = vpop.f32.mrf.mxu1 }
 0x19f   :  { %v531_v57 = vadd.f32 %v1386_v55, %v491_v54  ;;  %v1587_v55 = vld [vmem:[%s2046_s13 + $0x8] sm:$0xff]   ;;  %v1588_v56 = vld [vmem:[%s2046_s13] sm:$0xff]  }
 0x1a0   :  { %v1388_v58 = vpop.f32.mrf.mxu1 }
 0x1a1   :  { %v536_v59 = vmax.f32 %v531_v57, 0.0  ;;  %v1328_v57 = vld [vmem:[%s2048_s12] ss:$0 sm:$0xff] }
 0x1a3   :  { %v554_v61 = vpack.c.bf16 %v536_v59, %v536_v59 }
 0x1a5   :  { %684 = vmatmul.mubr.bf16.vlgmr.msra.gmra.mxu0 %v554_v61 }
 0x1a6   :  { %1391 = vmatpush3.bf16.msra.mxu0 %v1558_v60 }
 0x1a7   :  { %1392 = vmatprep.subr.bf16.mxu0 %v1559_v62 }
 0x1aa   :  { %1393 = vmatpush3.bf16.msra.mxu0 %v1560_v63 }
 0x1ab   :  { %1394 = vmatprep.subr.bf16.mxu0 %v1561_v0 }
 0x1ae   :  { %1395 = vmatpush3.bf16.msra.mxu0 %v1562_v1  ;;  %v1337_v1 = vld [vmem:[%s2049_s14] ss:$0 sm:$0xff] }
 0x1af   :  { %1396 = vmatprep.subr.bf16.mxu0 %v1563_v3 }
 0x1b2   :  { %1397 = vmatpush3.bf16.msra.mxu0 %v1564_v4 }
 0x1b3   :  { %1398 = vmatprep.subr.bf16.mxu0 %v1565_v5 }
 0x1b6   :  { %1399 = vmatpush3.bf16.msra.mxu0 %v1566_v6 }
 0x1b7   :  { %1400 = vmatprep.subr.bf16.mxu0 %v1567_v10 }
 0x1ba   :  { %v806_v7 = vpop.f32.mrf.mxu1  ;;  %1401 = vmatpush3.bf16.msra.mxu0 %v1568_v11 }
 0x1bb   :  { %1402 = vmatprep.subr.bf16.mxu0 %v1569_v13 }
 0x1bc   :  { %v808_v8 = vpop.f32.mrf.mxu1 }
 0x1be   :  { %v810_v9 = vpop.f32.mrf.mxu1  ;;  %1403 = vmatpush3.bf16.msra.mxu0 %v1570_v14 }
 0x1bf   :  { %1404 = vmatprep.subr.bf16.mxu0 %v1571_v15 }
 0x1c0   :  { %v811_v12 = vpop.f32.mrf.mxu1 }
 0x1c2   :  { %1405 = vmatpush3.bf16.msra.mxu0 %v1572_v16 }
 0x1c3   :  { %1450 = vmatprep.subr.bf16.mxu0 %v1590_v17 }
 0x265   :  { %v685_v25 = vpop.f32.mrf.mxu0 }
 0x266   :  { %v807_v2 = vadd.f32 %v806_v7, %v685_v25 }
 0x267   :  { %v687_v27 = vpop.f32.mrf.mxu0 }
 0x268   :  { %v825_v28 = vadd.f32 %v818_v24, %v807_v2  ;;  %v809_v29 = vadd.f32 %v808_v8, %v687_v27 }
 0x269   :  { %v689_v30 = vpop.f32.mrf.mxu0 }
 0x26a   :  { %v826_v31 = vadd.f32 %v822_v26, %v809_v29  ;;  %v827_v32 = vmax.f32 %v825_v28, 0.0 }
 0x26b   :  { %v690_v33 = vpop.f32.mrf.mxu0 }
 0x26c   :  { %v828_v34 = vmax.f32 %v826_v31, 0.0  ;;  %v829_v36 = vpack.c.bf16 %v827_v32, %v827_v32 }
 0x26e   :  { %v830_v35 = vpack.c.bf16 %v828_v34, %v828_v34 }
 0x270   :  { %998 = vmatprep.mubr.bf16.mxu0 %v830_v35 }
 0x271   :  { %999 = vmatmul.mubr.bf16.vlgmr.msra.gmra.mxu0 %v829_v36 }
 0x272   :  { %1466 = vmatprep.mubr.msk.bf16.mxu0 %vm1591_vm2, %v1590_v17  ;;  %1451 = vmatpush3.bf16.msra.mxu0 %v1581_v37 }
 0x273   :  { %1452 = vmatprep.subr.bf16.mxu0 %v1590_v17 }
 0x276   :  { %1453 = vmatpush3.bf16.msra.mxu0 %v1582_v38 }
 0x277   :  { %1454 = vmatprep.subr.bf16.mxu0 %v1590_v17 }
 0x27a   :  { %1455 = vmatpush3.bf16.msra.mxu0 %v1583_v39 }
 0x27b   :  { %1456 = vmatprep.subr.bf16.mxu0 %v1590_v17 }
 0x27e   :  { %1457 = vmatpush3.bf16.msra.mxu0 %v1584_v40 }
 0x27f   :  { %1458 = vmatprep.subr.bf16.mxu0 %v1590_v17 }
 0x282   :  { %1459 = vmatpush3.bf16.msra.mxu0 %v1585_v41 }
 0x283   :  { %1460 = vmatprep.subr.bf16.mxu0 %v1590_v17 }
 0x286   :  { %1461 = vmatpush3.bf16.msra.mxu0 %v1586_v42 }
 0x287   :  { %1462 = vmatprep.subr.bf16.mxu0 %v1590_v17 }
 0x28a   :  { %1463 = vmatpush3.bf16.msra.mxu0 %v1587_v55 }
 0x28b   :  { %1464 = vmatprep.subr.bf16.mxu0 %v1590_v17 }
 0x28e   :  { %1465 = vmatpush3.bf16.msra.mxu0 %v1588_v56 }
 0x331   :  { %v1406_v43 = vpop.f32.mrf.mxu0 }
 0x333   :  { %v1407_v47 = vpop.f32.mrf.mxu0 }
 0x334   :  { %v1408_v49 = vadd.f32 %v1407_v47, %v1406_v43 }
 0x335   :  { %v1409_v50 = vpop.f32.mrf.mxu0 }
 0x336   :  { %v1001_v51 = vadd.f32 %v1408_v49, %v1311_v44 }
 0x337   :  { %v1410_v52 = vpop.f32.mrf.mxu0 }
 0x338   :  { %v1006_v53 = vmax.f32 %v1001_v51, 0.0 }
 0x33a   :  { %v1007_v54 = vpack.c.bf16 %v1006_v53, %v1006_v53 }
 0x33c   :  { %1447 = vmatmul.mubr.bf16.vlgmr.msra.gmra.mxu1 %v1007_v54 }
 0x3fc   :  { %v1113_v58 = vpop.f32.mrf.mxu1 }
 0x3fd   :  { %v1114_v59 = vadd.f32 %v1328_v57, %v1113_v58 }
 0x3fe   :  { %v1448_v60 = vpop.f32.mrf.mxu1 }
 0x3ff   :  { %v1119_v61 = vmax.f32 %v1114_v59, 0.0 }
 0x400   :  { %v1116_v62 = vpop.f32.mrf.mxu1 }
 0x401   :  { %v1120_v63 = vpack.c.bf16 %v1119_v61, %v1119_v61 }
 0x402   :  { %v1449_v0 = vpop.f32.mrf.mxu1 }
 0x403   :  { %1467 = vmatmul.mubr.bf16.vlgmr.msra.gmra.mxu0 %v1120_v63 }
 0x4c3   :  { %v1226_v3 = vpop.f32.mrf.mxu0 }
 0x4c4   :  { %v1227_v4 = vadd.f32 %v1337_v1, %v1226_v3 }
 0x4c5   :  { %v1468_v5 = vpop.f32.mrf.mxu0 }
 0x4c6   :  { %1233 = vst.msk [vmem:[%s2050_s15] sm:$0xff] %vm1232_vm3, %v1227_v4 }
 0x4c7   :  { %v1229_v6 = vpop.f32.mrf.mxu0 }
 0x4c9   :  { %v1469_v7 = vpop.f32.mrf.mxu0 }

</bundles_post_ra>
